<compile_context>
chip_gen: v6e
topology: v6e:2x2x1
jax: 0.10.0
libtpu: 0.0.40
codegen_flags: <defaults>
</compile_context>

<pallas_src>
import jax
import jax.numpy as jnp
from jax.experimental import pallas as pl
from jax.experimental.pallas import tpu as pltpu


# ----------------------------------------------------------------------------
# Model configuration (small CLIP-style ViT; real CLIP weights cannot be loaded)
# ----------------------------------------------------------------------------
IMG = 32          # image height / width
CHANS = 3         # image channels
PATCH = 8         # patch size -> 4x4 = 16 patches
D = 32            # vision hidden size
HEADS = 4         # attention heads
DH = D // HEADS   # per-head dim
MLP = 4 * D       # MLP hidden
LAYERS = 2        # transformer blocks
PROJ = 32         # CLIP projection dim (image_embeds size)
ADAPT_H = 16      # adapter hidden
ADAPT_OUT = 1     # binary logit
LN_EPS = 1e-5
NEG_INF = -1e9

N_PATCH = (IMG // PATCH) ** 2
SEQ = N_PATCH + 1                 # +1 CLS token (= 17)
SEQ_P = 24                        # SEQ padded to a multiple of 8 (masked in attn)
PATCH_DIM = CHANS * PATCH * PATCH # 192
SLAB_W = 128                      # lane width of both weight slabs
MAX_BT = 128                      # images per grid step (cap)


# ----------------------------------------------------------------------------
# Static slab layouts (shared by the packer and the kernel)
# ----------------------------------------------------------------------------
def _build_w_layout():
    """bf16 weight slab: rows of width <= 128, row-block per weight matrix."""
    rows, r = {}, 0

    def add(name, nr, nc):
        nonlocal r
        rows[name] = (r, nr, nc)
        r += nr

    add("patch_w", PATCH_DIM, D)
    for l in range(LAYERS):
        add(f"wqkv{l}", D, 3 * D)      # fused QKV, scale folded into q columns
        add(f"wo{l}", D, D)
        add(f"w_fc1{l}", D, MLP)
        add(f"w_fc2{l}", MLP, D)
    add("visual_proj", D, PROJ)
    add("adapter_w1", PROJ, ADAPT_H)
    total = -(-r // 16) * 16           # bf16 sublane-pack alignment
    return rows, total


def _build_b_layout():
    """f32 LN/bias slab: one padded 128-wide row per vector."""
    rows, r = {}, 0

    def add(name, nc):
        nonlocal r
        rows[name] = (r, nc)
        r += 1

    add("pre_g", D); add("pre_b", D)
    for l in range(LAYERS):
        add(f"ln1_g{l}", D); add(f"ln1_b{l}", D)
        add(f"bqkv{l}", 3 * D)
        add(f"bo{l}", D)
        add(f"ln2_g{l}", D); add(f"ln2_b{l}", D)
        add(f"b_fc1{l}", MLP)
        add(f"b_fc2{l}", D)
    add("post_g", D); add("post_b", D)
    add("adapter_b1", ADAPT_H)
    add("adapter_w2", ADAPT_H)         # final projection stored as a row
    add("adapter_b2", ADAPT_OUT)
    add("key_mask", SEQ_P)             # 0 for real keys, -1e9 for padded keys
    total = -(-r // 8) * 8
    return rows, total


W_ROWS, W_TOTAL = _build_w_layout()
B_ROWS, B_TOTAL = _build_b_layout()


# ----------------------------------------------------------------------------
# The fused Pallas kernel: CLIP-vision + adapter forward for BT images
# ----------------------------------------------------------------------------
def _clip_adapter_kernel(patches_ref,     # [1, BT*SEQ_P, PATCH_DIM] bf16
                         embed_bias_ref,  # [BT*SEQ_P, D] f32 (cls+pos folded, tiled)
                         wslab_ref,       # [W_TOTAL, 128] bf16 weight slab
                         bslab_ref,       # [B_TOTAL, 128] f32 LN/bias slab
                         out_ref):        # [1, BT, ADAPT_OUT] f32
    f32, bf16 = jnp.float32, jnp.bfloat16
    bt = out_ref.shape[1]

    def wslice(name):
        r0, nr, nc = W_ROWS[name]
        return wslab_ref[r0:r0 + nr, :nc]

    def brow(name):
        r0, nc = B_ROWS[name]
        return bslab_ref[r0:r0 + 1, :nc]

    def ln(x, g, b):                   # LayerNorm in f32 (biased variance)
        mu = jnp.mean(x, axis=-1, keepdims=True)
        var = jnp.mean(jnp.square(x - mu), axis=-1, keepdims=True)
        return (x - mu) * jax.lax.rsqrt(var + LN_EPS) * g + b

    # --- patch embedding (stride==kernel Conv2d as ONE matmul over BT*SEQ_P rows) ---
    x = patches_ref[0]                                                # [BT*S, PATCH_DIM]
    h = jnp.dot(x, wslice("patch_w"), preferred_element_type=f32)
    h = h + embed_bias_ref[...]                                       # CLS + pos (tiled)
    h = ln(h, brow("pre_g"), brow("pre_b"))                           # CLIP pre-LN

    key_bias = brow("key_mask")                                       # [1, SEQ_P]

    for l in range(LAYERS):            # static unroll; weights stay VMEM-resident
        # ---------------- multi-head self attention ----------------
        res = h
        hn = ln(h, brow(f"ln1_g{l}"), brow(f"ln1_b{l}"))
        # fused QKV: single [BT*S, D] x [D, 3D] matmul (scale folded into q cols)
        qkv = jnp.dot(hn.astype(bf16), wslice(f"wqkv{l}"),
                      preferred_element_type=f32) + brow(f"bqkv{l}")  # [BT*S, 3D]
        heads = []
        for hh in range(HEADS):        # per-head, batched over BT images
            q_h = qkv[:, hh * DH:(hh + 1) * DH].astype(bf16).reshape(bt, SEQ_P, DH)
            k_h = qkv[:, D + hh * DH:D + (hh + 1) * DH].astype(bf16).reshape(bt, SEQ_P, DH)
            v_h = qkv[:, 2 * D + hh * DH:2 * D + (hh + 1) * DH].astype(bf16).reshape(bt, SEQ_P, DH)
            s_h = jnp.einsum("bqd,bkd->bqk", q_h, k_h,
                             preferred_element_type=f32)              # [BT, S, S]
            s_h = s_h + key_bias                                      # mask padded keys
            s_h = s_h - jnp.max(s_h, axis=-1, keepdims=True)
            p_h = jnp.exp(s_h)
            p_h = p_h * pl.reciprocal(jnp.sum(p_h, axis=-1, keepdims=True),
                                      approx=True)
            o_h = jnp.einsum("bqk,bkd->bqd", p_h.astype(bf16), v_h,
                             preferred_element_type=f32)              # [BT, S, DH]
            heads.append(o_h)
        # merge heads -> ONE [BT*S, D] x [D, D] output projection
        o = jnp.concatenate(heads, axis=-1).reshape(bt * SEQ_P, D)
        attn = jnp.dot(o.astype(bf16), wslice(f"wo{l}"),
                       preferred_element_type=f32) + brow(f"bo{l}")
        h = res + attn

        # ------------------------ MLP (QuickGELU) ------------------
        res = h
        hn = ln(h, brow(f"ln2_g{l}"), brow(f"ln2_b{l}"))
        m = jnp.dot(hn.astype(bf16), wslice(f"w_fc1{l}"),
                    preferred_element_type=f32) + brow(f"b_fc1{l}")   # [BT*S, MLP]
        m = m * jax.nn.sigmoid(1.702 * m)                             # QuickGELU (f32)
        m = jnp.dot(m.astype(bf16), wslice(f"w_fc2{l}"),
                    preferred_element_type=f32) + brow(f"b_fc2{l}")   # [BT*S, D]
        h = res + m

    # --- CLS pooling -> post-LN -> visual projection -> adapter head ---
    cls = h.reshape(bt, SEQ_P, D)[:, 0, :]                            # [BT, D]
    pooled = ln(cls, brow("post_g"), brow("post_b"))
    img = jnp.dot(pooled.astype(bf16), wslice("visual_proj"),
                  preferred_element_type=f32)                         # [BT, PROJ]
    a = jnp.dot(img.astype(bf16), wslice("adapter_w1"),
                preferred_element_type=f32) + brow("adapter_b1")      # [BT, ADAPT_H]
    a = jnp.maximum(a, 0.0)                                           # ReLU
    # final [ADAPT_H] -> [1] projection as a lane reduction
    logit = jnp.sum(a * brow("adapter_w2"), axis=-1,
                    keepdims=True) + brow("adapter_b2")               # [BT, 1]
    out_ref[0] = logit.astype(out_ref.dtype)


# ----------------------------------------------------------------------------
# Deterministic parameter initialization (PyTorch-style module structure)
# ----------------------------------------------------------------------------
def _init_params(key):
    def nrm(k, shape, std=0.02):
        return (std * jax.random.normal(k, shape)).astype(jnp.float32)

    keys = iter(jax.random.split(key, 64))
    p = {
        "patch_w": nrm(next(keys), (PATCH_DIM, D)),          # conv-as-matmul (no bias)
        "cls": nrm(next(keys), (1, 1, D)),
        "pos": nrm(next(keys), (1, SEQ, D)),
        "pre_ln_g": jnp.ones((D,), jnp.float32),
        "pre_ln_b": jnp.zeros((D,), jnp.float32),
        "post_ln_g": jnp.ones((D,), jnp.float32),
        "post_ln_b": jnp.zeros((D,), jnp.float32),
        "visual_proj": nrm(next(keys), (D, PROJ)),            # no bias in CLIP
        "adapter_w1": nrm(next(keys), (PROJ, ADAPT_H)),
        "adapter_b1": jnp.zeros((ADAPT_H,), jnp.float32),
        "adapter_w2": nrm(next(keys), (ADAPT_H, ADAPT_OUT)),
        "adapter_b2": jnp.zeros((ADAPT_OUT,), jnp.float32),
        "blocks": [],
    }
    for _ in range(LAYERS):
        blk = {
            "ln1_g": jnp.ones((D,), jnp.float32), "ln1_b": jnp.zeros((D,), jnp.float32),
            "ln2_g": jnp.ones((D,), jnp.float32), "ln2_b": jnp.zeros((D,), jnp.float32),
            "wq": nrm(next(keys), (D, D)), "bq": jnp.zeros((D,), jnp.float32),
            "wk": nrm(next(keys), (D, D)), "bk": jnp.zeros((D,), jnp.float32),
            "wv": nrm(next(keys), (D, D)), "bv": jnp.zeros((D,), jnp.float32),
            "wo": nrm(next(keys), (D, D)), "bo": jnp.zeros((D,), jnp.float32),
            "w_fc1": nrm(next(keys), (D, MLP)), "b_fc1": jnp.zeros((MLP,), jnp.float32),
            "w_fc2": nrm(next(keys), (MLP, D)), "b_fc2": jnp.zeros((D,), jnp.float32),
        }
        p["blocks"].append(blk)
    return p


# ----------------------------------------------------------------------------
# One-time parameter packing into two VMEM-resident slabs
# ----------------------------------------------------------------------------
def _pack_params(p):
    f32, bf16 = jnp.float32, jnp.bfloat16
    scale = 1.0 / float(DH) ** 0.5      # folded into wq / bq at pack time

    # --- bf16 matmul-weight slab ---
    wslab = jnp.zeros((W_TOTAL, SLAB_W), f32)

    def put_w(slab, name, arr):
        r0, nr, nc = W_ROWS[name]
        return slab.at[r0:r0 + nr, :nc].set(arr.astype(f32))

    wslab = put_w(wslab, "patch_w", p["patch_w"])
    for l, blk in enumerate(p["blocks"]):
        wqkv = jnp.concatenate([blk["wq"] * scale, blk["wk"], blk["wv"]], axis=1)
        wslab = put_w(wslab, f"wqkv{l}", wqkv)
        wslab = put_w(wslab, f"wo{l}", blk["wo"])
        wslab = put_w(wslab, f"w_fc1{l}", blk["w_fc1"])
        wslab = put_w(wslab, f"w_fc2{l}", blk["w_fc2"])
    wslab = put_w(wslab, "visual_proj", p["visual_proj"])
    wslab = put_w(wslab, "adapter_w1", p["adapter_w1"])
    wslab = wslab.astype(bf16)

    # --- f32 LN/bias slab (one padded row per vector) ---
    bslab = jnp.zeros((B_TOTAL, SLAB_W), f32)

    def put_b(slab, name, vec):
        r0, nc = B_ROWS[name]
        return slab.at[r0, :nc].set(vec.astype(f32).reshape(nc))

    bslab = put_b(bslab, "pre_g", p["pre_ln_g"])
    bslab = put_b(bslab, "pre_b", p["pre_ln_b"])
    for l, blk in enumerate(p["blocks"]):
        bslab = put_b(bslab, f"ln1_g{l}", blk["ln1_g"])
        bslab = put_b(bslab, f"ln1_b{l}", blk["ln1_b"])
        bslab = put_b(bslab, f"bqkv{l}",
                      jnp.concatenate([blk["bq"] * scale, blk["bk"], blk["bv"]]))
        bslab = put_b(bslab, f"bo{l}", blk["bo"])
        bslab = put_b(bslab, f"ln2_g{l}", blk["ln2_g"])
        bslab = put_b(bslab, f"ln2_b{l}", blk["ln2_b"])
        bslab = put_b(bslab, f"b_fc1{l}", blk["b_fc1"])
        bslab = put_b(bslab, f"b_fc2{l}", blk["b_fc2"])
    bslab = put_b(bslab, "post_g", p["post_ln_g"])
    bslab = put_b(bslab, "post_b", p["post_ln_b"])
    bslab = put_b(bslab, "adapter_b1", p["adapter_b1"])
    bslab = put_b(bslab, "adapter_w2", p["adapter_w2"][:, 0])
    bslab = put_b(bslab, "adapter_b2", p["adapter_b2"])
    key_mask = jnp.where(jnp.arange(SEQ_P) < SEQ, 0.0, NEG_INF)
    bslab = put_b(bslab, "key_mask", key_mask)

    # --- CLS token + positional embedding folded into one additive [SEQ_P, D] bias ---
    # (the CLS / pad rows of the patch matrix are zero, so the matmul adds 0 there)
    embed_bias = jnp.zeros((SEQ_P, D), f32)
    embed_bias = embed_bias.at[0:SEQ, :].set(p["pos"][0])
    embed_bias = embed_bias.at[0, :].add(p["cls"].reshape(D))

    return {"wslab": wslab, "bslab": bslab, "embed_bias": embed_bias}


def _patchify(x):
    """NCHW [B,C,H,W] -> [B, N_PATCH, C*PATCH*PATCH] (c, kh, kw order)."""
    B = x.shape[0]
    g = IMG // PATCH
    x = x.reshape(B, CHANS, g, PATCH, g, PATCH)
    x = jnp.transpose(x, (0, 2, 4, 1, 3, 5))                   # [B, gh, gw, C, ph, pw]
    return x.reshape(B, N_PATCH, PATCH_DIM)


# ----------------------------------------------------------------------------
# Forward pass: one fused pallas_call for the whole model
# ----------------------------------------------------------------------------
def clip_adapter_forward(packed, pixel_values):
    B = pixel_values.shape[0]
    bt = max(1, min(MAX_BT, -(-B // 2)))     # >= 2 grid steps when B >= 2 (v7x 2 TCs)
    G = -(-B // bt)
    b_pad = G * bt

    patches = _patchify(pixel_values.astype(jnp.float32))        # [B, N_PATCH, PD]
    # leading zero row per image = CLS slot; trailing zero rows = seq pad; batch pad
    patches = jnp.pad(patches, ((0, b_pad - B), (1, SEQ_P - SEQ), (0, 0)))
    patches = patches.reshape(G, bt * SEQ_P, PATCH_DIM).astype(jnp.bfloat16)

    embed_tiled = jnp.tile(packed["embed_bias"], (bt, 1))        # [bt*SEQ_P, D]

    out = pl.pallas_call(
        _clip_adapter_kernel,
        out_shape=jax.ShapeDtypeStruct((G, bt, ADAPT_OUT), jnp.float32),
        grid=(G,),
        in_specs=[
            pl.BlockSpec((1, bt * SEQ_P, PATCH_DIM), lambda g: (g, 0, 0)),
            pl.BlockSpec((bt * SEQ_P, D), lambda g: (0, 0)),      # fetched once
            pl.BlockSpec((W_TOTAL, SLAB_W), lambda g: (0, 0)),    # fetched once
            pl.BlockSpec((B_TOTAL, SLAB_W), lambda g: (0, 0)),    # fetched once
        ],
        out_specs=pl.BlockSpec((1, bt, ADAPT_OUT), lambda g: (g, 0, 0)),
        compiler_params=pltpu.CompilerParams(
            dimension_semantics=("parallel",)),                   # batch split on v7x
    )(patches, embed_tiled, packed["wslab"], packed["bslab"])
    return out.reshape(b_pad, ADAPT_OUT)[:B]


# ----------------------------------------------------------------------------
if __name__ == "__main__":
    key = jax.random.PRNGKey(0)
    pkey, xkey = jax.random.split(key)

    params = _init_params(pkey)
    packed = _pack_params(params)
    pixel_values = jax.random.normal(xkey, (2, CHANS, IMG, IMG), dtype=jnp.float32)

    fwd = jax.jit(clip_adapter_forward)
    out = jax.block_until_ready(fwd(packed, pixel_values))

    assert out.shape == (2, ADAPT_OUT) and out.dtype == jnp.float32
    assert bool(jnp.all(jnp.isfinite(out)))
    print("KERNEL_OK")
</pallas_src>

<mosaic_0001>
module attributes {stable_mosaic.version = 11 : i64} {
  func.func @_clip_adapter_kernel(%arg0: i32, %arg1: memref<1x24x192xbf16, #tpu.memory_space<vmem>>, %arg2: memref<24x32xf32, #tpu.memory_space<vmem>>, %arg3: memref<704x128xbf16, #tpu.memory_space<vmem>>, %arg4: memref<24x128xf32, #tpu.memory_space<vmem>>, %arg5: memref<1x1x1xf32, #tpu.memory_space<vmem>>) attributes {dimension_semantics = [#tpu.dimension_semantics<parallel>], iteration_bounds = array<i64: 2>, scalar_prefetch = 0 : i64, scratch_operands = 0 : i64, tpu.core_type = #tpu.core_type<tc>, window_params = [{transform_indices = @transform_0, window_bounds = array<i64: 1, 24, 192>}, {pipeline_mode = #tpu.pipeline_mode<synchronous>, transform_indices = @transform_1, window_bounds = array<i64: 24, 32>}, {pipeline_mode = #tpu.pipeline_mode<synchronous>, transform_indices = @transform_2, window_bounds = array<i64: 704, 128>}, {pipeline_mode = #tpu.pipeline_mode<synchronous>, transform_indices = @transform_3, window_bounds = array<i64: 24, 128>}, {transform_indices = @transform_4, window_bounds = array<i64: 1, 1, 1>}]} {
    %c0 = arith.constant 0 : index
    %c0_0 = arith.constant 0 : index
    %c0_1 = arith.constant 0 : index
    %0 = vector.load %arg1[%c0, %c0_0, %c0_1] : memref<1x24x192xbf16, #tpu.memory_space<vmem>>, vector<1x24x192xbf16>
    %1 = vector.shape_cast %0 : vector<1x24x192xbf16> to vector<24x192xbf16>
    %c0_2 = arith.constant 0 : index
    %c0_3 = arith.constant 0 : index
    %2 = vector.load %arg3[%c0_2, %c0_3] : memref<704x128xbf16, #tpu.memory_space<vmem>>, vector<192x32xbf16>
    %cst = arith.constant dense<0.000000e+00> : vector<24x32xf32>
    %3 = tpu.matmul %1, %2, %cst {dimension_numbers = #tpu.dot_dimension_numbers<[1], [0], [0], [1], [0, 0, 1, 1], [], []>} : vector<24x192xbf16>, vector<192x32xbf16>, vector<24x32xf32> -> vector<24x32xf32>
    %c0_4 = arith.constant 0 : index
    %c0_5 = arith.constant 0 : index
    %4 = vector.load %arg2[%c0_4, %c0_5] : memref<24x32xf32, #tpu.memory_space<vmem>>, vector<24x32xf32>
    %5 = arith.addf %3, %4 : vector<24x32xf32>
    %c0_6 = arith.constant 0 : index
    %c0_7 = arith.constant 0 : index
    %6 = vector.load %arg4[%c0_6, %c0_7] : memref<24x128xf32, #tpu.memory_space<vmem>>, vector<1x32xf32>
    %c1 = arith.constant 1 : index
    %c0_8 = arith.constant 0 : index
    %7 = vector.load %arg4[%c1, %c0_8] : memref<24x128xf32, #tpu.memory_space<vmem>>, vector<1x32xf32>
    %cst_9 = arith.constant dense<0.000000e+00> : vector<24xf32>
    %8 = vector.multi_reduction <add>, %5, %cst_9 [1] : vector<24x32xf32> to vector<24xf32>
    %9 = vector.shape_cast %8 : vector<24xf32> to vector<24x1xf32>
    %cst_10 = arith.constant 3.200000e+01 : f32
    %10 = vector.broadcast %cst_10 : f32 to vector<24x1xf32>
    %11 = arith.divf %9, %10 : vector<24x1xf32>
    %12 = vector.broadcast %11 : vector<24x1xf32> to vector<24x32xf32>
    %13 = arith.subf %5, %12 : vector<24x32xf32>
    %14 = arith.mulf %13, %13 : vector<24x32xf32>
    %cst_11 = arith.constant dense<0.000000e+00> : vector<24xf32>
    %15 = vector.multi_reduction <add>, %14, %cst_11 [1] : vector<24x32xf32> to vector<24xf32>
    %16 = vector.shape_cast %15 : vector<24xf32> to vector<24x1xf32>
    %cst_12 = arith.constant 3.200000e+01 : f32
    %17 = vector.broadcast %cst_12 : f32 to vector<24x1xf32>
    %18 = arith.divf %16, %17 : vector<24x1xf32>
    %19 = vector.broadcast %11 : vector<24x1xf32> to vector<24x32xf32>
    %20 = arith.subf %5, %19 : vector<24x32xf32>
    %cst_13 = arith.constant 9.99999974E-6 : f32
    %21 = vector.broadcast %cst_13 : f32 to vector<24x1xf32>
    %22 = arith.addf %18, %21 : vector<24x1xf32>
    %23 = math.rsqrt %22 : vector<24x1xf32>
    %24 = vector.broadcast %23 : vector<24x1xf32> to vector<24x32xf32>
    %25 = arith.mulf %20, %24 : vector<24x32xf32>
    %26 = vector.broadcast %6 : vector<1x32xf32> to vector<24x32xf32>
    %27 = arith.mulf %25, %26 : vector<24x32xf32>
    %28 = vector.broadcast %7 : vector<1x32xf32> to vector<24x32xf32>
    %29 = arith.addf %27, %28 : vector<24x32xf32>
    %c23 = arith.constant 23 : index
    %c0_14 = arith.constant 0 : index
    %30 = vector.load %arg4[%c23, %c0_14] : memref<24x128xf32, #tpu.memory_space<vmem>>, vector<1x24xf32>
    %c2 = arith.constant 2 : index
    %c0_15 = arith.constant 0 : index
    %31 = vector.load %arg4[%c2, %c0_15] : memref<24x128xf32, #tpu.memory_space<vmem>>, vector<1x32xf32>
    %c3 = arith.constant 3 : index
    %c0_16 = arith.constant 0 : index
    %32 = vector.load %arg4[%c3, %c0_16] : memref<24x128xf32, #tpu.memory_space<vmem>>, vector<1x32xf32>
    %cst_17 = arith.constant dense<0.000000e+00> : vector<24xf32>
    %33 = vector.multi_reduction <add>, %29, %cst_17 [1] : vector<24x32xf32> to vector<24xf32>
    %34 = vector.shape_cast %33 : vector<24xf32> to vector<24x1xf32>
    %cst_18 = arith.constant 3.200000e+01 : f32
    %35 = vector.broadcast %cst_18 : f32 to vector<24x1xf32>
    %36 = arith.divf %34, %35 : vector<24x1xf32>
    %37 = vector.broadcast %36 : vector<24x1xf32> to vector<24x32xf32>
    %38 = arith.subf %29, %37 : vector<24x32xf32>
    %39 = arith.mulf %38, %38 : vector<24x32xf32>
    %cst_19 = arith.constant dense<0.000000e+00> : vector<24xf32>
    %40 = vector.multi_reduction <add>, %39, %cst_19 [1] : vector<24x32xf32> to vector<24xf32>
    %41 = vector.shape_cast %40 : vector<24xf32> to vector<24x1xf32>
    %cst_20 = arith.constant 3.200000e+01 : f32
    %42 = vector.broadcast %cst_20 : f32 to vector<24x1xf32>
    %43 = arith.divf %41, %42 : vector<24x1xf32>
    %44 = vector.broadcast %36 : vector<24x1xf32> to vector<24x32xf32>
    %45 = arith.subf %29, %44 : vector<24x32xf32>
    %cst_21 = arith.constant 9.99999974E-6 : f32
    %46 = vector.broadcast %cst_21 : f32 to vector<24x1xf32>
    %47 = arith.addf %43, %46 : vector<24x1xf32>
    %48 = math.rsqrt %47 : vector<24x1xf32>
    %49 = vector.broadcast %48 : vector<24x1xf32> to vector<24x32xf32>
    %50 = arith.mulf %45, %49 : vector<24x32xf32>
    %51 = vector.broadcast %31 : vector<1x32xf32> to vector<24x32xf32>
    %52 = arith.mulf %50, %51 : vector<24x32xf32>
    %53 = vector.broadcast %32 : vector<1x32xf32> to vector<24x32xf32>
    %54 = arith.addf %52, %53 : vector<24x32xf32>
    %55 = arith.truncf %54 : vector<24x32xf32> to vector<24x32xbf16>
    %c192 = arith.constant 192 : index
    %c0_22 = arith.constant 0 : index
    %56 = vector.load %arg3[%c192, %c0_22] : memref<704x128xbf16, #tpu.memory_space<vmem>>, vector<32x96xbf16>
    %cst_23 = arith.constant dense<0.000000e+00> : vector<24x96xf32>
    %57 = tpu.matmul %55, %56, %cst_23 {dimension_numbers = #tpu.dot_dimension_numbers<[1], [0], [0], [1], [0, 0, 1, 1], [], []>} : vector<24x32xbf16>, vector<32x96xbf16>, vector<24x96xf32> -> vector<24x96xf32>
    %c4 = arith.constant 4 : index
    %c0_24 = arith.constant 0 : index
    %58 = vector.load %arg4[%c4, %c0_24] : memref<24x128xf32, #tpu.memory_space<vmem>>, vector<1x96xf32>
    %59 = vector.broadcast %58 : vector<1x96xf32> to vector<24x96xf32>
    %60 = arith.addf %57, %59 : vector<24x96xf32>
    %61 = vector.extract_strided_slice %60 {offsets = [0, 0], sizes = [24, 8], strides = [1, 1]} : vector<24x96xf32> to vector<24x8xf32>
    %62 = arith.truncf %61 : vector<24x8xf32> to vector<24x8xbf16>
    %63 = vector.shape_cast %62 : vector<24x8xbf16> to vector<1x24x8xbf16>
    %64 = vector.extract_strided_slice %60 {offsets = [0, 32], sizes = [24, 8], strides = [1, 1]} : vector<24x96xf32> to vector<24x8xf32>
    %65 = arith.truncf %64 : vector<24x8xf32> to vector<24x8xbf16>
    %66 = vector.shape_cast %65 : vector<24x8xbf16> to vector<1x24x8xbf16>
    %67 = vector.extract_strided_slice %60 {offsets = [0, 64], sizes = [24, 8], strides = [1, 1]} : vector<24x96xf32> to vector<24x8xf32>
    %68 = arith.truncf %67 : vector<24x8xf32> to vector<24x8xbf16>
    %69 = vector.shape_cast %68 : vector<24x8xbf16> to vector<1x24x8xbf16>
    "tpu.trace_start"() <{level = 10 : i32, message = "bqd,bkd->bqk"}> : () -> ()
    %cst_25 = arith.constant dense<0.000000e+00> : vector<1x24x24xf32>
    %70 = tpu.matmul %63, %66, %cst_25 {dimension_numbers = #tpu.dot_dimension_numbers<[2], [2], [1], [1], [0, 0, 0, 1, 1, 1], [0], [0]>} : vector<1x24x8xbf16>, vector<1x24x8xbf16>, vector<1x24x24xf32> -> vector<1x24x24xf32>
    "tpu.trace_stop"() : () -> ()
    %71 = vector.shape_cast %30 : vector<1x24xf32> to vector<1x1x24xf32>
    %72 = vector.broadcast %71 : vector<1x1x24xf32> to vector<1x24x24xf32>
    %73 = arith.addf %70, %72 : vector<1x24x24xf32>
    %cst_26 = arith.constant dense<0xFF800000> : vector<1x24xf32>
    %74 = vector.multi_reduction <maximumf>, %73, %cst_26 [2] : vector<1x24x24xf32> to vector<1x24xf32>
    %75 = vector.shape_cast %74 : vector<1x24xf32> to vector<1x24x1xf32>
    %76 = vector.broadcast %75 : vector<1x24x1xf32> to vector<1x24x24xf32>
    %77 = arith.subf %73, %76 : vector<1x24x24xf32>
    %78 = math.exp %77 : vector<1x24x24xf32>
    %cst_27 = arith.constant dense<0.000000e+00> : vector<1x24xf32>
    %79 = vector.multi_reduction <add>, %78, %cst_27 [2] : vector<1x24x24xf32> to vector<1x24xf32>
    %80 = vector.shape_cast %79 : vector<1x24xf32> to vector<1x24x1xf32>
    %81 = tpu.reciprocal %80 {approx = true} : vector<1x24x1xf32> -> vector<1x24x1xf32>
    %82 = vector.broadcast %81 : vector<1x24x1xf32> to vector<1x24x24xf32>
    %83 = arith.mulf %78, %82 : vector<1x24x24xf32>
    %84 = arith.truncf %83 : vector<1x24x24xf32> to vector<1x24x24xbf16>
    "tpu.trace_start"() <{level = 10 : i32, message = "bqk,bkd->bqd"}> : () -> ()
    %cst_28 = arith.constant dense<0.000000e+00> : vector<1x24x8xf32>
    %85 = tpu.matmul %84, %69, %cst_28 {dimension_numbers = #tpu.dot_dimension_numbers<[2], [1], [1], [2], [0, 0, 0, 1, 1, 2], [0], [0]>} : vector<1x24x24xbf16>, vector<1x24x8xbf16>, vector<1x24x8xf32> -> vector<1x24x8xf32>
    "tpu.trace_stop"() : () -> ()
    %86 = vector.extract_strided_slice %60 {offsets = [0, 8], sizes = [24, 8], strides = [1, 1]} : vector<24x96xf32> to vector<24x8xf32>
    %87 = arith.truncf %86 : vector<24x8xf32> to vector<24x8xbf16>
    %88 = vector.shape_cast %87 : vector<24x8xbf16> to vector<1x24x8xbf16>
    %89 = vector.extract_strided_slice %60 {offsets = [0, 40], sizes = [24, 8], strides = [1, 1]} : vector<24x96xf32> to vector<24x8xf32>
    %90 = arith.truncf %89 : vector<24x8xf32> to vector<24x8xbf16>
    %91 = vector.shape_cast %90 : vector<24x8xbf16> to vector<1x24x8xbf16>
    %92 = vector.extract_strided_slice %60 {offsets = [0, 72], sizes = [24, 8], strides = [1, 1]} : vector<24x96xf32> to vector<24x8xf32>
    %93 = arith.truncf %92 : vector<24x8xf32> to vector<24x8xbf16>
    %94 = vector.shape_cast %93 : vector<24x8xbf16> to vector<1x24x8xbf16>
    "tpu.trace_start"() <{level = 10 : i32, message = "bqd,bkd->bqk"}> : () -> ()
    %cst_29 = arith.constant dense<0.000000e+00> : vector<1x24x24xf32>
    %95 = tpu.matmul %88, %91, %cst_29 {dimension_numbers = #tpu.dot_dimension_numbers<[2], [2], [1], [1], [0, 0, 0, 1, 1, 1], [0], [0]>} : vector<1x24x8xbf16>, vector<1x24x8xbf16>, vector<1x24x24xf32> -> vector<1x24x24xf32>
    "tpu.trace_stop"() : () -> ()
    %96 = vector.shape_cast %30 : vector<1x24xf32> to vector<1x1x24xf32>
    %97 = vector.broadcast %96 : vector<1x1x24xf32> to vector<1x24x24xf32>
    %98 = arith.addf %95, %97 : vector<1x24x24xf32>
    %cst_30 = arith.constant dense<0xFF800000> : vector<1x24xf32>
    %99 = vector.multi_reduction <maximumf>, %98, %cst_30 [2] : vector<1x24x24xf32> to vector<1x24xf32>
    %100 = vector.shape_cast %99 : vector<1x24xf32> to vector<1x24x1xf32>
    %101 = vector.broadcast %100 : vector<1x24x1xf32> to vector<1x24x24xf32>
    %102 = arith.subf %98, %101 : vector<1x24x24xf32>
    %103 = math.exp %102 : vector<1x24x24xf32>
    %cst_31 = arith.constant dense<0.000000e+00> : vector<1x24xf32>
    %104 = vector.multi_reduction <add>, %103, %cst_31 [2] : vector<1x24x24xf32> to vector<1x24xf32>
    %105 = vector.shape_cast %104 : vector<1x24xf32> to vector<1x24x1xf32>
    %106 = tpu.reciprocal %105 {approx = true} : vector<1x24x1xf32> -> vector<1x24x1xf32>
    %107 = vector.broadcast %106 : vector<1x24x1xf32> to vector<1x24x24xf32>
    %108 = arith.mulf %103, %107 : vector<1x24x24xf32>
    %109 = arith.truncf %108 : vector<1x24x24xf32> to vector<1x24x24xbf16>
    "tpu.trace_start"() <{level = 10 : i32, message = "bqk,bkd->bqd"}> : () -> ()
    %cst_32 = arith.constant dense<0.000000e+00> : vector<1x24x8xf32>
    %110 = tpu.matmul %109, %94, %cst_32 {dimension_numbers = #tpu.dot_dimension_numbers<[2], [1], [1], [2], [0, 0, 0, 1, 1, 2], [0], [0]>} : vector<1x24x24xbf16>, vector<1x24x8xbf16>, vector<1x24x8xf32> -> vector<1x24x8xf32>
    "tpu.trace_stop"() : () -> ()
    %111 = vector.extract_strided_slice %60 {offsets = [0, 16], sizes = [24, 8], strides = [1, 1]} : vector<24x96xf32> to vector<24x8xf32>
    %112 = arith.truncf %111 : vector<24x8xf32> to vector<24x8xbf16>
    %113 = vector.shape_cast %112 : vector<24x8xbf16> to vector<1x24x8xbf16>
    %114 = vector.extract_strided_slice %60 {offsets = [0, 48], sizes = [24, 8], strides = [1, 1]} : vector<24x96xf32> to vector<24x8xf32>
    %115 = arith.truncf %114 : vector<24x8xf32> to vector<24x8xbf16>
    %116 = vector.shape_cast %115 : vector<24x8xbf16> to vector<1x24x8xbf16>
    %117 = vector.extract_strided_slice %60 {offsets = [0, 80], sizes = [24, 8], strides = [1, 1]} : vector<24x96xf32> to vector<24x8xf32>
    %118 = arith.truncf %117 : vector<24x8xf32> to vector<24x8xbf16>
    %119 = vector.shape_cast %118 : vector<24x8xbf16> to vector<1x24x8xbf16>
    "tpu.trace_start"() <{level = 10 : i32, message = "bqd,bkd->bqk"}> : () -> ()
    %cst_33 = arith.constant dense<0.000000e+00> : vector<1x24x24xf32>
    %120 = tpu.matmul %113, %116, %cst_33 {dimension_numbers = #tpu.dot_dimension_numbers<[2], [2], [1], [1], [0, 0, 0, 1, 1, 1], [0], [0]>} : vector<1x24x8xbf16>, vector<1x24x8xbf16>, vector<1x24x24xf32> -> vector<1x24x24xf32>
    "tpu.trace_stop"() : () -> ()
    %121 = vector.shape_cast %30 : vector<1x24xf32> to vector<1x1x24xf32>
    %122 = vector.broadcast %121 : vector<1x1x24xf32> to vector<1x24x24xf32>
    %123 = arith.addf %120, %122 : vector<1x24x24xf32>
    %cst_34 = arith.constant dense<0xFF800000> : vector<1x24xf32>
    %124 = vector.multi_reduction <maximumf>, %123, %cst_34 [2] : vector<1x24x24xf32> to vector<1x24xf32>
    %125 = vector.shape_cast %124 : vector<1x24xf32> to vector<1x24x1xf32>
    %126 = vector.broadcast %125 : vector<1x24x1xf32> to vector<1x24x24xf32>
    %127 = arith.subf %123, %126 : vector<1x24x24xf32>
    %128 = math.exp %127 : vector<1x24x24xf32>
    %cst_35 = arith.constant dense<0.000000e+00> : vector<1x24xf32>
    %129 = vector.multi_reduction <add>, %128, %cst_35 [2] : vector<1x24x24xf32> to vector<1x24xf32>
    %130 = vector.shape_cast %129 : vector<1x24xf32> to vector<1x24x1xf32>
    %131 = tpu.reciprocal %130 {approx = true} : vector<1x24x1xf32> -> vector<1x24x1xf32>
    %132 = vector.broadcast %131 : vector<1x24x1xf32> to vector<1x24x24xf32>
    %133 = arith.mulf %128, %132 : vector<1x24x24xf32>
    %134 = arith.truncf %133 : vector<1x24x24xf32> to vector<1x24x24xbf16>
    "tpu.trace_start"() <{level = 10 : i32, message = "bqk,bkd->bqd"}> : () -> ()
    %cst_36 = arith.constant dense<0.000000e+00> : vector<1x24x8xf32>
    %135 = tpu.matmul %134, %119, %cst_36 {dimension_numbers = #tpu.dot_dimension_numbers<[2], [1], [1], [2], [0, 0, 0, 1, 1, 2], [0], [0]>} : vector<1x24x24xbf16>, vector<1x24x8xbf16>, vector<1x24x8xf32> -> vector<1x24x8xf32>
    "tpu.trace_stop"() : () -> ()
    %136 = vector.extract_strided_slice %60 {offsets = [0, 24], sizes = [24, 8], strides = [1, 1]} : vector<24x96xf32> to vector<24x8xf32>
    %137 = arith.truncf %136 : vector<24x8xf32> to vector<24x8xbf16>
    %138 = vector.shape_cast %137 : vector<24x8xbf16> to vector<1x24x8xbf16>
    %139 = vector.extract_strided_slice %60 {offsets = [0, 56], sizes = [24, 8], strides = [1, 1]} : vector<24x96xf32> to vector<24x8xf32>
    %140 = arith.truncf %139 : vector<24x8xf32> to vector<24x8xbf16>
    %141 = vector.shape_cast %140 : vector<24x8xbf16> to vector<1x24x8xbf16>
    %142 = vector.extract_strided_slice %60 {offsets = [0, 88], sizes = [24, 8], strides = [1, 1]} : vector<24x96xf32> to vector<24x8xf32>
    %143 = arith.truncf %142 : vector<24x8xf32> to vector<24x8xbf16>
    %144 = vector.shape_cast %143 : vector<24x8xbf16> to vector<1x24x8xbf16>
    "tpu.trace_start"() <{level = 10 : i32, message = "bqd,bkd->bqk"}> : () -> ()
    %cst_37 = arith.constant dense<0.000000e+00> : vector<1x24x24xf32>
    %145 = tpu.matmul %138, %141, %cst_37 {dimension_numbers = #tpu.dot_dimension_numbers<[2], [2], [1], [1], [0, 0, 0, 1, 1, 1], [0], [0]>} : vector<1x24x8xbf16>, vector<1x24x8xbf16>, vector<1x24x24xf32> -> vector<1x24x24xf32>
    "tpu.trace_stop"() : () -> ()
    %146 = vector.shape_cast %30 : vector<1x24xf32> to vector<1x1x24xf32>
    %147 = vector.broadcast %146 : vector<1x1x24xf32> to vector<1x24x24xf32>
    %148 = arith.addf %145, %147 : vector<1x24x24xf32>
    %cst_38 = arith.constant dense<0xFF800000> : vector<1x24xf32>
    %149 = vector.multi_reduction <maximumf>, %148, %cst_38 [2] : vector<1x24x24xf32> to vector<1x24xf32>
    %150 = vector.shape_cast %149 : vector<1x24xf32> to vector<1x24x1xf32>
    %151 = vector.broadcast %150 : vector<1x24x1xf32> to vector<1x24x24xf32>
    %152 = arith.subf %148, %151 : vector<1x24x24xf32>
    %153 = math.exp %152 : vector<1x24x24xf32>
    %cst_39 = arith.constant dense<0.000000e+00> : vector<1x24xf32>
    %154 = vector.multi_reduction <add>, %153, %cst_39 [2] : vector<1x24x24xf32> to vector<1x24xf32>
    %155 = vector.shape_cast %154 : vector<1x24xf32> to vector<1x24x1xf32>
    %156 = tpu.reciprocal %155 {approx = true} : vector<1x24x1xf32> -> vector<1x24x1xf32>
    %157 = vector.broadcast %156 : vector<1x24x1xf32> to vector<1x24x24xf32>
    %158 = arith.mulf %153, %157 : vector<1x24x24xf32>
    %159 = arith.truncf %158 : vector<1x24x24xf32> to vector<1x24x24xbf16>
    "tpu.trace_start"() <{level = 10 : i32, message = "bqk,bkd->bqd"}> : () -> ()
    %cst_40 = arith.constant dense<0.000000e+00> : vector<1x24x8xf32>
    %160 = tpu.matmul %159, %144, %cst_40 {dimension_numbers = #tpu.dot_dimension_numbers<[2], [1], [1], [2], [0, 0, 0, 1, 1, 2], [0], [0]>} : vector<1x24x24xbf16>, vector<1x24x8xbf16>, vector<1x24x8xf32> -> vector<1x24x8xf32>
    "tpu.trace_stop"() : () -> ()
    %161 = tpu.concatenate %85, %110, %135, %160 in 2 : vector<1x24x8xf32>, vector<1x24x8xf32>, vector<1x24x8xf32>, vector<1x24x8xf32> -> vector<1x24x32xf32>
    %162 = vector.shape_cast %161 : vector<1x24x32xf32> to vector<24x32xf32>
    %163 = arith.truncf %162 : vector<24x32xf32> to vector<24x32xbf16>
    %c224 = arith.constant 224 : index
    %c0_41 = arith.constant 0 : index
    %164 = vector.load %arg3[%c224, %c0_41] : memref<704x128xbf16, #tpu.memory_space<vmem>>, vector<32x32xbf16>
    %cst_42 = arith.constant dense<0.000000e+00> : vector<24x32xf32>
    %165 = tpu.matmul %163, %164, %cst_42 {dimension_numbers = #tpu.dot_dimension_numbers<[1], [0], [0], [1], [0, 0, 1, 1], [], []>} : vector<24x32xbf16>, vector<32x32xbf16>, vector<24x32xf32> -> vector<24x32xf32>
    %c5 = arith.constant 5 : index
    %c0_43 = arith.constant 0 : index
    %166 = vector.load %arg4[%c5, %c0_43] : memref<24x128xf32, #tpu.memory_space<vmem>>, vector<1x32xf32>
    %167 = vector.broadcast %166 : vector<1x32xf32> to vector<24x32xf32>
    %168 = arith.addf %165, %167 : vector<24x32xf32>
    %169 = arith.addf %29, %168 : vector<24x32xf32>
    %c6 = arith.constant 6 : index
    %c0_44 = arith.constant 0 : index
    %170 = vector.load %arg4[%c6, %c0_44] : memref<24x128xf32, #tpu.memory_space<vmem>>, vector<1x32xf32>
    %c7 = arith.constant 7 : index
    %c0_45 = arith.constant 0 : index
    %171 = vector.load %arg4[%c7, %c0_45] : memref<24x128xf32, #tpu.memory_space<vmem>>, vector<1x32xf32>
    %cst_46 = arith.constant dense<0.000000e+00> : vector<24xf32>
    %172 = vector.multi_reduction <add>, %169, %cst_46 [1] : vector<24x32xf32> to vector<24xf32>
    %173 = vector.shape_cast %172 : vector<24xf32> to vector<24x1xf32>
    %cst_47 = arith.constant 3.200000e+01 : f32
    %174 = vector.broadcast %cst_47 : f32 to vector<24x1xf32>
    %175 = arith.divf %173, %174 : vector<24x1xf32>
    %176 = vector.broadcast %175 : vector<24x1xf32> to vector<24x32xf32>
    %177 = arith.subf %169, %176 : vector<24x32xf32>
    %178 = arith.mulf %177, %177 : vector<24x32xf32>
    %cst_48 = arith.constant dense<0.000000e+00> : vector<24xf32>
    %179 = vector.multi_reduction <add>, %178, %cst_48 [1] : vector<24x32xf32> to vector<24xf32>
    %180 = vector.shape_cast %179 : vector<24xf32> to vector<24x1xf32>
    %cst_49 = arith.constant 3.200000e+01 : f32
    %181 = vector.broadcast %cst_49 : f32 to vector<24x1xf32>
    %182 = arith.divf %180, %181 : vector<24x1xf32>
    %183 = vector.broadcast %175 : vector<24x1xf32> to vector<24x32xf32>
    %184 = arith.subf %169, %183 : vector<24x32xf32>
    %cst_50 = arith.constant 9.99999974E-6 : f32
    %185 = vector.broadcast %cst_50 : f32 to vector<24x1xf32>
    %186 = arith.addf %182, %185 : vector<24x1xf32>
    %187 = math.rsqrt %186 : vector<24x1xf32>
    %188 = vector.broadcast %187 : vector<24x1xf32> to vector<24x32xf32>
    %189 = arith.mulf %184, %188 : vector<24x32xf32>
    %190 = vector.broadcast %170 : vector<1x32xf32> to vector<24x32xf32>
    %191 = arith.mulf %189, %190 : vector<24x32xf32>
    %192 = vector.broadcast %171 : vector<1x32xf32> to vector<24x32xf32>
    %193 = arith.addf %191, %192 : vector<24x32xf32>
    %194 = arith.truncf %193 : vector<24x32xf32> to vector<24x32xbf16>
    %c256 = arith.constant 256 : index
    %c0_51 = arith.constant 0 : index
    %195 = vector.load %arg3[%c256, %c0_51] : memref<704x128xbf16, #tpu.memory_space<vmem>>, vector<32x128xbf16>
    %cst_52 = arith.constant dense<0.000000e+00> : vector<24x128xf32>
    %196 = tpu.matmul %194, %195, %cst_52 {dimension_numbers = #tpu.dot_dimension_numbers<[1], [0], [0], [1], [0, 0, 1, 1], [], []>} : vector<24x32xbf16>, vector<32x128xbf16>, vector<24x128xf32> -> vector<24x128xf32>
    %c8 = arith.constant 8 : index
    %c0_53 = arith.constant 0 : index
    %197 = vector.load %arg4[%c8, %c0_53] : memref<24x128xf32, #tpu.memory_space<vmem>>, vector<1x128xf32>
    %198 = vector.broadcast %197 : vector<1x128xf32> to vector<24x128xf32>
    %199 = arith.addf %196, %198 : vector<24x128xf32>
    %cst_54 = arith.constant 1.702000e+00 : f32
    %200 = vector.broadcast %cst_54 : f32 to vector<24x128xf32>
    %201 = arith.mulf %200, %199 : vector<24x128xf32>
    %202 = arith.negf %201 : vector<24x128xf32>
    %203 = math.exp %202 : vector<24x128xf32>
    %cst_55 = arith.constant 1.000000e+00 : f32
    %204 = vector.broadcast %cst_55 : f32 to vector<24x128xf32>
    %205 = arith.addf %204, %203 : vector<24x128xf32>
    %206 = arith.divf %204, %205 : vector<24x128xf32>
    %207 = arith.mulf %199, %206 : vector<24x128xf32>
    %208 = arith.truncf %207 : vector<24x128xf32> to vector<24x128xbf16>
    %c288 = arith.constant 288 : index
    %c0_56 = arith.constant 0 : index
    %209 = vector.load %arg3[%c288, %c0_56] : memref<704x128xbf16, #tpu.memory_space<vmem>>, vector<128x32xbf16>
    %cst_57 = arith.constant dense<0.000000e+00> : vector<24x32xf32>
    %210 = tpu.matmul %208, %209, %cst_57 {dimension_numbers = #tpu.dot_dimension_numbers<[1], [0], [0], [1], [0, 0, 1, 1], [], []>} : vector<24x128xbf16>, vector<128x32xbf16>, vector<24x32xf32> -> vector<24x32xf32>
    %c9 = arith.constant 9 : index
    %c0_58 = arith.constant 0 : index
    %211 = vector.load %arg4[%c9, %c0_58] : memref<24x128xf32, #tpu.memory_space<vmem>>, vector<1x32xf32>
    %212 = vector.broadcast %211 : vector<1x32xf32> to vector<24x32xf32>
    %213 = arith.addf %210, %212 : vector<24x32xf32>
    %214 = arith.addf %169, %213 : vector<24x32xf32>
    %c10 = arith.constant 10 : index
    %c0_59 = arith.constant 0 : index
    %215 = vector.load %arg4[%c10, %c0_59] : memref<24x128xf32, #tpu.memory_space<vmem>>, vector<1x32xf32>
    %c11 = arith.constant 11 : index
    %c0_60 = arith.constant 0 : index
    %216 = vector.load %arg4[%c11, %c0_60] : memref<24x128xf32, #tpu.memory_space<vmem>>, vector<1x32xf32>
    %cst_61 = arith.constant dense<0.000000e+00> : vector<24xf32>
    %217 = vector.multi_reduction <add>, %214, %cst_61 [1] : vector<24x32xf32> to vector<24xf32>
    %218 = vector.shape_cast %217 : vector<24xf32> to vector<24x1xf32>
    %cst_62 = arith.constant 3.200000e+01 : f32
    %219 = vector.broadcast %cst_62 : f32 to vector<24x1xf32>
    %220 = arith.divf %218, %219 : vector<24x1xf32>
    %221 = vector.broadcast %220 : vector<24x1xf32> to vector<24x32xf32>
    %222 = arith.subf %214, %221 : vector<24x32xf32>
    %223 = arith.mulf %222, %222 : vector<24x32xf32>
    %cst_63 = arith.constant dense<0.000000e+00> : vector<24xf32>
    %224 = vector.multi_reduction <add>, %223, %cst_63 [1] : vector<24x32xf32> to vector<24xf32>
    %225 = vector.shape_cast %224 : vector<24xf32> to vector<24x1xf32>
    %cst_64 = arith.constant 3.200000e+01 : f32
    %226 = vector.broadcast %cst_64 : f32 to vector<24x1xf32>
    %227 = arith.divf %225, %226 : vector<24x1xf32>
    %228 = vector.broadcast %220 : vector<24x1xf32> to vector<24x32xf32>
    %229 = arith.subf %214, %228 : vector<24x32xf32>
    %cst_65 = arith.constant 9.99999974E-6 : f32
    %230 = vector.broadcast %cst_65 : f32 to vector<24x1xf32>
    %231 = arith.addf %227, %230 : vector<24x1xf32>
    %232 = math.rsqrt %231 : vector<24x1xf32>
    %233 = vector.broadcast %232 : vector<24x1xf32> to vector<24x32xf32>
    %234 = arith.mulf %229, %233 : vector<24x32xf32>
    %235 = vector.broadcast %215 : vector<1x32xf32> to vector<24x32xf32>
    %236 = arith.mulf %234, %235 : vector<24x32xf32>
    %237 = vector.broadcast %216 : vector<1x32xf32> to vector<24x32xf32>
    %238 = arith.addf %236, %237 : vector<24x32xf32>
    %239 = arith.truncf %238 : vector<24x32xf32> to vector<24x32xbf16>
    %c416 = arith.constant 416 : index
    %c0_66 = arith.constant 0 : index
    %240 = vector.load %arg3[%c416, %c0_66] : memref<704x128xbf16, #tpu.memory_space<vmem>>, vector<32x96xbf16>
    %cst_67 = arith.constant dense<0.000000e+00> : vector<24x96xf32>
    %241 = tpu.matmul %239, %240, %cst_67 {dimension_numbers = #tpu.dot_dimension_numbers<[1], [0], [0], [1], [0, 0, 1, 1], [], []>} : vector<24x32xbf16>, vector<32x96xbf16>, vector<24x96xf32> -> vector<24x96xf32>
    %c12 = arith.constant 12 : index
    %c0_68 = arith.constant 0 : index
    %242 = vector.load %arg4[%c12, %c0_68] : memref<24x128xf32, #tpu.memory_space<vmem>>, vector<1x96xf32>
    %243 = vector.broadcast %242 : vector<1x96xf32> to vector<24x96xf32>
    %244 = arith.addf %241, %243 : vector<24x96xf32>
    %245 = vector.extract_strided_slice %244 {offsets = [0, 0], sizes = [24, 8], strides = [1, 1]} : vector<24x96xf32> to vector<24x8xf32>
    %246 = arith.truncf %245 : vector<24x8xf32> to vector<24x8xbf16>
    %247 = vector.shape_cast %246 : vector<24x8xbf16> to vector<1x24x8xbf16>
    %248 = vector.extract_strided_slice %244 {offsets = [0, 32], sizes = [24, 8], strides = [1, 1]} : vector<24x96xf32> to vector<24x8xf32>
    %249 = arith.truncf %248 : vector<24x8xf32> to vector<24x8xbf16>
    %250 = vector.shape_cast %249 : vector<24x8xbf16> to vector<1x24x8xbf16>
    %251 = vector.extract_strided_slice %244 {offsets = [0, 64], sizes = [24, 8], strides = [1, 1]} : vector<24x96xf32> to vector<24x8xf32>
    %252 = arith.truncf %251 : vector<24x8xf32> to vector<24x8xbf16>
    %253 = vector.shape_cast %252 : vector<24x8xbf16> to vector<1x24x8xbf16>
    "tpu.trace_start"() <{level = 10 : i32, message = "bqd,bkd->bqk"}> : () -> ()
    %cst_69 = arith.constant dense<0.000000e+00> : vector<1x24x24xf32>
    %254 = tpu.matmul %247, %250, %cst_69 {dimension_numbers = #tpu.dot_dimension_numbers<[2], [2], [1], [1], [0, 0, 0, 1, 1, 1], [0], [0]>} : vector<1x24x8xbf16>, vector<1x24x8xbf16>, vector<1x24x24xf32> -> vector<1x24x24xf32>
    "tpu.trace_stop"() : () -> ()
    %255 = vector.shape_cast %30 : vector<1x24xf32> to vector<1x1x24xf32>
    %256 = vector.broadcast %255 : vector<1x1x24xf32> to vector<1x24x24xf32>
    %257 = arith.addf %254, %256 : vector<1x24x24xf32>
    %cst_70 = arith.constant dense<0xFF800000> : vector<1x24xf32>
    %258 = vector.multi_reduction <maximumf>, %257, %cst_70 [2] : vector<1x24x24xf32> to vector<1x24xf32>
    %259 = vector.shape_cast %258 : vector<1x24xf32> to vector<1x24x1xf32>
    %260 = vector.broadcast %259 : vector<1x24x1xf32> to vector<1x24x24xf32>
    %261 = arith.subf %257, %260 : vector<1x24x24xf32>
    %262 = math.exp %261 : vector<1x24x24xf32>
    %cst_71 = arith.constant dense<0.000000e+00> : vector<1x24xf32>
    %263 = vector.multi_reduction <add>, %262, %cst_71 [2] : vector<1x24x24xf32> to vector<1x24xf32>
    %264 = vector.shape_cast %263 : vector<1x24xf32> to vector<1x24x1xf32>
    %265 = tpu.reciprocal %264 {approx = true} : vector<1x24x1xf32> -> vector<1x24x1xf32>
    %266 = vector.broadcast %265 : vector<1x24x1xf32> to vector<1x24x24xf32>
    %267 = arith.mulf %262, %266 : vector<1x24x24xf32>
    %268 = arith.truncf %267 : vector<1x24x24xf32> to vector<1x24x24xbf16>
    "tpu.trace_start"() <{level = 10 : i32, message = "bqk,bkd->bqd"}> : () -> ()
    %cst_72 = arith.constant dense<0.000000e+00> : vector<1x24x8xf32>
    %269 = tpu.matmul %268, %253, %cst_72 {dimension_numbers = #tpu.dot_dimension_numbers<[2], [1], [1], [2], [0, 0, 0, 1, 1, 2], [0], [0]>} : vector<1x24x24xbf16>, vector<1x24x8xbf16>, vector<1x24x8xf32> -> vector<1x24x8xf32>
    "tpu.trace_stop"() : () -> ()
    %270 = vector.extract_strided_slice %244 {offsets = [0, 8], sizes = [24, 8], strides = [1, 1]} : vector<24x96xf32> to vector<24x8xf32>
    %271 = arith.truncf %270 : vector<24x8xf32> to vector<24x8xbf16>
    %272 = vector.shape_cast %271 : vector<24x8xbf16> to vector<1x24x8xbf16>
    %273 = vector.extract_strided_slice %244 {offsets = [0, 40], sizes = [24, 8], strides = [1, 1]} : vector<24x96xf32> to vector<24x8xf32>
    %274 = arith.truncf %273 : vector<24x8xf32> to vector<24x8xbf16>
    %275 = vector.shape_cast %274 : vector<24x8xbf16> to vector<1x24x8xbf16>
    %276 = vector.extract_strided_slice %244 {offsets = [0, 72], sizes = [24, 8], strides = [1, 1]} : vector<24x96xf32> to vector<24x8xf32>
    %277 = arith.truncf %276 : vector<24x8xf32> to vector<24x8xbf16>
    %278 = vector.shape_cast %277 : vector<24x8xbf16> to vector<1x24x8xbf16>
    "tpu.trace_start"() <{level = 10 : i32, message = "bqd,bkd->bqk"}> : () -> ()
    %cst_73 = arith.constant dense<0.000000e+00> : vector<1x24x24xf32>
    %279 = tpu.matmul %272, %275, %cst_73 {dimension_numbers = #tpu.dot_dimension_numbers<[2], [2], [1], [1], [0, 0, 0, 1, 1, 1], [0], [0]>} : vector<1x24x8xbf16>, vector<1x24x8xbf16>, vector<1x24x24xf32> -> vector<1x24x24xf32>
    "tpu.trace_stop"() : () -> ()
    %280 = vector.shape_cast %30 : vector<1x24xf32> to vector<1x1x24xf32>
    %281 = vector.broadcast %280 : vector<1x1x24xf32> to vector<1x24x24xf32>
    %282 = arith.addf %279, %281 : vector<1x24x24xf32>
    %cst_74 = arith.constant dense<0xFF800000> : vector<1x24xf32>
    %283 = vector.multi_reduction <maximumf>, %282, %cst_74 [2] : vector<1x24x24xf32> to vector<1x24xf32>
    %284 = vector.shape_cast %283 : vector<1x24xf32> to vector<1x24x1xf32>
    %285 = vector.broadcast %284 : vector<1x24x1xf32> to vector<1x24x24xf32>
    %286 = arith.subf %282, %285 : vector<1x24x24xf32>
    %287 = math.exp %286 : vector<1x24x24xf32>
    %cst_75 = arith.constant dense<0.000000e+00> : vector<1x24xf32>
    %288 = vector.multi_reduction <add>, %287, %cst_75 [2] : vector<1x24x24xf32> to vector<1x24xf32>
    %289 = vector.shape_cast %288 : vector<1x24xf32> to vector<1x24x1xf32>
    %290 = tpu.reciprocal %289 {approx = true} : vector<1x24x1xf32> -> vector<1x24x1xf32>
    %291 = vector.broadcast %290 : vector<1x24x1xf32> to vector<1x24x24xf32>
    %292 = arith.mulf %287, %291 : vector<1x24x24xf32>
    %293 = arith.truncf %292 : vector<1x24x24xf32> to vector<1x24x24xbf16>
    "tpu.trace_start"() <{level = 10 : i32, message = "bqk,bkd->bqd"}> : () -> ()
    %cst_76 = arith.constant dense<0.000000e+00> : vector<1x24x8xf32>
    %294 = tpu.matmul %293, %278, %cst_76 {dimension_numbers = #tpu.dot_dimension_numbers<[2], [1], [1], [2], [0, 0, 0, 1, 1, 2], [0], [0]>} : vector<1x24x24xbf16>, vector<1x24x8xbf16>, vector<1x24x8xf32> -> vector<1x24x8xf32>
    "tpu.trace_stop"() : () -> ()
    %295 = vector.extract_strided_slice %244 {offsets = [0, 16], sizes = [24, 8], strides = [1, 1]} : vector<24x96xf32> to vector<24x8xf32>
    %296 = arith.truncf %295 : vector<24x8xf32> to vector<24x8xbf16>
    %297 = vector.shape_cast %296 : vector<24x8xbf16> to vector<1x24x8xbf16>
    %298 = vector.extract_strided_slice %244 {offsets = [0, 48], sizes = [24, 8], strides = [1, 1]} : vector<24x96xf32> to vector<24x8xf32>
    %299 = arith.truncf %298 : vector<24x8xf32> to vector<24x8xbf16>
    %300 = vector.shape_cast %299 : vector<24x8xbf16> to vector<1x24x8xbf16>
    %301 = vector.extract_strided_slice %244 {offsets = [0, 80], sizes = [24, 8], strides = [1, 1]} : vector<24x96xf32> to vector<24x8xf32>
    %302 = arith.truncf %301 : vector<24x8xf32> to vector<24x8xbf16>
    %303 = vector.shape_cast %302 : vector<24x8xbf16> to vector<1x24x8xbf16>
    "tpu.trace_start"() <{level = 10 : i32, message = "bqd,bkd->bqk"}> : () -> ()
    %cst_77 = arith.constant dense<0.000000e+00> : vector<1x24x24xf32>
    %304 = tpu.matmul %297, %300, %cst_77 {dimension_numbers = #tpu.dot_dimension_numbers<[2], [2], [1], [1], [0, 0, 0, 1, 1, 1], [0], [0]>} : vector<1x24x8xbf16>, vector<1x24x8xbf16>, vector<1x24x24xf32> -> vector<1x24x24xf32>
    "tpu.trace_stop"() : () -> ()
    %305 = vector.shape_cast %30 : vector<1x24xf32> to vector<1x1x24xf32>
    %306 = vector.broadcast %305 : vector<1x1x24xf32> to vector<1x24x24xf32>
    %307 = arith.addf %304, %306 : vector<1x24x24xf32>
    %cst_78 = arith.constant dense<0xFF800000> : vector<1x24xf32>
    %308 = vector.multi_reduction <maximumf>, %307, %cst_78 [2] : vector<1x24x24xf32> to vector<1x24xf32>
    %309 = vector.shape_cast %308 : vector<1x24xf32> to vector<1x24x1xf32>
    %310 = vector.broadcast %309 : vector<1x24x1xf32> to vector<1x24x24xf32>
    %311 = arith.subf %307, %310 : vector<1x24x24xf32>
    %312 = math.exp %311 : vector<1x24x24xf32>
    %cst_79 = arith.constant dense<0.000000e+00> : vector<1x24xf32>
    %313 = vector.multi_reduction <add>, %312, %cst_79 [2] : vector<1x24x24xf32> to vector<1x24xf32>
    %314 = vector.shape_cast %313 : vector<1x24xf32> to vector<1x24x1xf32>
    %315 = tpu.reciprocal %314 {approx = true} : vector<1x24x1xf32> -> vector<1x24x1xf32>
    %316 = vector.broadcast %315 : vector<1x24x1xf32> to vector<1x24x24xf32>
    %317 = arith.mulf %312, %316 : vector<1x24x24xf32>
    %318 = arith.truncf %317 : vector<1x24x24xf32> to vector<1x24x24xbf16>
    "tpu.trace_start"() <{level = 10 : i32, message = "bqk,bkd->bqd"}> : () -> ()
    %cst_80 = arith.constant dense<0.000000e+00> : vector<1x24x8xf32>
    %319 = tpu.matmul %318, %303, %cst_80 {dimension_numbers = #tpu.dot_dimension_numbers<[2], [1], [1], [2], [0, 0, 0, 1, 1, 2], [0], [0]>} : vector<1x24x24xbf16>, vector<1x24x8xbf16>, vector<1x24x8xf32> -> vector<1x24x8xf32>
    "tpu.trace_stop"() : () -> ()
    %320 = vector.extract_strided_slice %244 {offsets = [0, 24], sizes = [24, 8], strides = [1, 1]} : vector<24x96xf32> to vector<24x8xf32>
    %321 = arith.truncf %320 : vector<24x8xf32> to vector<24x8xbf16>
    %322 = vector.shape_cast %321 : vector<24x8xbf16> to vector<1x24x8xbf16>
    %323 = vector.extract_strided_slice %244 {offsets = [0, 56], sizes = [24, 8], strides = [1, 1]} : vector<24x96xf32> to vector<24x8xf32>
    %324 = arith.truncf %323 : vector<24x8xf32> to vector<24x8xbf16>
    %325 = vector.shape_cast %324 : vector<24x8xbf16> to vector<1x24x8xbf16>
    %326 = vector.extract_strided_slice %244 {offsets = [0, 88], sizes = [24, 8], strides = [1, 1]} : vector<24x96xf32> to vector<24x8xf32>
    %327 = arith.truncf %326 : vector<24x8xf32> to vector<24x8xbf16>
    %328 = vector.shape_cast %327 : vector<24x8xbf16> to vector<1x24x8xbf16>
    "tpu.trace_start"() <{level = 10 : i32, message = "bqd,bkd->bqk"}> : () -> ()
    %cst_81 = arith.constant dense<0.000000e+00> : vector<1x24x24xf32>
    %329 = tpu.matmul %322, %325, %cst_81 {dimension_numbers = #tpu.dot_dimension_numbers<[2], [2], [1], [1], [0, 0, 0, 1, 1, 1], [0], [0]>} : vector<1x24x8xbf16>, vector<1x24x8xbf16>, vector<1x24x24xf32> -> vector<1x24x24xf32>
    "tpu.trace_stop"() : () -> ()
    %330 = vector.shape_cast %30 : vector<1x24xf32> to vector<1x1x24xf32>
    %331 = vector.broadcast %330 : vector<1x1x24xf32> to vector<1x24x24xf32>
    %332 = arith.addf %329, %331 : vector<1x24x24xf32>
    %cst_82 = arith.constant dense<0xFF800000> : vector<1x24xf32>
    %333 = vector.multi_reduction <maximumf>, %332, %cst_82 [2] : vector<1x24x24xf32> to vector<1x24xf32>
    %334 = vector.shape_cast %333 : vector<1x24xf32> to vector<1x24x1xf32>
    %335 = vector.broadcast %334 : vector<1x24x1xf32> to vector<1x24x24xf32>
    %336 = arith.subf %332, %335 : vector<1x24x24xf32>
    %337 = math.exp %336 : vector<1x24x24xf32>
    %cst_83 = arith.constant dense<0.000000e+00> : vector<1x24xf32>
    %338 = vector.multi_reduction <add>, %337, %cst_83 [2] : vector<1x24x24xf32> to vector<1x24xf32>
    %339 = vector.shape_cast %338 : vector<1x24xf32> to vector<1x24x1xf32>
    %340 = tpu.reciprocal %339 {approx = true} : vector<1x24x1xf32> -> vector<1x24x1xf32>
    %341 = vector.broadcast %340 : vector<1x24x1xf32> to vector<1x24x24xf32>
    %342 = arith.mulf %337, %341 : vector<1x24x24xf32>
    %343 = arith.truncf %342 : vector<1x24x24xf32> to vector<1x24x24xbf16>
    "tpu.trace_start"() <{level = 10 : i32, message = "bqk,bkd->bqd"}> : () -> ()
    %cst_84 = arith.constant dense<0.000000e+00> : vector<1x24x8xf32>
    %344 = tpu.matmul %343, %328, %cst_84 {dimension_numbers = #tpu.dot_dimension_numbers<[2], [1], [1], [2], [0, 0, 0, 1, 1, 2], [0], [0]>} : vector<1x24x24xbf16>, vector<1x24x8xbf16>, vector<1x24x8xf32> -> vector<1x24x8xf32>
    "tpu.trace_stop"() : () -> ()
    %345 = tpu.concatenate %269, %294, %319, %344 in 2 : vector<1x24x8xf32>, vector<1x24x8xf32>, vector<1x24x8xf32>, vector<1x24x8xf32> -> vector<1x24x32xf32>
    %346 = vector.shape_cast %345 : vector<1x24x32xf32> to vector<24x32xf32>
    %347 = arith.truncf %346 : vector<24x32xf32> to vector<24x32xbf16>
    %c448 = arith.constant 448 : index
    %c0_85 = arith.constant 0 : index
    %348 = vector.load %arg3[%c448, %c0_85] : memref<704x128xbf16, #tpu.memory_space<vmem>>, vector<32x32xbf16>
    %cst_86 = arith.constant dense<0.000000e+00> : vector<24x32xf32>
    %349 = tpu.matmul %347, %348, %cst_86 {dimension_numbers = #tpu.dot_dimension_numbers<[1], [0], [0], [1], [0, 0, 1, 1], [], []>} : vector<24x32xbf16>, vector<32x32xbf16>, vector<24x32xf32> -> vector<24x32xf32>
    %c13 = arith.constant 13 : index
    %c0_87 = arith.constant 0 : index
    %350 = vector.load %arg4[%c13, %c0_87] : memref<24x128xf32, #tpu.memory_space<vmem>>, vector<1x32xf32>
    %351 = vector.broadcast %350 : vector<1x32xf32> to vector<24x32xf32>
    %352 = arith.addf %349, %351 : vector<24x32xf32>
    %353 = arith.addf %214, %352 : vector<24x32xf32>
    %c14 = arith.constant 14 : index
    %c0_88 = arith.constant 0 : index
    %354 = vector.load %arg4[%c14, %c0_88] : memref<24x128xf32, #tpu.memory_space<vmem>>, vector<1x32xf32>
    %c15 = arith.constant 15 : index
    %c0_89 = arith.constant 0 : index
    %355 = vector.load %arg4[%c15, %c0_89] : memref<24x128xf32, #tpu.memory_space<vmem>>, vector<1x32xf32>
    %cst_90 = arith.constant dense<0.000000e+00> : vector<24xf32>
    %356 = vector.multi_reduction <add>, %353, %cst_90 [1] : vector<24x32xf32> to vector<24xf32>
    %357 = vector.shape_cast %356 : vector<24xf32> to vector<24x1xf32>
    %cst_91 = arith.constant 3.200000e+01 : f32
    %358 = vector.broadcast %cst_91 : f32 to vector<24x1xf32>
    %359 = arith.divf %357, %358 : vector<24x1xf32>
    %360 = vector.broadcast %359 : vector<24x1xf32> to vector<24x32xf32>
    %361 = arith.subf %353, %360 : vector<24x32xf32>
    %362 = arith.mulf %361, %361 : vector<24x32xf32>
    %cst_92 = arith.constant dense<0.000000e+00> : vector<24xf32>
    %363 = vector.multi_reduction <add>, %362, %cst_92 [1] : vector<24x32xf32> to vector<24xf32>
    %364 = vector.shape_cast %363 : vector<24xf32> to vector<24x1xf32>
    %cst_93 = arith.constant 3.200000e+01 : f32
    %365 = vector.broadcast %cst_93 : f32 to vector<24x1xf32>
    %366 = arith.divf %364, %365 : vector<24x1xf32>
    %367 = vector.broadcast %359 : vector<24x1xf32> to vector<24x32xf32>
    %368 = arith.subf %353, %367 : vector<24x32xf32>
    %cst_94 = arith.constant 9.99999974E-6 : f32
    %369 = vector.broadcast %cst_94 : f32 to vector<24x1xf32>
    %370 = arith.addf %366, %369 : vector<24x1xf32>
    %371 = math.rsqrt %370 : vector<24x1xf32>
    %372 = vector.broadcast %371 : vector<24x1xf32> to vector<24x32xf32>
    %373 = arith.mulf %368, %372 : vector<24x32xf32>
    %374 = vector.broadcast %354 : vector<1x32xf32> to vector<24x32xf32>
    %375 = arith.mulf %373, %374 : vector<24x32xf32>
    %376 = vector.broadcast %355 : vector<1x32xf32> to vector<24x32xf32>
    %377 = arith.addf %375, %376 : vector<24x32xf32>
    %378 = arith.truncf %377 : vector<24x32xf32> to vector<24x32xbf16>
    %c480 = arith.constant 480 : index
    %c0_95 = arith.constant 0 : index
    %379 = vector.load %arg3[%c480, %c0_95] : memref<704x128xbf16, #tpu.memory_space<vmem>>, vector<32x128xbf16>
    %cst_96 = arith.constant dense<0.000000e+00> : vector<24x128xf32>
    %380 = tpu.matmul %378, %379, %cst_96 {dimension_numbers = #tpu.dot_dimension_numbers<[1], [0], [0], [1], [0, 0, 1, 1], [], []>} : vector<24x32xbf16>, vector<32x128xbf16>, vector<24x128xf32> -> vector<24x128xf32>
    %c16 = arith.constant 16 : index
    %c0_97 = arith.constant 0 : index
    %381 = vector.load %arg4[%c16, %c0_97] : memref<24x128xf32, #tpu.memory_space<vmem>>, vector<1x128xf32>
    %382 = vector.broadcast %381 : vector<1x128xf32> to vector<24x128xf32>
    %383 = arith.addf %380, %382 : vector<24x128xf32>
    %cst_98 = arith.constant 1.702000e+00 : f32
    %384 = vector.broadcast %cst_98 : f32 to vector<24x128xf32>
    %385 = arith.mulf %384, %383 : vector<24x128xf32>
    %386 = arith.negf %385 : vector<24x128xf32>
    %387 = math.exp %386 : vector<24x128xf32>
    %cst_99 = arith.constant 1.000000e+00 : f32
    %388 = vector.broadcast %cst_99 : f32 to vector<24x128xf32>
    %389 = arith.addf %388, %387 : vector<24x128xf32>
    %390 = arith.divf %388, %389 : vector<24x128xf32>
    %391 = arith.mulf %383, %390 : vector<24x128xf32>
    %392 = arith.truncf %391 : vector<24x128xf32> to vector<24x128xbf16>
    %c512 = arith.constant 512 : index
    %c0_100 = arith.constant 0 : index
    %393 = vector.load %arg3[%c512, %c0_100] : memref<704x128xbf16, #tpu.memory_space<vmem>>, vector<128x32xbf16>
    %cst_101 = arith.constant dense<0.000000e+00> : vector<24x32xf32>
    %394 = tpu.matmul %392, %393, %cst_101 {dimension_numbers = #tpu.dot_dimension_numbers<[1], [0], [0], [1], [0, 0, 1, 1], [], []>} : vector<24x128xbf16>, vector<128x32xbf16>, vector<24x32xf32> -> vector<24x32xf32>
    %c17 = arith.constant 17 : index
    %c0_102 = arith.constant 0 : index
    %395 = vector.load %arg4[%c17, %c0_102] : memref<24x128xf32, #tpu.memory_space<vmem>>, vector<1x32xf32>
    %396 = vector.broadcast %395 : vector<1x32xf32> to vector<24x32xf32>
    %397 = arith.addf %394, %396 : vector<24x32xf32>
    %398 = arith.addf %353, %397 : vector<24x32xf32>
    %399 = vector.shape_cast %398 : vector<24x32xf32> to vector<1x24x32xf32>
    %400 = vector.extract_strided_slice %399 {offsets = [0, 0, 0], sizes = [1, 1, 32], strides = [1, 1, 1]} : vector<1x24x32xf32> to vector<1x1x32xf32>
    %401 = vector.shape_cast %400 : vector<1x1x32xf32> to vector<1x32xf32>
    %c18 = arith.constant 18 : index
    %c0_103 = arith.constant 0 : index
    %402 = vector.load %arg4[%c18, %c0_103] : memref<24x128xf32, #tpu.memory_space<vmem>>, vector<1x32xf32>
    %c19 = arith.constant 19 : index
    %c0_104 = arith.constant 0 : index
    %403 = vector.load %arg4[%c19, %c0_104] : memref<24x128xf32, #tpu.memory_space<vmem>>, vector<1x32xf32>
    %cst_105 = arith.constant dense<0.000000e+00> : vector<1xf32>
    %404 = vector.multi_reduction <add>, %401, %cst_105 [1] : vector<1x32xf32> to vector<1xf32>
    %405 = vector.shape_cast %404 : vector<1xf32> to vector<1x1xf32>
    %cst_106 = arith.constant 3.200000e+01 : f32
    %406 = vector.broadcast %cst_106 : f32 to vector<1x1xf32>
    %407 = arith.divf %405, %406 : vector<1x1xf32>
    %408 = vector.broadcast %407 : vector<1x1xf32> to vector<1x32xf32>
    %409 = arith.subf %401, %408 : vector<1x32xf32>
    %410 = arith.mulf %409, %409 : vector<1x32xf32>
    %cst_107 = arith.constant dense<0.000000e+00> : vector<1xf32>
    %411 = vector.multi_reduction <add>, %410, %cst_107 [1] : vector<1x32xf32> to vector<1xf32>
    %412 = vector.shape_cast %411 : vector<1xf32> to vector<1x1xf32>
    %cst_108 = arith.constant 3.200000e+01 : f32
    %413 = vector.broadcast %cst_108 : f32 to vector<1x1xf32>
    %414 = arith.divf %412, %413 : vector<1x1xf32>
    %415 = vector.broadcast %407 : vector<1x1xf32> to vector<1x32xf32>
    %416 = arith.subf %401, %415 : vector<1x32xf32>
    %cst_109 = arith.constant 9.99999974E-6 : f32
    %417 = vector.broadcast %cst_109 : f32 to vector<1x1xf32>
    %418 = arith.addf %414, %417 : vector<1x1xf32>
    %419 = math.rsqrt %418 : vector<1x1xf32>
    %420 = vector.broadcast %419 : vector<1x1xf32> to vector<1x32xf32>
    %421 = arith.mulf %416, %420 : vector<1x32xf32>
    %422 = arith.mulf %421, %402 : vector<1x32xf32>
    %423 = arith.addf %422, %403 : vector<1x32xf32>
    %424 = arith.truncf %423 : vector<1x32xf32> to vector<1x32xbf16>
    %c640 = arith.constant 640 : index
    %c0_110 = arith.constant 0 : index
    %425 = vector.load %arg3[%c640, %c0_110] : memref<704x128xbf16, #tpu.memory_space<vmem>>, vector<32x32xbf16>
    %cst_111 = arith.constant dense<0.000000e+00> : vector<1x32xf32>
    %426 = tpu.matmul %424, %425, %cst_111 {dimension_numbers = #tpu.dot_dimension_numbers<[1], [0], [0], [1], [0, 0, 1, 1], [], []>} : vector<1x32xbf16>, vector<32x32xbf16>, vector<1x32xf32> -> vector<1x32xf32>
    %427 = arith.truncf %426 : vector<1x32xf32> to vector<1x32xbf16>
    %c672 = arith.constant 672 : index
    %c0_112 = arith.constant 0 : index
    %428 = vector.load %arg3[%c672, %c0_112] : memref<704x128xbf16, #tpu.memory_space<vmem>>, vector<32x16xbf16>
    %cst_113 = arith.constant dense<0.000000e+00> : vector<1x16xf32>
    %429 = tpu.matmul %427, %428, %cst_113 {dimension_numbers = #tpu.dot_dimension_numbers<[1], [0], [0], [1], [0, 0, 1, 1], [], []>} : vector<1x32xbf16>, vector<32x16xbf16>, vector<1x16xf32> -> vector<1x16xf32>
    %c20 = arith.constant 20 : index
    %c0_114 = arith.constant 0 : index
    %430 = vector.load %arg4[%c20, %c0_114] : memref<24x128xf32, #tpu.memory_space<vmem>>, vector<1x16xf32>
    %431 = arith.addf %429, %430 : vector<1x16xf32>
    %cst_115 = arith.constant 0.000000e+00 : f32
    %432 = vector.broadcast %cst_115 : f32 to vector<1x16xf32>
    %433 = arith.maximumf %431, %432 : vector<1x16xf32>
    %c21 = arith.constant 21 : index
    %c0_116 = arith.constant 0 : index
    %434 = vector.load %arg4[%c21, %c0_116] : memref<24x128xf32, #tpu.memory_space<vmem>>, vector<1x16xf32>
    %435 = arith.mulf %433, %434 : vector<1x16xf32>
    %cst_117 = arith.constant dense<0.000000e+00> : vector<1xf32>
    %436 = vector.multi_reduction <add>, %435, %cst_117 [1] : vector<1x16xf32> to vector<1xf32>
    %437 = vector.shape_cast %436 : vector<1xf32> to vector<1x1xf32>
    %c22 = arith.constant 22 : index
    %c0_118 = arith.constant 0 : index
    %438 = vector.load %arg4[%c22, %c0_118] : memref<24x128xf32, #tpu.memory_space<vmem>>, vector<1x1xf32>
    %439 = arith.addf %437, %438 : vector<1x1xf32>
    %c0_119 = arith.constant 0 : index
    %c0_120 = arith.constant 0 : index
    %c0_121 = arith.constant 0 : index
    %440 = vector.load %arg5[%c0_119, %c0_120, %c0_121] : memref<1x1x1xf32, #tpu.memory_space<vmem>>, vector<1x1x1xf32>
    %441 = vector.shape_cast %440 : vector<1x1x1xf32> to vector<1x1xf32>
    %442 = vector.shape_cast %439 : vector<1x1xf32> to vector<1x1x1xf32>
    tpu.vector_store %arg5[%c0_119, %c0_120, %c0_121], %442 {strides = array<i32>} : memref<1x1x1xf32, #tpu.memory_space<vmem>>, vector<1x1x1xf32>,
    return
  }
  func.func @transform_0(%arg0: i32) -> (i32, i32, i32) {
    %c0_i32 = arith.constant 0 : i32
    %c0_i32_0 = arith.constant 0 : i32
    %c0_i32_1 = arith.constant 0 : i32
    return %arg0, %c0_i32, %c0_i32_0 : i32, i32, i32
  }
  func.func @transform_1(%arg0: i32) -> (i32, i32) {
    %c0_i32 = arith.constant 0 : i32
    %c0_i32_0 = arith.constant 0 : i32
    %c0_i32_1 = arith.constant 0 : i32
    return %c0_i32, %c0_i32_0 : i32, i32
  }
  func.func @transform_2(%arg0: i32) -> (i32, i32) {
    %c0_i32 = arith.constant 0 : i32
    %c0_i32_0 = arith.constant 0 : i32
    %c0_i32_1 = arith.constant 0 : i32
    return %c0_i32, %c0_i32_0 : i32, i32
  }
  func.func @transform_3(%arg0: i32) -> (i32, i32) {
    %c0_i32 = arith.constant 0 : i32
    %c0_i32_0 = arith.constant 0 : i32
    %c0_i32_1 = arith.constant 0 : i32
    return %c0_i32, %c0_i32_0 : i32, i32
  }
  func.func @transform_4(%arg0: i32) -> (i32, i32, i32) {
    %c0_i32 = arith.constant 0 : i32
    %c0_i32_0 = arith.constant 0 : i32
    %c0_i32_1 = arith.constant 0 : i32
    return %arg0, %c0_i32, %c0_i32_0 : i32, i32, i32
  }
}

</mosaic_0001>

<bundles_post_ra>
// kernel: clip_adapter_forward.1
= control target key start
LH: loop header
LB: loop body
LE: loop exit
PB: predicated region body
PF: predicated region fallthrough
CT: control target
= control target key end

     0   :  { %s3823_s15 = smov 0   ;;  %s4510_s0 = inlined_call_operand.vmem [shape: bf16[2,24,192], index: 0, kind: input, shape index: {}]   ;;  %s4511_s1 = inlined_call_operand.vmem [shape: f32[24,32], index: 1, kind: input, shape index: {}]   ;;  %s4512_s2 = inlined_call_operand.vmem [shape: bf16[704,128], index: 2, kind: input, shape index: {}]   ;;  %s4513_s3 = inlined_call_operand.vmem [shape: f32[24,128], index: 3, kind: input, shape index: {}]   ;;  %s4514_s4 = inlined_call_operand.vmem [shape: f32[2,1,1], index: 4, kind: output, shape index: {}]  }
   0x1 LB: > { %s3016_s16 = sadd.s32 4294967295, %s3779_s15   ;;  %p3020_p0 = scmp.ge.s32.totalorder %s3779_s15, 1  ;;  %s3779_s15 = sphi %s3823_s15, %s14_s15  }
   0x2   : > { %p162_p1 = scmp.lt.s32.totalorder %s3779_s15, 3 }
   0x4   : > { %p163_p2 = pnand %p3020_p0, %p162_p1 }
   0x5   : > { %p186_p3 = scmp.lt.s32.totalorder (!%p163_p2), %s3016_s16, 1  ;;  %s3782_s17 = smov (!%p163_p2), 96  }
   0x6   : > { %166 = sbr.rel (%p163_p2) target bundleno = 8000 (0x1f40), region = 36  ;;  %s3783_s20 = smov (!%p163_p2), 64  }
   0x7   : > { %s3784_s21 = smov (!%p163_p2), 88   ;;  %s3785_s22 = smov (!%p163_p2), 120  }
   0x8   : > { %s3787_s24 = smov (!%p163_p2), 112   ;;  %s3788_s25 = smov (!%p163_p2), 104  }
   0x9   : > { %s3789_s26 = smov (!%p163_p2), 72   ;;  %s3790_s27 = smov (!%p163_p2), 56  }
   0xa   : > { %s3792_s29 = smov (!%p163_p2), 48   ;;  %s3793_s30 = smov (!%p163_p2), 8  }
   0xb   : > { %v3571_v0 = vld [vmem:[%s4512_s2 + $0x38] sm:$0xff]   ;;  %v3781_v1 = vmov 0   ;;  %v3572_v2 = vld [vmem:[%s4512_s2 + $0x30] sm:$0xff]   ;;  %s4516_s16 = smov (!%p186_p3, %s3016_s16), 1  ;;  %v3573_v3 = vld [vmem:[%s4512_s2 + $0x28] sm:$0xff]   ;;  %vm312_vm0 = vcmask 523264  }
   0xc   : > { %319 = vmatprep.subr.bf16.mxu0 %v3781_v1  ;;  %s3515_s23 = smul.u32 24, %s4516_s16  ;;  %v3574_v4 = vld [vmem:[%s4512_s2 + $0x20] sm:$0xff]   ;;  %v3575_v5 = vld [vmem:[%s4512_s2 + $0x18] sm:$0xff]   ;;  %v3576_v7 = vld [vmem:[%s4512_s2 + $0x10] sm:$0xff]   ;;  %vm369_vm1 = vcmask 261120   ;;  %vm569_vm2 = vcmask 64512  }
   0xd   : > { %320 = vmatpush1.bf16.msra.mxu0 %v3571_v0  ;;  %v3577_v8 = vld [vmem:[%s4512_s2 + $0x8] sm:$0xff]   ;;  %v3578_v9 = vld [vmem:[%s4512_s2] sm:$0xff]   ;;  %v3579_v10 = vld [vmem:[%s4512_s2 + $0x58] sm:$0xff]   ;;  %vm630_vm3 = vcmask 195584   ;;  %vm677_vm4 = vcmask 1043456   ;;  %s3794_s7 = smov 16  }
   0xe   : > { %321 = vmatprep.subr.bf16.mxu0 %v3781_v1  ;;  %s190_s28 = scalar_lea.vmem %s4510_s0, %s3515_s23  ;;  %v3580_v11 = vld [vmem:[%s4512_s2 + $0x50] sm:$0xff]   ;;  %v3581_v12 = vld [vmem:[%s4512_s2 + $0x48] sm:$0xff]   ;;  %v3582_v13 = vld [vmem:[%s4512_s2 + $0x40] sm:$0xff]   ;;  %s3786_s23 = smov 80   ;;  %vm1263_vm5 = vcmask 130048   ;;  %vm2821_vm6 = vcmask 253952  }
   0xf   : > { %v3585_v6 = vld [vmem:[%s190_s28 + $0x4] ss:$8 sps:$4 sm:$0xff]   ;;  %v197_v14 = vld [vmem:[%s190_s28 + $0x10] sm:$0xff]  ;;  %v3583_v15 = vld [vmem:[%s190_s28] ss:$8 sps:$4 sm:$0xff]   ;;  %s3791_s28 = smov 40  }
  0x10   : > { %3038 = vmatprep.mubr.msk.bf16.mxu0 %vm312_vm0, %v3585_v6  ;;  %v3025_v16 = vcombine.high %v197_v14, %v197_v14  ;;  %v3024_v17 = vcombine.low %v197_v14, %v197_v14  ;;  %v222_v18 = vld [vmem:[%s4511_s1] sm:$0xff]  ;;  %v223_v22 = vld [vmem:[%s4511_s1 + $0x8] sm:$0xff]  ;;  %v224_v27 = vld [vmem:[%s4511_s1 + $0x10] sm:$0xff]  ;;  %s3795_s10 = smov 24   ;;  %vm3797_vm7 = vmmov 0   ;;  %vm2961_vm8 = vcmask 122880  }
  0x11   : > { %322 = vmatpush1.bf16.msra.mxu0 %v3572_v2  ;;  %v3040_v60 = vld [vmem:[%s4513_s3] ss:$0 sm:$0xff]  ;;  %v3041_v62 = vld [vmem:[%s4513_s3 + $0x1] ss:$0 sm:$0xff]  ;;  %vm2967_vm9 = vcmask 0  }
  0x12   : > { %323 = vmatprep.subr.bf16.mxu0 %v3781_v1 }
  0x15   : > { %324 = vmatpush1.bf16.msra.mxu0 %v3573_v3 }
  0x16   : > { %325 = vmatprep.subr.bf16.mxu0 %v3781_v1 }
  0x19   : > { %326 = vmatpush1.bf16.msra.mxu0 %v3574_v4 }
  0x1a   : > { %327 = vmatprep.subr.bf16.mxu0 %v3781_v1 }
  0x1d   : > { %328 = vmatpush1.bf16.msra.mxu0 %v3575_v5 }
  0x1e   : > { %329 = vmatprep.subr.bf16.mxu0 %v3781_v1 }
  0x21   : > { %330 = vmatpush1.bf16.msra.mxu0 %v3576_v7 }
  0x22   : > { %331 = vmatprep.subr.bf16.mxu0 %v3781_v1 }
  0x25   : > { %332 = vmatpush1.bf16.msra.mxu0 %v3577_v8 }
  0x26   : > { %333 = vmatprep.subr.bf16.mxu0 %v3781_v1 }
  0x29   : > { %334 = vmatpush1.bf16.msra.mxu0 %v3578_v9 }
  0x2a   : > { %343 = vmatprep.subr.bf16.mxu0 %v3781_v1 }
  0x2d   : > { %344 = vmatpush2.bf16.msra.mxu0 %v3579_v10 }
  0x2e   : > { %345 = vmatprep.subr.bf16.mxu0 %v3781_v1 }
  0x31   : > { %346 = vmatpush2.bf16.msra.mxu0 %v3580_v11 }
  0x32   : > { %347 = vmatprep.subr.bf16.mxu0 %v3781_v1 }
  0x35   : > { %348 = vmatpush2.bf16.msra.mxu0 %v3581_v12 }
  0x36   : > { %349 = vmatprep.subr.bf16.mxu0 %v3781_v1 }
  0x39   : > { %350 = vmatpush2.bf16.msra.mxu0 %v3582_v13 }
  0x3c   : > { %352 = vmatmul.mubr.bf16.vlgmr.msra.gmra.mxu0 %v3583_v15 }
  0x3d   : > { %3039 = vmatprep.mubr.msk.bf16.mxu0 %vm312_vm0, %v3025_v16 }
  0x44   : > { %360 = vmatmul.mubr.bf16.gmra.mxu0 %v3024_v17 }
  0xfc   : > { %v353_v19 = vpop.f32.mrf.mxu0 }
  0xfd   : > { %v354_v20 = vadd.f32 %v353_v19, %v222_v18 }
  0xfe   : > { %v355_v21 = vpop.f32.mrf.mxu0 }
  0xff   : > { %v370_v23 = vsel %vm369_vm1, %v354_v20, 0.0 }
 0x100   : > { %v356_v24 = vpop.f32.mrf.mxu0  ;;  %371 = vadd.xlane.f32.xlu0 %v370_v23 }
 0x101   : > { %v357_v25 = vadd.f32 %v356_v24, %v223_v22 }
 0x102   : > { %v358_v26 = vpop.f32.mrf.mxu0 }
 0x103   : > { %v373_v28 = vsel %vm369_vm1, %v357_v25, 0.0 }
 0x104   : > { %v361_v29 = vpop.f32.mrf.mxu0  ;;  %374 = vadd.xlane.f32.xlu0 %v373_v28  ;;  %v3589_v28 = vld [vmem:[%s4512_s2 + $0x60] sm:$0xff]  }
 0x105   : > { %v362_v30 = vadd.f32 %v361_v29, %v224_v27  ;;  %v3588_v27 = vld [vmem:[%s4512_s2 + $0x68] sm:$0xff]  }
 0x106   : > { %v363_v31 = vpop.f32.mrf.mxu0  ;;  %3259 = vmatprep.subr.bf16.mxu1 %v3588_v27 }
 0x107   : > { %v376_v32 = vsel %vm369_vm1, %v362_v30, 0.0  ;;  %3260 = vmatpush3.bf16.msra.mxu1 %v3588_v27 }
 0x108   : > { %v364_v33 = vpop.f32.mrf.mxu0  ;;  %377 = vadd.xlane.f32.xlu1 %v376_v32  ;;  %3261 = vmatprep.subr.bf16.mxu1 %v3589_v28 }
 0x10a   : > { %v365_v34 = vpop.f32.mrf.mxu0 }
 0x10b   : > { %3262 = vmatpush3.bf16.msra.mxu1 %v3589_v28 }
 0x189   : > { %v372_v35 = vpop.xlane.xlu0 %371 }
 0x18a   : > { %v380_v36 = vmul.f32 0.03125, %v372_v35 }
 0x18c   : > { %v383_v37 = vsub.f32 %v354_v20, %v380_v36 }
 0x18d   : > { %v375_v38 = vpop.xlane.xlu0 %374 }
 0x18e   : > { %v381_v39 = vmul.f32 0.03125, %v375_v38  ;;  %v386_v40 = vmul.f32 %v383_v37, %v383_v37 }
 0x190   : > { %v384_v41 = vsub.f32 %v357_v25, %v381_v39  ;;  %v389_v42 = vsel %vm369_vm1, %v386_v40, 0.0  ;;  %v3042_v40 = vld [vmem:[%s4513_s3 + $0x2] ss:$0 sm:$0xff] }
 0x191   : > { %v378_v43 = vpop.xlane.xlu1 %377  ;;  %390 = vadd.xlane.f32.xlu1 %v389_v42 }
 0x192   : > { %v382_v44 = vmul.f32 0.03125, %v378_v43  ;;  %v387_v45 = vmul.f32 %v384_v41, %v384_v41 }
 0x194   : > { %v385_v46 = vsub.f32 %v362_v30, %v382_v44  ;;  %v392_v47 = vsel %vm369_vm1, %v387_v45, 0.0  ;;  %v3043_v44 = vld [vmem:[%s4513_s3 + $0x3] ss:$0 sm:$0xff] }
 0x195   : > { %393 = vadd.xlane.f32.xlu0 %v392_v47 }
 0x196   : > { %v388_v48 = vmul.f32 %v385_v46, %v385_v46 }
 0x198   : > { %v395_v49 = vsel %vm369_vm1, %v388_v48, 0.0 }
 0x199   : > { %396 = vadd.xlane.f32.xlu1 %v395_v49 }
 0x21a   : > { %v391_v50 = vpop.xlane.xlu1 %390 }
 0x21b   : > { %v398_v51 = vmul.f32 0.03125, %v391_v50 }
 0x21d   : > { %v401_v52 = vadd.f32 1e-05, %v398_v51 }
 0x21e   : > { %v394_v53 = vpop.xlane.xlu0 %393 }
 0x21f   : > { %3620 = vrsqrt.f32 %v401_v52  ;;  %v399_v54 = vmul.f32 0.03125, %v394_v53 }
 0x221   : > { %v402_v55 = vadd.f32 1e-05, %v399_v54  ;;  %v3044_v54 = vld [vmem:[%s4513_s3 + $0x4] ss:$0 sm:$0xff] }
 0x222   : > { %v397_v56 = vpop.xlane.xlu1 %396 }
 0x223   : > { %3622 = vrsqrt.f32 %v402_v55  ;;  %v400_v57 = vmul.f32 0.03125, %v397_v56 }
 0x225   : > { %v403_v58 = vadd.f32 1e-05, %v400_v57 }
 0x227   : > { %3624 = vrsqrt.f32 %v403_v58 }
 0x22c   : > { %v3621_v59 = vpop.eup %3620 }
 0x22d   : > { %v407_v61 = vmul.f32 %v3621_v59, %v383_v37 }
 0x22f   : > { %v414_v63 = vmul.f32 %v3040_v60, %v407_v61 }
 0x230   : > { %v3623_v0 = vpop.eup %3622 }
 0x231   : > { %v3896_v1 = vadd.f32 %v3041_v62, %v414_v63  ;;  %v408_v2 = vmul.f32 %v3623_v0, %v384_v41 }
 0x233   : > { %v427_v3 = vsel %vm369_vm1, %v3896_v1, 0.0  ;;  %v415_v4 = vmul.f32 %v3040_v60, %v408_v2 }
 0x234   : > { %v3625_v5 = vpop.eup %3624  ;;  %428 = vadd.xlane.f32.xlu0 %v427_v3 }
 0x235   : > { %v3900_v6 = vadd.f32 %v3041_v62, %v415_v4  ;;  %v409_v7 = vmul.f32 %v3625_v5, %v385_v46 }
 0x237   : > { %v430_v8 = vsel %vm369_vm1, %v3900_v6, 0.0  ;;  %v416_v9 = vmul.f32 %v3040_v60, %v409_v7  ;;  %v3950_v7 = vld [vmem:[%s4513_s3 + $0x17] ss:$0 sm:$0xff] }
 0x238   : > { %431 = vadd.xlane.f32.xlu1 %v430_v8 }
 0x239   : > { %v3904_v10 = vadd.f32 %v3041_v62, %v416_v9 }
 0x23b   : > { %v433_v11 = vsel %vm369_vm1, %v3904_v10, 0.0 }
 0x23c   : > { %434 = vadd.xlane.f32.xlu0 %v433_v11 }
 0x2bd   : > { %v429_v12 = vpop.xlane.xlu0 %428 }
 0x2be   : > { %v436_v13 = vmul.f32 0.03125, %v429_v12 }
 0x2c0   : > { %v439_v14 = vsub.f32 %v3896_v1, %v436_v13 }
 0x2c1   : > { %v432_v15 = vpop.xlane.xlu1 %431 }
 0x2c2   : > { %v437_v16 = vmul.f32 0.03125, %v432_v15  ;;  %v442_v17 = vmul.f32 %v439_v14, %v439_v14 }
 0x2c4   : > { %v440_v18 = vsub.f32 %v3900_v6, %v437_v16  ;;  %v445_v19 = vsel %vm369_vm1, %v442_v17, 0.0 }
 0x2c5   : > { %446 = vadd.xlane.f32.xlu1 %v445_v19  ;;  %v435_v20 = vpop.xlane.xlu0 %434 }
 0x2c6   : > { %v438_v21 = vmul.f32 0.03125, %v435_v20  ;;  %v443_v22 = vmul.f32 %v440_v18, %v440_v18 }
 0x2c8   : > { %v441_v23 = vsub.f32 %v3904_v10, %v438_v21  ;;  %v448_v24 = vsel %vm369_vm1, %v443_v22, 0.0 }
 0x2c9   : > { %449 = vadd.xlane.f32.xlu0 %v448_v24 }
 0x2ca   : > { %v444_v25 = vmul.f32 %v441_v23, %v441_v23 }
 0x2cc   : > { %v451_v26 = vsel %vm369_vm1, %v444_v25, 0.0 }
 0x2cd   : > { %452 = vadd.xlane.f32.xlu1 %v451_v26 }
 0x34e   : > { %v447_v29 = vpop.xlane.xlu1 %446 }
 0x34f   : > { %v454_v30 = vmul.f32 0.03125, %v447_v29 }
 0x351   : > { %v457_v31 = vadd.f32 1e-05, %v454_v30 }
 0x352   : > { %v450_v32 = vpop.xlane.xlu0 %449 }
 0x353   : > { %3626 = vrsqrt.f32 %v457_v31  ;;  %v455_v33 = vmul.f32 0.03125, %v450_v32 }
 0x355   : > { %v458_v34 = vadd.f32 1e-05, %v455_v33 }
 0x356   : > { %v453_v35 = vpop.xlane.xlu1 %452 }
 0x357   : > { %3628 = vrsqrt.f32 %v458_v34  ;;  %v456_v36 = vmul.f32 0.03125, %v453_v35 }
 0x359   : > { %v459_v37 = vadd.f32 1e-05, %v456_v36 }
 0x35b   : > { %3630 = vrsqrt.f32 %v459_v37 }
 0x360   : > { %v3627_v38 = vpop.eup %3626 }
 0x361   : > { %v463_v39 = vmul.f32 %v3627_v38, %v439_v14 }
 0x363   : > { %v470_v43 = vmul.f32 %v3042_v40, %v463_v39 }
 0x364   : > { %v3629_v41 = vpop.eup %3628 }
 0x365   : > { %v464_v42 = vmul.f32 %v3629_v41, %v440_v18  ;;  %v477_v47 = vadd.f32 %v3043_v44, %v470_v43 }
 0x367   : > { %v471_v45 = vmul.f32 %v3042_v40, %v464_v42 }
 0x368   : > { %v3631_v46 = vpop.eup %3630 }
 0x369   : > { %v478_v48 = vadd.f32 %v3043_v44, %v471_v45  ;;  %v465_v49 = vmul.f32 %v3631_v46, %v441_v23 }
 0x36b   : > { %v480_v50 = vpack.c.bf16 %v478_v48, %v477_v47  ;;  %v472_v51 = vmul.f32 %v3042_v40, %v465_v49 }
 0x36d   : > { %3263 = vmatprep.mubr.msk.bf16.mxu1 %vm369_vm1, %v480_v50  ;;  %v479_v52 = vadd.f32 %v3043_v44, %v472_v51 }
 0x36f   : > { %v481_v53 = vpack.c.bf16 %v479_v52, %v479_v52 }
 0x371   : > { %3264 = vmatmul.mubr.msk.bf16.vlgmr.msra.gmra.mxu1 %vm369_vm1, %v481_v53 }
 0x431   : > { %v3265_v55 = vpop.f32.mrf.mxu1 }
 0x432   : > { %v552_v56 = vadd.f32 %v3265_v55, %v3044_v54 }
 0x433   : > { %v543_v57 = vpop.f32.mrf.mxu1 }
 0x434   : > { %v3931_v58 = vpack.c.bf16 %v552_v56, %v552_v56  ;;  %v544_v61 = vadd.f32 %v3044_v54, %v543_v57 }
 0x435   : > { %v3266_v59 = vpop.f32.mrf.mxu1 }
 0x436   : > { %567 = vrot.lane.b32.xlu0 %v3931_v58, %s3782_s17 }
 0x437   : > { %v546_v60 = vpop.f32.mrf.mxu1 }
 0x438   : > { %v547_v62 = vadd.f32 %v3044_v54, %v546_v60 }
 0x43a   : > { %v3935_v63 = vpack.c.bf16 %v547_v62, %v544_v61 }
 0x43c   : > { %565 = vrot.lane.b32.xlu1 %v3935_v63, %s3782_s17  ;;  %3271 = vmatprep.mubr.msk.bf16.mxu1 %vm569_vm2, %v3935_v63 }
 0x4a8   : > { %v568_v0 = vpop.permute.xlu0 %567 }
 0x4a9   : > { %3491 = vmatprep.subr.msk.bf16.mxu1 %vm569_vm2, %v568_v0  ;;  %v580_v2 = vsel %vm569_vm2, %v568_v0, 0 }
 0x4aa   : > { %3268 = vmatpush3.bf16.xpose.msra.mxu1 %v580_v2 }
 0x4ae   : > { %v566_v3 = vpop.permute.xlu1 %565 }
 0x4af   : > { %3492 = vmatprep.subr.msk.bf16.mxu1 %vm569_vm2, %v566_v3  ;;  %v577_v4 = vsel %vm569_vm2, %v566_v3, 0 }
 0x4b2   : > { %3270 = vmatpush3.bf16.xpose.msra.mxu1 %v577_v4 }
 0x4b9   : > { %3272 = vmatmul.mubr.msk.bf16.vlgmr.msra.gmra.mxu1 %vm569_vm2, %v3931_v58 }
 0x579   : > { %v3273_v5 = vpop.f32.mrf.mxu1 }
 0x57a   : > { %v625_v15 = vadd.f32 %v3273_v5, %v3950_v7 }
 0x57b   : > { %v616_v8 = vpop.f32.mrf.mxu1 }
 0x57c   : > { %v617_v9 = vadd.f32 %v3950_v7, %v616_v8  ;;  %v637_v17 = vsel %vm630_vm3, %v625_v15, -inf }
 0x57d   : > { %v3274_v11 = vpop.f32.mrf.mxu1 }
 0x57e   : > { %v631_v12 = vsel %vm630_vm3, %v617_v9, -inf }
 0x57f   : > { %v619_v13 = vpop.f32.mrf.mxu1  ;;  %632 = vmax.xlane.f32.xlu1 %v631_v12 }
 0x580   : > { %v620_v14 = vadd.f32 %v3950_v7, %v619_v13 }
 0x582   : > { %v634_v16 = vsel %vm630_vm3, %v620_v14, -inf }
 0x583   : > { %635 = vmax.xlane.f32.xlu0 %v634_v16 }
 0x587   : > { %638 = vmax.xlane.f32.xlu0 %v637_v17 }
 0x608   : > { %v633_v18 = vpop.xlane.xlu1 %632 }
 0x609   : > { %v640_v21 = vsub.f32 %v617_v9, %v633_v18 }
 0x60b   : > { %v643_v25 = vmul.f32 1.442695, %v640_v21 }
 0x60c   : > { %v636_v19 = vpop.xlane.xlu0 %635 }
 0x60d   : > { %v641_v20 = vsub.f32 %v620_v14, %v636_v19 }
 0x60f   : > { %v645_v22 = vmul.f32 1.442695, %v641_v20 }
 0x610   : > { %v639_v23 = vpop.xlane.xlu0 %638 }
 0x611   : > { %3632 = vpow2.f32 %v645_v22  ;;  %v642_v24 = vsub.f32 %v625_v15, %v639_v23 }
 0x613   : > { %v647_v26 = vmul.f32 1.442695, %v642_v24 }
 0x615   : > { %3634 = vpow2.f32 %v647_v26 }
 0x616   : > { %3636 = vpow2.f32 %v643_v25 }
 0x61e   : > { %v3633_v27 = vpop.eup %3632 }
 0x61f   : > { %v652_v28 = vsel %vm630_vm3, %v3633_v27, 0.0 }
 0x620   : > { %653 = vadd.xlane.f32.xlu0 %v652_v28 }
 0x622   : > { %v3635_v29 = vpop.eup %3634 }
 0x623   : > { %v655_v30 = vsel %vm630_vm3, %v3635_v29, 0.0  ;;  %v3637_v31 = vpop.eup %3636 }
 0x624   : > { %656 = vadd.xlane.f32.xlu1 %v655_v30  ;;  %v649_v32 = vsel %vm630_vm3, %v3637_v31, 0.0 }
 0x628   : > { %650 = vadd.xlane.f32.xlu1 %v649_v32 }
 0x636   : > { %668 = vrot.lane.b32.xlu0 %v3931_v58, %s3783_s20 }
 0x639   : > { %666 = vrot.lane.b32.xlu1 %v3935_v63, %s3783_s20 }
 0x63a   : > { %733 = vrot.lane.b32.xlu0 %v3935_v63, %s3784_s21 }
 0x63d   : > { %735 = vrot.lane.b32.xlu1 %v3931_v58, %s3784_s21 }
 0x63e   : > { %729 = vrot.lane.b32.xlu0 %v3935_v63, %s3785_s22 }
 0x641   : > { %900 = vrot.lane.b32.xlu1 %v3931_v58, %s3786_s23 }
 0x642   : > { %894 = vrot.lane.b32.xlu0 %v3935_v63, %s3787_s24 }
 0x645   : > { %898 = vrot.lane.b32.xlu1 %v3935_v63, %s3786_s23 }
 0x646   : > { %896 = vrot.lane.b32.xlu0 %v3931_v58, %s3787_s24 }
 0x649   : > { %731 = vrot.lane.b32.xlu1 %v3931_v58, %s3785_s22 }
 0x64a   : > { %1059 = vrot.lane.b32.xlu0 %v3935_v63, %s3788_s25 }
 0x64d   : > { %1065 = vrot.lane.b32.xlu1 %v3931_v58, %s3789_s26 }
 0x651   : > { %1063 = vrot.lane.b32.xlu1 %v3935_v63, %s3789_s26 }
 0x655   : > { %1061 = vrot.lane.b32.xlu1 %v3931_v58, %s3788_s25 }
 0x6a9   : > { %v654_v33 = vpop.xlane.xlu0 %653 }
 0x6ad   : > { %v669_v34 = vpop.permute.xlu0 %668  ;;  %v657_v35 = vpop.xlane.xlu1 %656 }
 0x6ae   : > { %3493 = vmatprep.subr.msk.bf16.mxu1 %vm677_vm4, %v669_v34  ;;  %v679_v36 = vsel %vm677_vm4, %v669_v34, 0  ;;  %3638 = vrcp.f32 %v657_v35 }
 0x6af   : > { %3276 = vmatpush3.bf16.msra.mxu1 %v679_v36  ;;  %3640 = vrcp.f32 %v654_v33 }
 0x6b1   : > { %v734_v37 = vpop.permute.xlu0 %733  ;;  %v651_v38 = vpop.xlane.xlu1 %650 }
 0x6b2   : > { %3642 = vrcp.f32 %v651_v38  ;;  %v744_v60 = vsel %vm569_vm2, %v734_v37, 0 }
 0x6b5   : > { %v730_v39 = vpop.permute.xlu0 %729  ;;  %v667_v40 = vpop.permute.xlu1 %666 }
 0x6b6   : > { %3277 = vmatprep.subr.bf16.mxu1 %v667_v40 }
 0x6b7   : > { %3278 = vmatpush3.bf16.msra.mxu1 %v667_v40 }
 0x6b9   : > { %v895_v41 = vpop.permute.xlu0 %894  ;;  %v736_v42 = vpop.permute.xlu1 %735 }
 0x6ba   : > { %3494 = vmatprep.subr.msk.bf16.mxu1 %vm569_vm2, %v736_v42  ;;  %3303 = vmatprep.mubr.msk.bf16.mxu0 %vm569_vm2, %v895_v41  ;;  %v747_v54 = vsel %vm569_vm2, %v736_v42, 0 }
 0x6bb   : > { %v3639_v43 = vpop.eup %3638 }
 0x6bc   : > { %v3641_v44 = vpop.eup %3640  ;;  %v663_v48 = vmul.f32 %v3639_v43, %v3635_v29 }
 0x6bd   : > { %v901_v45 = vpop.permute.xlu1 %900  ;;  %v662_v50 = vmul.f32 %v3641_v44, %v3633_v27  ;;  %v897_v57 = vpop.permute.xlu0 %896 }
 0x6be   : > { %3497 = vmatprep.subr.msk.bf16.mxu0 %vm569_vm2, %v901_v45  ;;  %v912_v46 = vsel %vm569_vm2, %v901_v45, 0  ;;  %v665_v53 = vpack.c.bf16 %v663_v48, %v663_v48 }
 0x6bf   : > { %v3643_v47 = vpop.eup %3642  ;;  %3300 = vmatpush3.bf16.xpose.msra.mxu0 %v912_v46 }
 0x6c0   : > { %v661_v49 = vmul.f32 %v3643_v47, %v3637_v31 }
 0x6c1   : > { %v899_v51 = vpop.permute.xlu1 %898  ;;  %v1060_v61 = vpop.permute.xlu0 %1059 }
 0x6c2   : > { %3498 = vmatprep.subr.msk.bf16.mxu0 %vm569_vm2, %v899_v51  ;;  %v664_v52 = vpack.c.bf16 %v662_v50, %v661_v49  ;;  %v909_v56 = vsel %vm569_vm2, %v899_v51, 0 }
 0x6c4   : > { %3279 = vmatprep.mubr.msk.bf16.mxu1 %vm630_vm3, %v664_v52 }
 0x6c5   : > { %3280 = vmatmul.mubr.msk.bf16.vlgmr.msra.gmra.mxu1 %vm630_vm3, %v665_v53  ;;  %v732_v55 = vpop.permute.xlu1 %731 }
 0x6c6   : > { %3284 = vmatpush3.bf16.xpose.msra.mxu1 %v747_v54  ;;  %3287 = vmatprep.mubr.msk.bf16.mxu1 %vm569_vm2, %v730_v39 }
 0x6c7   : > { %3495 = vmatprep.subr.msk.bf16.mxu1 %vm569_vm2, %v734_v37  ;;  %3302 = vmatpush3.bf16.xpose.msra.mxu0 %v909_v56 }
 0x6c9   : > { %v1066_v59 = vpop.permute.xlu1 %1065 }
 0x6ca   : > { %3500 = vmatprep.subr.msk.bf16.mxu0 %vm569_vm2, %v1066_v59  ;;  %v1077_v62 = vsel %vm569_vm2, %v1066_v59, 0 }
 0x6cd   : > { %v1064_v0 = vpop.permute.xlu1 %1063 }
 0x6ce   : > { %3286 = vmatpush3.bf16.xpose.msra.mxu1 %v744_v60  ;;  %3304 = vmatmul.mubr.msk.bf16.vlgmr.msra.gmra.mxu0 %vm569_vm2, %v897_v57  ;;  %v1074_v2 = vsel %vm569_vm2, %v1064_v0, 0 }
 0x6cf   : > { %3316 = vmatpush3.bf16.xpose.msra.mxu0 %v1077_v62  ;;  %3319 = vmatprep.mubr.msk.bf16.mxu0 %vm569_vm2, %v1060_v61 }
 0x6d0   : > { %3501 = vmatprep.subr.msk.bf16.mxu0 %vm569_vm2, %v1064_v0 }
 0x6d1   : > { %v1062_v3 = vpop.permute.xlu1 %1061 }
 0x6d5   : > { %3288 = vmatmul.mubr.msk.bf16.vlgmr.msra.gmra.mxu1 %vm569_vm2, %v732_v55 }
 0x6d7   : > { %3318 = vmatpush3.bf16.xpose.msra.mxu0 %v1074_v2 }
 0x6de   : > { %3320 = vmatmul.mubr.msk.bf16.vlgmr.msra.gmra.mxu0 %vm569_vm2, %v1062_v3 }
 0x785   : > { %v4011_v4 = vpop.f32.mrf.mxu1 }
 0x787   : > { %v4013_v5 = vpop.f32.mrf.mxu1 }
 0x789   : > { %v3282_v8 = vpop.f32.mrf.mxu1 }
 0x78b   : > { %v4015_v13 = vpop.f32.mrf.mxu1 }
 0x78e   : > { %v3305_v9 = vpop.f32.mrf.mxu0 }
 0x78f   : > { %v957_v23 = vadd.f32 %v3305_v9, %v3950_v7 }
 0x790   : > { %v948_v11 = vpop.f32.mrf.mxu0 }
 0x791   : > { %v949_v24 = vadd.f32 %v3950_v7, %v948_v11  ;;  %v968_v30 = vsel %vm630_vm3, %v957_v23, -inf }
 0x792   : > { %v3306_v12 = vpop.f32.mrf.mxu0 }
 0x793   : > { %v962_v31 = vsel %vm630_vm3, %v949_v24, -inf }
 0x794   : > { %v951_v21 = vpop.f32.mrf.mxu0 }
 0x795   : > { %v3289_v14 = vpop.f32.mrf.mxu1  ;;  %v952_v29 = vadd.f32 %v3950_v7, %v951_v21 }
 0x796   : > { %v792_v18 = vadd.f32 %v3289_v14, %v3950_v7 }
 0x797   : > { %v783_v15 = vpop.f32.mrf.mxu1  ;;  %v965_v36 = vsel %vm630_vm3, %v952_v29, -inf }
 0x798   : > { %v4018_v16 = vadd.f32 %v3950_v7, %v783_v15  ;;  %v803_v26 = vsel %vm630_vm3, %v792_v18, -inf }
 0x799   : > { %v3290_v17 = vpop.f32.mrf.mxu1 }
 0x79a   : > { %v797_v19 = vsel %vm630_vm3, %v4018_v16, -inf }
 0x79b   : > { %v786_v20 = vpop.f32.mrf.mxu1  ;;  %798 = vmax.xlane.f32.xlu0 %v797_v19 }
 0x79c   : > { %v787_v22 = vadd.f32 %v3950_v7, %v786_v20 }
 0x79e   : > { %v800_v25 = vsel %vm630_vm3, %v787_v22, -inf  ;;  %v3321_v27 = vpop.f32.mrf.mxu0 }
 0x79f   : > { %801 = vmax.xlane.f32.xlu1 %v800_v25  ;;  %804 = vmax.xlane.f32.xlu0 %v803_v26  ;;  %v1122_v38 = vadd.f32 %v3321_v27, %v3950_v7 }
 0x7a0   : > { %v1113_v28 = vpop.f32.mrf.mxu0 }
 0x7a1   : > { %v1114_v35 = vadd.f32 %v3950_v7, %v1113_v28  ;;  %v1133_v40 = vsel %vm630_vm3, %v1122_v38, -inf }
 0x7a2   : > { %v3322_v32 = vpop.f32.mrf.mxu0 }
 0x7a3   : > { %969 = vmax.xlane.f32.xlu1 %v968_v30  ;;  %963 = vmax.xlane.f32.xlu0 %v962_v31  ;;  %v1127_v39 = vsel %vm630_vm3, %v1114_v35, -inf }
 0x7a4   : > { %v1116_v33 = vpop.f32.mrf.mxu0 }
 0x7a5   : > { %v1117_v34 = vadd.f32 %v3950_v7, %v1116_v33 }
 0x7a7   : > { %966 = vmax.xlane.f32.xlu0 %v965_v36  ;;  %v1130_v37 = vsel %vm630_vm3, %v1117_v34, -inf }
 0x7a8   : > { %1131 = vmax.xlane.f32.xlu1 %v1130_v37 }
 0x7ab   : > { %1128 = vmax.xlane.f32.xlu0 %v1127_v39 }
 0x7af   : > { %1134 = vmax.xlane.f32.xlu0 %v1133_v40 }
 0x824   : > { %v799_v41 = vpop.xlane.xlu0 %798 }
 0x825   : > { %v806_v2 = vsub.f32 %v4018_v16, %v799_v41 }
 0x827   : > { %v809_v11 = vmul.f32 1.442695, %v806_v2 }
 0x828   : > { %v805_v42 = vpop.xlane.xlu0 %804  ;;  %v802_v43 = vpop.xlane.xlu1 %801 }
 0x829   : > { %v807_v53 = vsub.f32 %v787_v22, %v802_v43  ;;  %v808_v59 = vsub.f32 %v792_v18, %v805_v42 }
 0x82b   : > { %v811_v60 = vmul.f32 1.442695, %v807_v53  ;;  %v813_v3 = vmul.f32 1.442695, %v808_v59 }
 0x82c   : > { %v964_v44 = vpop.xlane.xlu0 %963  ;;  %v970_v45 = vpop.xlane.xlu1 %969 }
 0x82d   : > { %v971_v46 = vsub.f32 %v949_v24, %v964_v44  ;;  %v973_v47 = vsub.f32 %v957_v23, %v970_v45 }
 0x82f   : > { %v974_v48 = vmul.f32 1.442695, %v971_v46  ;;  %v978_v49 = vmul.f32 1.442695, %v973_v47 }
 0x830   : > { %v967_v50 = vpop.xlane.xlu0 %966 }
 0x831   : > { %3644 = vpow2.f32 %v974_v48  ;;  %v972_v51 = vsub.f32 %v952_v29, %v967_v50  ;;  %v1132_v52 = vpop.xlane.xlu1 %1131 }
 0x832   : > { %v1137_v7 = vsub.f32 %v1117_v34, %v1132_v52  ;;  %3646 = vpow2.f32 %v978_v49 }
 0x833   : > { %v976_v54 = vmul.f32 1.442695, %v972_v51 }
 0x834   : > { %v1141_v55 = vmul.f32 1.442695, %v1137_v7  ;;  %v1129_v56 = vpop.xlane.xlu0 %1128 }
 0x835   : > { %3648 = vpow2.f32 %v976_v54  ;;  %v1136_v57 = vsub.f32 %v1114_v35, %v1129_v56 }
 0x836   : > { %3650 = vpow2.f32 %v1141_v55 }
 0x837   : > { %v1139_v61 = vmul.f32 1.442695, %v1136_v57 }
 0x838   : > { %v1135_v62 = vpop.xlane.xlu0 %1134 }
 0x839   : > { %3652 = vpow2.f32 %v1139_v61  ;;  %v1138_v0 = vsub.f32 %v1122_v38, %v1135_v62 }
 0x83a   : > { %3654 = vpow2.f32 %v811_v60 }
 0x83b   : > { %v1143_v8 = vmul.f32 1.442695, %v1138_v0 }
 0x83d   : > { %3656 = vpow2.f32 %v1143_v8 }
 0x83e   : > { %v4039_v9 = vpop.eup %3644  ;;  %3658 = vpow2.f32 %v813_v3 }
 0x83f   : > { %v980_v12 = vsel %vm630_vm3, %v4039_v9, 0.0  ;;  %v4043_v14 = vpop.eup %3646  ;;  %3660 = vpow2.f32 %v809_v11 }
 0x840   : > { %981 = vadd.xlane.f32.xlu0 %v980_v12  ;;  %v986_v17 = vsel %vm630_vm3, %v4043_v14, 0.0 }
 0x842   : > { %v4045_v15 = vpop.eup %3648 }
 0x843   : > { %v983_v16 = vsel %vm630_vm3, %v4045_v15, 0.0  ;;  %v4051_v18 = vpop.eup %3650 }
 0x844   : > { %984 = vadd.xlane.f32.xlu1 %v983_v16  ;;  %987 = vadd.xlane.f32.xlu0 %v986_v17  ;;  %v1148_v21 = vsel %vm630_vm3, %v4051_v18, 0.0 }
 0x846   : > { %v4053_v19 = vpop.eup %3652 }
 0x847   : > { %v1145_v20 = vsel %vm630_vm3, %v4053_v19, 0.0  ;;  %v3655_v22 = vpop.eup %3654 }
 0x848   : > { %1146 = vadd.xlane.f32.xlu1 %v1145_v20  ;;  %1149 = vadd.xlane.f32.xlu0 %v1148_v21  ;;  %v818_v25 = vsel %vm630_vm3, %v3655_v22, 0.0 }
 0x84a   : > { %v4059_v23 = vpop.eup %3656 }
 0x84b   : > { %v1151_v24 = vsel %vm630_vm3, %v4059_v23, 0.0  ;;  %v3659_v26 = vpop.eup %3658 }
 0x84c   : > { %1152 = vadd.xlane.f32.xlu1 %v1151_v24  ;;  %819 = vadd.xlane.f32.xlu0 %v818_v25  ;;  %v821_v27 = vsel %vm630_vm3, %v3659_v26, 0.0  ;;  %v3661_v28 = vpop.eup %3660 }
 0x84d   : > { %v815_v29 = vsel %vm630_vm3, %v3661_v28, 0.0 }
 0x850   : > { %822 = vadd.xlane.f32.xlu1 %v821_v27 }
 0x854   : > { %816 = vadd.xlane.f32.xlu1 %v815_v29 }
 0x862   : > { %834 = vrot.lane.b32.xlu0 %v3931_v58, %s3790_s27 }
 0x865   : > { %832 = vrot.lane.b32.xlu1 %v3935_v63, %s3790_s27 }
 0x866   : > { %1164 = vrot.lane.b32.xlu0 %v3931_v58, %s3791_s28 }
 0x869   : > { %999 = vrot.lane.b32.xlu1 %v3931_v58, %s3792_s29 }
 0x86d   : > { %997 = vrot.lane.b32.xlu1 %v3935_v63, %s3792_s29 }
 0x871   : > { %1162 = vrot.lane.b32.xlu1 %v3935_v63, %s3791_s28 }
 0x8c9   : > { %v982_v30 = vpop.xlane.xlu0 %981 }
 0x8cd   : > { %v988_v31 = vpop.xlane.xlu0 %987  ;;  %v985_v32 = vpop.xlane.xlu1 %984 }
 0x8ce   : > { %3662 = vrcp.f32 %v985_v32 }
 0x8d1   : > { %v1150_v33 = vpop.xlane.xlu0 %1149  ;;  %v1147_v34 = vpop.xlane.xlu1 %1146 }
 0x8d5   : > { %v820_v35 = vpop.xlane.xlu0 %819  ;;  %v1153_v36 = vpop.xlane.xlu1 %1152 }
 0x8d9   : > { %v835_v37 = vpop.permute.xlu0 %834  ;;  %v823_v38 = vpop.xlane.xlu1 %822 }
 0x8da   : > { %v844_v39 = vsel %vm677_vm4, %v835_v37, 0  ;;  %3496 = vmatprep.subr.msk.bf16.mxu1 %vm677_vm4, %v835_v37  ;;  %3664 = vrcp.f32 %v823_v38 }
 0x8db   : > { %3292 = vmatpush3.bf16.msra.mxu1 %v844_v39  ;;  %3666 = vrcp.f32 %v820_v35  ;;  %v3663_v41 = vpop.eup %3662 }
 0x8dc   : > { %3668 = vrcp.f32 %v982_v30  ;;  %v993_v49 = vmul.f32 %v3663_v41, %v4045_v15 }
 0x8dd   : > { %v817_v58 = vpop.xlane.xlu1 %816  ;;  %v1165_v62 = vpop.permute.xlu0 %1164 }
 0x8de   : > { %3670 = vrcp.f32 %v817_v58  ;;  %v1174_v8 = vsel %vm677_vm4, %v1165_v62, 0 }
 0x8df   : > { %3672 = vrcp.f32 %v988_v31 }
 0x8e0   : > { %3674 = vrcp.f32 %v1150_v33 }
 0x8e1   : > { %v833_v63 = vpop.permute.xlu1 %832  ;;  %3676 = vrcp.f32 %v1147_v34 }
 0x8e2   : > { %3293 = vmatprep.subr.bf16.mxu1 %v833_v63  ;;  %3678 = vrcp.f32 %v1153_v36 }
 0x8e3   : > { %3294 = vmatpush3.bf16.msra.mxu1 %v833_v63 }
 0x8e5   : > { %v1000_v40 = vpop.permute.xlu1 %999 }
 0x8e6   : > { %3499 = vmatprep.subr.msk.bf16.mxu1 %vm677_vm4, %v1000_v40  ;;  %v1009_v56 = vsel %vm677_vm4, %v1000_v40, 0 }
 0x8e7   : > { %v3665_v42 = vpop.eup %3664 }
 0x8e8   : > { %v3667_v43 = vpop.eup %3666  ;;  %v829_v46 = vmul.f32 %v3665_v42, %v3659_v26 }
 0x8e9   : > { %v3669_v44 = vpop.eup %3668  ;;  %v828_v48 = vmul.f32 %v3667_v43, %v3655_v22  ;;  %v998_v57 = vpop.permute.xlu1 %997 }
 0x8ea   : > { %v992_v51 = vmul.f32 %v3669_v44, %v4039_v9  ;;  %v831_v7 = vpack.c.bf16 %v829_v46, %v829_v46 }
 0x8eb   : > { %v3671_v45 = vpop.eup %3670 }
 0x8ec   : > { %v827_v47 = vmul.f32 %v3671_v45, %v3661_v28  ;;  %v3673_v52 = vpop.eup %3672  ;;  %v995_v54 = vpack.c.bf16 %v993_v49, %v992_v51 }
 0x8ed   : > { %v3675_v53 = vpop.eup %3674  ;;  %v994_v59 = vmul.f32 %v3673_v52, %v4043_v14  ;;  %v1163_v9 = vpop.permute.xlu1 %1162 }
 0x8ee   : > { %v830_v50 = vpack.c.bf16 %v828_v48, %v827_v47  ;;  %v3677_v55 = vpop.eup %3676  ;;  %v1158_v61 = vmul.f32 %v3675_v53, %v4051_v18  ;;  %v3590_v18 = vld [vmem:[%s4512_s2 + $0x78] sm:$0xff]  }
 0x8ef   : > { %v1157_v60 = vmul.f32 %v3677_v55, %v4053_v19  ;;  %v996_v0 = vpack.c.bf16 %v994_v59, %v994_v59  ;;  %v3679_v2 = vpop.eup %3678 }
 0x8f0   : > { %3295 = vmatprep.mubr.msk.bf16.mxu1 %vm630_vm3, %v830_v50  ;;  %v1159_v11 = vmul.f32 %v3679_v2, %v4059_v23  ;;  %v3591_v23 = vld [vmem:[%s4512_s2 + $0x70] sm:$0xff]  }
 0x8f1   : > { %3296 = vmatmul.mubr.msk.bf16.vlgmr.msra.gmra.mxu1 %vm630_vm3, %v831_v7  ;;  %v1160_v3 = vpack.c.bf16 %v1158_v61, %v1157_v60 }
 0x8f2   : > { %3308 = vmatpush3.bf16.msra.mxu1 %v1009_v56  ;;  %3311 = vmatprep.mubr.msk.bf16.mxu1 %vm630_vm3, %v995_v54  ;;  %v1161_v12 = vpack.c.bf16 %v1159_v11, %v1159_v11 }
 0x8f3   : > { %3309 = vmatprep.subr.bf16.mxu1 %v998_v57 }
 0x8f6   : > { %3310 = vmatpush3.bf16.msra.mxu1 %v998_v57 }
 0x8f7   : > { %3502 = vmatprep.subr.msk.bf16.mxu1 %vm677_vm4, %v1165_v62 }
 0x8f9   : > { %3312 = vmatmul.mubr.msk.bf16.vlgmr.msra.gmra.mxu1 %vm630_vm3, %v996_v0 }
 0x8fa   : > { %3324 = vmatpush3.bf16.msra.mxu1 %v1174_v8  ;;  %3327 = vmatprep.mubr.msk.bf16.mxu1 %vm630_vm3, %v1160_v3 }
 0x8fb   : > { %3325 = vmatprep.subr.bf16.mxu1 %v1163_v9 }
 0x8fe   : > { %3326 = vmatpush3.bf16.msra.mxu1 %v1163_v9 }
 0x8ff   : > { %3331 = vmatprep.subr.bf16.mxu1 %v3590_v18 }
 0x901   : > { %3328 = vmatmul.mubr.msk.bf16.vlgmr.msra.gmra.mxu1 %vm630_vm3, %v1161_v12 }
 0x902   : > { %3332 = vmatpush3.bf16.msra.mxu1 %v3590_v18 }
 0x903   : > { %3333 = vmatprep.subr.bf16.mxu1 %v3591_v23 }
 0x906   : > { %3334 = vmatpush3.bf16.msra.mxu1 %v3591_v23 }
 0x9b1   : > { %v3297_v14 = vpop.f32.mrf.mxu1 }
 0x9b2   : > { %1231 = vrot.lane.b32.xlu1 %v3297_v14, %s3793_s30 }
 0x9b3   : > { %v880_v15 = vpop.f32.mrf.mxu1 }
 0x9b5   : > { %v3298_v16 = vpop.f32.mrf.mxu1 }
 0x9b7   : > { %v883_v17 = vpop.f32.mrf.mxu1 }
 0x9b8   : > { %v3541_v19 = vpack.i.bf16 %v883_v17, %v880_v15 }
 0x9b9   : > { %v3313_v20 = vpop.f32.mrf.mxu1 }
 0x9ba   : > { %3542 = vrot.lane.b32.xlu0 %v3541_v19, %s3793_s30  ;;  %1243 = vrot.lane.b32.xlu1 %v3313_v20, %s3794_s7  ;;  %v3592_v19 = vld [vmem:[%s4512_s2 + $0x88] sm:$0xff]   ;;  %v3593_v20 = vld [vmem:[%s4512_s2 + $0x80] sm:$0xff]  }
 0x9bb   : > { %v1045_v21 = vpop.f32.mrf.mxu1  ;;  %3339 = vmatprep.subr.bf16.mxu1 %v3592_v19 }
 0x9bd   : > { %v3314_v22 = vpop.f32.mrf.mxu1 }
 0x9bf   : > { %v1048_v24 = vpop.f32.mrf.mxu1 }
 0x9c0   : > { %v3546_v25 = vpack.i.bf16 %v1048_v24, %v1045_v21 }
 0x9c1   : > { %v3329_v26 = vpop.f32.mrf.mxu1 }
 0x9c2   : > { %3547 = vrot.lane.b32.xlu0 %v3546_v25, %s3794_s7  ;;  %1255 = vrot.lane.b32.xlu1 %v3329_v26, %s3795_s10 }
 0x9c3   : > { %v1210_v27 = vpop.f32.mrf.mxu1 }
 0x9c5   : > { %v3330_v28 = vpop.f32.mrf.mxu1 }
 0x9c7   : > { %v1213_v29 = vpop.f32.mrf.mxu1 }
 0x9c8   : > { %v3551_v30 = vpack.i.bf16 %v1213_v29, %v1210_v27 }
 0x9ca   : > { %3552 = vrot.lane.b32.xlu0 %v3551_v30, %s3795_s10 }
 0xa24   : > { %v1232_v31 = vpop.permute.xlu1 %1231 }
 0xa25   : > { %v1262_v39 = vsel %vm569_vm2, %v4011_v4, %v1232_v31 }
 0xa2c   : > { %v3543_v32 = vpop.permute.xlu0 %3542  ;;  %v1244_v33 = vpop.permute.xlu1 %1243 }
 0xa2d   : > { %v3545_v35 = vunpack.i.h.bf16 %v3543_v32  ;;  %v3544_v36 = vunpack.i.l.bf16 %v3543_v32  ;;  %v1266_v63 = vsel %vm1263_vm5, %v1262_v39, %v1244_v33  ;;  %v3071_v32 = vld [vmem:[%s4513_s3 + $0x6] ss:$0 sm:$0xff] }
 0xa2f   : > { %v1261_v41 = vsel %vm569_vm2, %v4015_v13, %v3545_v35  ;;  %v1260_v42 = vsel %vm569_vm2, %v4013_v5, %v3544_v36  ;;  %v3066_v5 = vld [vmem:[%s4513_s3 + $0x5] ss:$0 sm:$0xff] }
 0xa34   : > { %v3548_v34 = vpop.permute.xlu0 %3547  ;;  %v1256_v58 = vpop.permute.xlu1 %1255 }
 0xa35   : > { %v3550_v37 = vunpack.i.h.bf16 %v3548_v34  ;;  %v3549_v38 = vunpack.i.l.bf16 %v3548_v34  ;;  %v1269_v47 = vsel %vm630_vm3, %v1266_v63, %v1256_v58 }
 0xa36   : > { %v1271_v50 = vpack.c.bf16 %v1269_v47, %v1269_v47  ;;  %v3597_v47 = vld [vmem:[%s4512_s2 + $0xb0] sm:$0xff]  }
 0xa37   : > { %v1265_v45 = vsel %vm1263_vm5, %v1261_v41, %v3550_v37  ;;  %v1264_v46 = vsel %vm1263_vm5, %v1260_v42, %v3549_v38  ;;  %v3072_v38 = vld [vmem:[%s4513_s3 + $0x7] ss:$0 sm:$0xff] }
 0xa3c   : > { %v3553_v40 = vpop.permute.xlu0 %3552 }
 0xa3d   : > { %v3555_v43 = vunpack.i.h.bf16 %v3553_v40  ;;  %v3554_v44 = vunpack.i.l.bf16 %v3553_v40 }
 0xa3f   : > { %v1268_v4 = vsel %vm630_vm3, %v1265_v45, %v3555_v43  ;;  %v1267_v48 = vsel %vm630_vm3, %v1264_v46, %v3554_v44  ;;  %v3594_v44 = vld [vmem:[%s4512_s2 + $0xc8] sm:$0xff]   ;;  %v3595_v45 = vld [vmem:[%s4512_s2 + $0xc0] sm:$0xff]   ;;  %v3596_v46 = vld [vmem:[%s4512_s2 + $0xb8] sm:$0xff]  }
 0xa40   : > { %v1270_v49 = vpack.c.bf16 %v1268_v4, %v1267_v48  ;;  %v3598_v4 = vld [vmem:[%s4512_s2 + $0xa8] sm:$0xff]   ;;  %v3599_v48 = vld [vmem:[%s4512_s2 + $0xa0] sm:$0xff]  }
 0xa42   : > { %3335 = vmatprep.mubr.msk.bf16.mxu1 %vm369_vm1, %v1270_v49  ;;  %v3600_v49 = vld [vmem:[%s4512_s2 + $0x98] sm:$0xff]  }
 0xa43   : > { %3336 = vmatmul.mubr.msk.bf16.vlgmr.msra.gmra.mxu1 %vm369_vm1, %v1271_v50  ;;  %v3601_v50 = vld [vmem:[%s4512_s2 + $0x90] sm:$0xff]  }
 0xa44   : > { %3340 = vmatpush3.bf16.msra.mxu1 %v3592_v19 }
 0xa45   : > { %3341 = vmatprep.subr.bf16.mxu1 %v3593_v20 }
 0xa48   : > { %3342 = vmatpush3.bf16.msra.mxu1 %v3593_v20 }
 0xa49   : > { %3347 = vmatprep.subr.bf16.mxu1 %v3594_v44 }
 0xb03   : > { %v3337_v13 = vpop.f32.mrf.mxu1 }
 0xb04   : > { %v1342_v52 = vadd.f32 %v3337_v13, %v3066_v5  ;;  %v3073_v13 = vld [vmem:[%s4513_s3 + $0x8] ss:$0 sm:$0xff] }
 0xb05   : > { %v1333_v51 = vpop.f32.mrf.mxu1 }
 0xb06   : > { %v1334_v7 = vadd.f32 %v3066_v5, %v1333_v51  ;;  %v4129_v56 = vadd.f32 %v1342_v52, %v3904_v10 }
 0xb07   : > { %v3338_v53 = vpop.f32.mrf.mxu1 }
 0xb08   : > { %v4126_v54 = vadd.f32 %v1334_v7, %v3896_v1  ;;  %v1358_v62 = vsel %vm369_vm1, %v4129_v56, 0.0 }
 0xb09   : > { %v1336_v55 = vpop.f32.mrf.mxu1 }
 0xb0a   : > { %v1337_v57 = vadd.f32 %v3066_v5, %v1336_v55  ;;  %v1352_v59 = vsel %vm369_vm1, %v4126_v54, 0.0 }
 0xb0b   : > { %1353 = vadd.xlane.f32.xlu0 %v1352_v59 }
 0xb0c   : > { %v4134_v60 = vadd.f32 %v1337_v57, %v3900_v6 }
 0xb0e   : > { %v1355_v61 = vsel %vm369_vm1, %v4134_v60, 0.0 }
 0xb0f   : > { %1356 = vadd.xlane.f32.xlu1 %v1355_v61  ;;  %1359 = vadd.xlane.f32.xlu0 %v1358_v62 }
 0xb94   : > { %v1354_v1 = vpop.xlane.xlu0 %1353 }
 0xb95   : > { %v1361_v0 = vmul.f32 0.03125, %v1354_v1 }
 0xb97   : > { %v1364_v10 = vsub.f32 %v4126_v54, %v1361_v0 }
 0xb98   : > { %v1357_v2 = vpop.xlane.xlu1 %1356  ;;  %v1360_v3 = vpop.xlane.xlu0 %1359 }
 0xb99   : > { %v1362_v8 = vmul.f32 0.03125, %v1357_v2  ;;  %v1363_v9 = vmul.f32 0.03125, %v1360_v3  ;;  %v1367_v11 = vmul.f32 %v1364_v10, %v1364_v10 }
 0xb9b   : > { %v1365_v6 = vsub.f32 %v4134_v60, %v1362_v8  ;;  %v1366_v12 = vsub.f32 %v4129_v56, %v1363_v9  ;;  %v1370_v14 = vsel %vm369_vm1, %v1367_v11, 0.0 }
 0xb9c   : > { %1371 = vadd.xlane.f32.xlu0 %v1370_v14 }
 0xb9d   : > { %v1368_v15 = vmul.f32 %v1365_v6, %v1365_v6  ;;  %v1369_v16 = vmul.f32 %v1366_v12, %v1366_v12 }
 0xb9f   : > { %v1373_v17 = vsel %vm369_vm1, %v1368_v15, 0.0  ;;  %v1376_v18 = vsel %vm369_vm1, %v1369_v16, 0.0 }
 0xba0   : > { %1374 = vadd.xlane.f32.xlu0 %v1373_v17  ;;  %1377 = vadd.xlane.f32.xlu1 %v1376_v18 }
 0xc25   : > { %v1372_v21 = vpop.xlane.xlu0 %1371 }
 0xc26   : > { %v1379_v22 = vmul.f32 0.03125, %v1372_v21 }
 0xc28   : > { %v1382_v23 = vadd.f32 1e-05, %v1379_v22  ;;  %v3081_v22 = vld [vmem:[%s4513_s3 + $0x9] ss:$0 sm:$0xff] }
 0xc29   : > { %v1378_v24 = vpop.xlane.xlu1 %1377  ;;  %v1375_v25 = vpop.xlane.xlu0 %1374 }
 0xc2a   : > { %3680 = vrsqrt.f32 %v1382_v23  ;;  %v1381_v26 = vmul.f32 0.03125, %v1378_v24  ;;  %v1380_v27 = vmul.f32 0.03125, %v1375_v25 }
 0xc2c   : > { %v1384_v28 = vadd.f32 1e-05, %v1381_v26  ;;  %v1383_v29 = vadd.f32 1e-05, %v1380_v27 }
 0xc2e   : > { %3682 = vrsqrt.f32 %v1384_v28 }
 0xc2f   : > { %3684 = vrsqrt.f32 %v1383_v29 }
 0xc37   : > { %v3681_v30 = vpop.eup %3680 }
 0xc38   : > { %v1388_v31 = vmul.f32 %v3681_v30, %v1364_v10 }
 0xc3a   : > { %v1395_v37 = vmul.f32 %v3071_v32, %v1388_v31 }
 0xc3b   : > { %v3683_v33 = vpop.eup %3682 }
 0xc3c   : > { %v3685_v34 = vpop.eup %3684  ;;  %v1390_v35 = vmul.f32 %v3683_v33, %v1366_v12  ;;  %v1402_v40 = vadd.f32 %v3072_v38, %v1395_v37 }
 0xc3d   : > { %v1389_v36 = vmul.f32 %v3685_v34, %v1365_v6 }
 0xc3e   : > { %v1397_v39 = vmul.f32 %v3071_v32, %v1390_v35 }
 0xc3f   : > { %v1396_v58 = vmul.f32 %v3071_v32, %v1389_v36 }
 0xc40   : > { %v1404_v63 = vadd.f32 %v3072_v38, %v1397_v39 }
 0xc41   : > { %v1403_v41 = vadd.f32 %v3072_v38, %v1396_v58 }
 0xc42   : > { %v1406_v42 = vpack.c.bf16 %v1404_v63, %v1404_v63 }
 0xc43   : > { %v1405_v43 = vpack.c.bf16 %v1403_v41, %v1402_v40 }
 0xc45   : > { %3343 = vmatprep.mubr.msk.bf16.mxu1 %vm369_vm1, %v1405_v43 }
 0xc46   : > { %3344 = vmatmul.mubr.msk.bf16.vlgmr.msra.gmra.mxu1 %vm369_vm1, %v1406_v42 }
 0xc47   : > { %3348 = vmatpush3.bf16.msra.mxu1 %v3594_v44 }
 0xc48   : > { %3349 = vmatprep.subr.bf16.mxu1 %v3595_v45 }
 0xc4b   : > { %3350 = vmatpush3.bf16.msra.mxu1 %v3595_v45  ;;  %v3602_v45 = vld [vmem:[%s4512_s2 + $0xd8] sm:$0xff]  }
 0xc4c   : > { %3351 = vmatprep.subr.bf16.mxu1 %v3596_v46  ;;  %3367 = vmatprep.subr.bf16.mxu0 %v3602_v45 }
 0xc4d   : > { %3368 = vmatpush3.bf16.msra.mxu0 %v3602_v45 }
 0xc4f   : > { %3352 = vmatpush3.bf16.msra.mxu1 %v3596_v46  ;;  %v3603_v46 = vld [vmem:[%s4512_s2 + $0xd0] sm:$0xff]  }
 0xc50   : > { %3353 = vmatprep.subr.bf16.mxu1 %v3597_v47  ;;  %3369 = vmatprep.subr.bf16.mxu0 %v3603_v46 }
 0xc51   : > { %3370 = vmatpush3.bf16.msra.mxu0 %v3603_v46 }
 0xc53   : > { %3354 = vmatpush3.bf16.msra.mxu1 %v3597_v47 }
 0xc54   : > { %3355 = vmatprep.subr.bf16.mxu1 %v3598_v4 }
 0xc57   : > { %3356 = vmatpush3.bf16.msra.mxu1 %v3598_v4 }
 0xc58   : > { %3357 = vmatprep.subr.bf16.mxu1 %v3599_v48 }
 0xc5b   : > { %3358 = vmatpush3.bf16.msra.mxu1 %v3599_v48 }
 0xc5c   : > { %3359 = vmatprep.subr.bf16.mxu1 %v3600_v49 }
 0xc5f   : > { %3360 = vmatpush3.bf16.msra.mxu1 %v3600_v49 }
 0xc60   : > { %3361 = vmatprep.subr.bf16.mxu1 %v3601_v50 }
 0xc63   : > { %3362 = vmatpush3.bf16.msra.mxu1 %v3601_v50 }
 0xd06   : > { %v3345_v5 = vpop.f32.mrf.mxu1 }
 0xd07   : > { %v1477_v51 = vadd.f32 %v3345_v5, %v3073_v13 }
 0xd08   : > { %v1468_v52 = vpop.f32.mrf.mxu1 }
 0xd09   : > { %v3080_v7 = vmul.f32 -1.702, %v1477_v51  ;;  %v1469_v53 = vadd.f32 %v3073_v13, %v1468_v52 }
 0xd0a   : > { %v3346_v55 = vpop.f32.mrf.mxu1 }
 0xd0b   : > { %v1492_v57 = vmul.f32 1.442695, %v3080_v7  ;;  %v3078_v59 = vmul.f32 -1.702, %v1469_v53  ;;  %v3090_v55 = vld [vmem:[%s4513_s3 + $0xa] ss:$0 sm:$0xff] }
 0xd0c   : > { %v1471_v61 = vpop.f32.mrf.mxu1 }
 0xd0d   : > { %3686 = vpow2.f32 %v1492_v57  ;;  %v1488_v62 = vmul.f32 1.442695, %v3078_v59  ;;  %v1472_v1 = vadd.f32 %v3073_v13, %v1471_v61 }
 0xd0f   : > { %3688 = vpow2.f32 %v1488_v62  ;;  %v3079_v0 = vmul.f32 -1.702, %v1472_v1 }
 0xd11   : > { %v1490_v10 = vmul.f32 1.442695, %v3079_v0  ;;  %v3091_v0 = vld [vmem:[%s4513_s3 + $0xb] ss:$0 sm:$0xff] }
 0xd13   : > { %3690 = vpow2.f32 %v1490_v10 }
 0xd1a   : > { %v3687_v2 = vpop.eup %3686 }
 0xd1b   : > { %v1496_v8 = vadd.f32 1.0, %v3687_v2 }
 0xd1c   : > { %v3689_v3 = vpop.eup %3688 }
 0xd1d   : > { %v1494_v9 = vadd.f32 1.0, %v3689_v3  ;;  %3692 = vrcp.f32 %v1496_v8 }
 0xd1f   : > { %3694 = vrcp.f32 %v1494_v9 }
 0xd20   : > { %v3691_v11 = vpop.eup %3690 }
 0xd21   : > { %v1495_v6 = vadd.f32 1.0, %v3691_v11 }
 0xd23   : > { %3696 = vrcp.f32 %v1495_v6 }
 0xd2a   : > { %v3693_v12 = vpop.eup %3692 }
 0xd2b   : > { %v1505_v16 = vmul.f32 %v3693_v12, %v1477_v51  ;;  %v3092_v12 = vld [vmem:[%s4513_s3 + $0xc] ss:$0 sm:$0xff] }
 0xd2c   : > { %v3695_v14 = vpop.eup %3694 }
 0xd2d   : > { %v1503_v17 = vmul.f32 %v3695_v14, %v1469_v53  ;;  %v1507_v20 = vpack.c.bf16 %v1505_v16, %v1505_v16 }
 0xd30   : > { %v3697_v15 = vpop.eup %3696 }
 0xd31   : > { %v1504_v18 = vmul.f32 %v3697_v15, %v1472_v1 }
 0xd33   : > { %v1506_v19 = vpack.c.bf16 %v1504_v18, %v1503_v17 }
 0xd35   : > { %3363 = vmatprep.mubr.bf16.mxu1 %v1506_v19 }
 0xd36   : > { %3364 = vmatmul.mubr.bf16.vlgmr.msra.gmra.mxu1 %v1507_v20 }
 0xdf6   : > { %v3365_v21 = vpop.f32.mrf.mxu1 }
 0xdf7   : > { %v1620_v24 = vadd.f32 %v3365_v21, %v3081_v22 }
 0xdf8   : > { %v1611_v23 = vpop.f32.mrf.mxu1 }
 0xdf9   : > { %v1612_v25 = vadd.f32 %v3081_v22, %v1611_v23  ;;  %v4194_v29 = vadd.f32 %v1620_v24, %v4129_v56 }
 0xdfa   : > { %v3366_v26 = vpop.f32.mrf.mxu1 }
 0xdfb   : > { %v4191_v27 = vadd.f32 %v1612_v25, %v4126_v54  ;;  %v1636_v34 = vsel %vm369_vm1, %v4194_v29, 0.0 }
 0xdfc   : > { %v1614_v28 = vpop.f32.mrf.mxu1 }
 0xdfd   : > { %v1615_v30 = vadd.f32 %v3081_v22, %v1614_v28  ;;  %v1630_v31 = vsel %vm369_vm1, %v4191_v27, 0.0 }
 0xdfe   : > { %1631 = vadd.xlane.f32.xlu0 %v1630_v31 }
 0xdff   : > { %v4199_v32 = vadd.f32 %v1615_v30, %v4134_v60 }
 0xe01   : > { %v1633_v33 = vsel %vm369_vm1, %v4199_v32, 0.0 }
 0xe02   : > { %1634 = vadd.xlane.f32.xlu1 %v1633_v33  ;;  %1637 = vadd.xlane.f32.xlu0 %v1636_v34 }
 0xe87   : > { %v1632_v54 = vpop.xlane.xlu0 %1631 }
 0xe88   : > { %v1639_v35 = vmul.f32 0.03125, %v1632_v54 }
 0xe8a   : > { %v1642_v56 = vsub.f32 %v4191_v27, %v1639_v35 }
 0xe8b   : > { %v1635_v36 = vpop.xlane.xlu1 %1634  ;;  %v1638_v37 = vpop.xlane.xlu0 %1637 }
 0xe8c   : > { %v1640_v38 = vmul.f32 0.03125, %v1635_v36  ;;  %v1641_v39 = vmul.f32 0.03125, %v1638_v37  ;;  %v1645_v58 = vmul.f32 %v1642_v56, %v1642_v56  ;;  %v4261_v36 = vld [vmem:[%s4513_s3 + $0x17] ss:$0 sm:$0xff] }
 0xe8e   : > { %v1643_v60 = vsub.f32 %v4199_v32, %v1640_v38  ;;  %v1644_v63 = vsub.f32 %v4194_v29, %v1641_v39  ;;  %v1648_v40 = vsel %vm369_vm1, %v1645_v58, 0.0 }
 0xe8f   : > { %1649 = vadd.xlane.f32.xlu1 %v1648_v40 }
 0xe90   : > { %v1646_v41 = vmul.f32 %v1643_v60, %v1643_v60  ;;  %v1647_v42 = vmul.f32 %v1644_v63, %v1644_v63 }
 0xe92   : > { %v1651_v43 = vsel %vm369_vm1, %v1646_v41, 0.0  ;;  %v1654_v44 = vsel %vm369_vm1, %v1647_v42, 0.0 }
 0xe93   : > { %1652 = vadd.xlane.f32.xlu0 %v1651_v43  ;;  %1655 = vadd.xlane.f32.xlu1 %v1654_v44 }
 0xf18   : > { %v1650_v47 = vpop.xlane.xlu1 %1649 }
 0xf19   : > { %v1657_v4 = vmul.f32 0.03125, %v1650_v47 }
 0xf1b   : > { %v1660_v48 = vadd.f32 1e-05, %v1657_v4 }
 0xf1c   : > { %v1656_v49 = vpop.xlane.xlu1 %1655  ;;  %v1653_v50 = vpop.xlane.xlu0 %1652 }
 0xf1d   : > { %3698 = vrsqrt.f32 %v1660_v48  ;;  %v1659_v13 = vmul.f32 0.03125, %v1656_v49  ;;  %v1658_v5 = vmul.f32 0.03125, %v1653_v50 }
 0xf1f   : > { %v1662_v51 = vadd.f32 1e-05, %v1659_v13  ;;  %v1661_v52 = vadd.f32 1e-05, %v1658_v5 }
 0xf21   : > { %3700 = vrsqrt.f32 %v1662_v51 }
 0xf22   : > { %3702 = vrsqrt.f32 %v1661_v52 }
 0xf2a   : > { %v3699_v7 = vpop.eup %3698 }
 0xf2b   : > { %v1666_v53 = vmul.f32 %v3699_v7, %v1642_v56 }
 0xf2d   : > { %v1673_v1 = vmul.f32 %v3090_v55, %v1666_v53 }
 0xf2e   : > { %v3701_v57 = vpop.eup %3700 }
 0xf2f   : > { %v3703_v59 = vpop.eup %3702  ;;  %v1668_v61 = vmul.f32 %v3701_v57, %v1644_v63  ;;  %v1680_v8 = vadd.f32 %v3091_v0, %v1673_v1 }
 0xf30   : > { %v1667_v62 = vmul.f32 %v3703_v59, %v1643_v60 }
 0xf31   : > { %v1675_v10 = vmul.f32 %v3090_v55, %v1668_v61 }
 0xf32   : > { %v1674_v2 = vmul.f32 %v3090_v55, %v1667_v62 }
 0xf33   : > { %v1682_v3 = vadd.f32 %v3091_v0, %v1675_v10 }
 0xf34   : > { %v1681_v9 = vadd.f32 %v3091_v0, %v1674_v2 }
 0xf35   : > { %v1684_v11 = vpack.c.bf16 %v1682_v3, %v1682_v3 }
 0xf36   : > { %v1683_v6 = vpack.c.bf16 %v1681_v9, %v1680_v8 }
 0xf38   : > { %3371 = vmatprep.mubr.msk.bf16.mxu0 %vm369_vm1, %v1683_v6 }
 0xf39   : > { %3372 = vmatmul.mubr.msk.bf16.vlgmr.msra.gmra.mxu0 %vm369_vm1, %v1684_v11 }
 0xff9   : > { %v3373_v14 = vpop.f32.mrf.mxu0 }
 0xffa   : > { %v1755_v15 = vadd.f32 %v3373_v14, %v3092_v12 }
 0xffb   : > { %v1746_v16 = vpop.f32.mrf.mxu0 }
 0xffc   : > { %v4228_v17 = vpack.c.bf16 %v1755_v15, %v1755_v15  ;;  %v1747_v20 = vadd.f32 %v3092_v12, %v1746_v16 }
 0xffd   : > { %v3374_v18 = vpop.f32.mrf.mxu0 }
 0xffe   : > { %1766 = vrot.lane.b32.xlu0 %v4228_v17, %s3782_s17 }
 0xfff   : > { %v1749_v19 = vpop.f32.mrf.mxu0 }
0x1000   : > { %v1750_v21 = vadd.f32 %v3092_v12, %v1749_v19 }
0x1002   : > { %v4232_v22 = vpack.c.bf16 %v1750_v21, %v1747_v20 }
0x1004   : > { %1925 = vrot.lane.b32.xlu0 %v4232_v22, %s3785_s22  ;;  %1764 = vrot.lane.b32.xlu1 %v4232_v22, %s3782_s17 }
0x1005   : > { %3379 = vmatprep.mubr.msk.bf16.mxu0 %vm569_vm2, %v4232_v22 }
0x1008   : > { %1931 = vrot.lane.b32.xlu1 %v4228_v17, %s3784_s21 }
0x100c   : > { %1929 = vrot.lane.b32.xlu1 %v4232_v22, %s3784_s21 }
0x1010   : > { %1927 = vrot.lane.b32.xlu1 %v4228_v17, %s3785_s22 }
0x1070   : > { %v1767_v23 = vpop.permute.xlu0 %1766 }
0x1071   : > { %v1778_v24 = vsel %vm569_vm2, %v1767_v23, 0  ;;  %3503 = vmatprep.subr.msk.bf16.mxu0 %vm569_vm2, %v1767_v23 }
0x1072   : > { %3376 = vmatpush3.bf16.xpose.msra.mxu0 %v1778_v24 }
0x1076   : > { %v1926_v25 = vpop.permute.xlu0 %1925  ;;  %v1765_v26 = vpop.permute.xlu1 %1764 }
0x1077   : > { %3504 = vmatprep.subr.msk.bf16.mxu0 %vm569_vm2, %v1765_v26  ;;  %3395 = vmatprep.mubr.msk.bf16.mxu1 %vm569_vm2, %v1926_v25  ;;  %v1775_v28 = vsel %vm569_vm2, %v1765_v26, 0 }
0x107a   : > { %3378 = vmatpush3.bf16.xpose.msra.mxu0 %v1775_v28  ;;  %v1932_v30 = vpop.permute.xlu1 %1931 }
0x107b   : > { %v1943_v31 = vsel %vm569_vm2, %v1932_v30, 0  ;;  %3506 = vmatprep.subr.msk.bf16.mxu1 %vm569_vm2, %v1932_v30 }
0x107c   : > { %3392 = vmatpush3.bf16.xpose.msra.mxu1 %v1943_v31 }
0x107e   : > { %v1930_v33 = vpop.permute.xlu1 %1929 }
0x107f   : > { %3507 = vmatprep.subr.msk.bf16.mxu1 %vm569_vm2, %v1930_v33  ;;  %v1940_v34 = vsel %vm569_vm2, %v1930_v33, 0 }
0x1081   : > { %3380 = vmatmul.mubr.msk.bf16.vlgmr.msra.gmra.mxu0 %vm569_vm2, %v4228_v17 }
0x1082   : > { %v1928_v54 = vpop.permute.xlu1 %1927 }
0x1084   : > { %3394 = vmatpush3.bf16.xpose.msra.mxu1 %v1940_v34 }
0x108b   : > { %3396 = vmatmul.mubr.msk.bf16.vlgmr.msra.gmra.mxu1 %vm569_vm2, %v1928_v54 }
0x1141   : > { %v3381_v35 = vpop.f32.mrf.mxu0 }
0x1142   : > { %v1823_v39 = vadd.f32 %v4261_v36, %v3381_v35 }
0x1143   : > { %v1814_v56 = vpop.f32.mrf.mxu0 }
0x1144   : > { %v1815_v37 = vadd.f32 %v4261_v36, %v1814_v56  ;;  %v1834_v41 = vsel %vm630_vm3, %v1823_v39, -inf }
0x1145   : > { %v3382_v38 = vpop.f32.mrf.mxu0 }
0x1146   : > { %v1828_v58 = vsel %vm630_vm3, %v1815_v37, -inf }
0x1147   : > { %v1817_v60 = vpop.f32.mrf.mxu0  ;;  %1829 = vmax.xlane.f32.xlu0 %v1828_v58 }
0x1148   : > { %v1818_v63 = vadd.f32 %v4261_v36, %v1817_v60 }
0x114a   : > { %v1831_v40 = vsel %vm630_vm3, %v1818_v63, -inf }
0x114b   : > { %v3397_v42 = vpop.f32.mrf.mxu1  ;;  %1832 = vmax.xlane.f32.xlu1 %v1831_v40  ;;  %1835 = vmax.xlane.f32.xlu0 %v1834_v41 }
0x114c   : > { %v1988_v43 = vadd.f32 %v4261_v36, %v3397_v42 }
0x114d   : > { %v1979_v44 = vpop.f32.mrf.mxu1 }
0x114e   : > { %v1980_v45 = vadd.f32 %v4261_v36, %v1979_v44  ;;  %v1999_v46 = vsel %vm630_vm3, %v1988_v43, -inf }
0x114f   : > { %v3398_v47 = vpop.f32.mrf.mxu1  ;;  %2000 = vmax.xlane.f32.xlu1 %v1999_v46 }
0x1150   : > { %v1993_v4 = vsel %vm630_vm3, %v1980_v45, -inf }
0x1151   : > { %v1982_v48 = vpop.f32.mrf.mxu1  ;;  %1994 = vmax.xlane.f32.xlu0 %v1993_v4 }
0x1152   : > { %v1983_v49 = vadd.f32 %v4261_v36, %v1982_v48 }
0x1154   : > { %v1996_v50 = vsel %vm630_vm3, %v1983_v49, -inf }
0x1155   : > { %1997 = vmax.xlane.f32.xlu0 %v1996_v50 }
0x11d0   : > { %v1830_v13 = vpop.xlane.xlu0 %1829 }
0x11d1   : > { %v1837_v5 = vsub.f32 %v1815_v37, %v1830_v13 }
0x11d3   : > { %v1840_v55 = vmul.f32 1.442695, %v1837_v5 }
0x11d4   : > { %v1833_v51 = vpop.xlane.xlu1 %1832  ;;  %v1836_v52 = vpop.xlane.xlu0 %1835 }
0x11d5   : > { %v1839_v7 = vsub.f32 %v1823_v39, %v1836_v52  ;;  %v1838_v14 = vsub.f32 %v1818_v63, %v1833_v51 }
0x11d7   : > { %v1844_v53 = vmul.f32 1.442695, %v1839_v7  ;;  %v1842_v16 = vmul.f32 1.442695, %v1838_v14 }
0x11d8   : > { %v2001_v57 = vpop.xlane.xlu1 %2000 }
0x11d9   : > { %v2004_v59 = vsub.f32 %v1988_v43, %v2001_v57  ;;  %3704 = vpow2.f32 %v1844_v53 }
0x11da   : > { %3706 = vpow2.f32 %v1840_v55  ;;  %v1995_v8 = vpop.xlane.xlu0 %1994 }
0x11db   : > { %v2009_v61 = vmul.f32 1.442695, %v2004_v59  ;;  %v2002_v6 = vsub.f32 %v1980_v45, %v1995_v8 }
0x11dd   : > { %3708 = vpow2.f32 %v2009_v61  ;;  %v2005_v15 = vmul.f32 1.442695, %v2002_v6 }
0x11de   : > { %v1998_v9 = vpop.xlane.xlu0 %1997 }
0x11df   : > { %v2003_v11 = vsub.f32 %v1983_v49, %v1998_v9 }
0x11e1   : > { %v2007_v12 = vmul.f32 1.442695, %v2003_v11 }
0x11e3   : > { %3710 = vpow2.f32 %v2007_v12 }
0x11e4   : > { %3712 = vpow2.f32 %v2005_v15 }
0x11e5   : > { %3714 = vpow2.f32 %v1842_v16 }
0x11e6   : > { %v4275_v62 = vpop.eup %3704 }
0x11e7   : > { %v1852_v1 = vsel %vm630_vm3, %v4275_v62, 0.0  ;;  %v3707_v0 = vpop.eup %3706 }
0x11e8   : > { %1853 = vadd.xlane.f32.xlu0 %v1852_v1  ;;  %v1846_v3 = vsel %vm630_vm3, %v3707_v0, 0.0 }
0x11ea   : > { %v4279_v10 = vpop.eup %3708 }
0x11eb   : > { %v2017_v2 = vsel %vm630_vm3, %v4279_v10, 0.0 }
0x11ec   : > { %2018 = vadd.xlane.f32.xlu1 %v2017_v2  ;;  %1847 = vadd.xlane.f32.xlu0 %v1846_v3 }
0x11f0   : > { %v3711_v18 = vpop.eup %3710 }
0x11f1   : > { %v3713_v19 = vpop.eup %3712  ;;  %v2014_v20 = vsel %vm630_vm3, %v3711_v18, 0.0 }
0x11f2   : > { %v2011_v21 = vsel %vm630_vm3, %v3713_v19, 0.0  ;;  %v3715_v23 = vpop.eup %3714 }
0x11f3   : > { %v1849_v24 = vsel %vm630_vm3, %v3715_v23, 0.0 }
0x11fd   : > { %1863 = vrot.lane.b32.xlu1 %v4232_v22, %s3783_s20 }
0x1201   : > { %2030 = vrot.lane.b32.xlu1 %v4228_v17, %s3790_s27 }
0x1202   : > { %1865 = vrot.lane.b32.xlu0 %v4228_v17, %s3783_s20 }
0x1221   : > { %2015 = vadd.xlane.f32.xlu0 %v2014_v20 }
0x1225   : > { %2012 = vadd.xlane.f32.xlu1 %v2011_v21 }
0x1229   : > { %1850 = vadd.xlane.f32.xlu1 %v1849_v24 }
0x1237   : > { %2096 = vrot.lane.b32.xlu0 %v4228_v17, %s3786_s23 }
0x123a   : > { %2028 = vrot.lane.b32.xlu1 %v4232_v22, %s3790_s27  ;;  %s193_s27 = scalar_lea.vmem %s4514_s4, %s4516_s16 }
0x123b   : > { %2090 = vrot.lane.b32.xlu0 %v4232_v22, %s3787_s24 }
0x123e   : > { %2094 = vrot.lane.b32.xlu1 %v4232_v22, %s3786_s23 }
0x1242   : > { %2092 = vrot.lane.b32.xlu1 %v4228_v17, %s3787_s24 }
0x1271   : > { %v1854_v25 = vpop.xlane.xlu0 %1853 }
0x1272   : > { %3716 = vrcp.f32 %v1854_v25 }
0x1275   : > { %v2019_v26 = vpop.xlane.xlu1 %2018  ;;  %v1848_v28 = vpop.xlane.xlu0 %1847 }
0x1276   : > { %3718 = vrcp.f32 %v1848_v28 }
0x1279   : > { %v1864_v30 = vpop.permute.xlu1 %1863  ;;  %v1866_v31 = vpop.permute.xlu0 %1865 }
0x127a   : > { %v1875_v33 = vsel %vm677_vm4, %v1866_v31, 0  ;;  %3505 = vmatprep.subr.msk.bf16.mxu0 %vm677_vm4, %v1866_v31 }
0x127b   : > { %3384 = vmatpush3.bf16.msra.mxu0 %v1875_v33 }
0x127c   : > { %3385 = vmatprep.subr.bf16.mxu0 %v1864_v30 }
0x127d   : > { %v2031_v34 = vpop.permute.xlu1 %2030 }
0x127e   : > { %v2040_v4 = vsel %vm677_vm4, %v2031_v34, 0 }
0x127f   : > { %3386 = vmatpush3.bf16.msra.mxu0 %v1864_v30  ;;  %v3717_v37 = vpop.eup %3716 }
0x1280   : > { %3508 = vmatprep.subr.msk.bf16.mxu0 %vm677_vm4, %v2031_v34  ;;  %v1860_v63 = vmul.f32 %v3717_v37, %v4275_v62 }
0x1282   : > { %v1862_v45 = vpack.c.bf16 %v1860_v63, %v1860_v63 }
0x1283   : > { %v3719_v38 = vpop.eup %3718 }
0x1284   : > { %v1858_v40 = vmul.f32 %v3719_v38, %v3707_v0 }
0x12aa   : > { %v2016_v35 = vpop.xlane.xlu0 %2015 }
0x12ae   : > { %v2013_v54 = vpop.xlane.xlu1 %2012  ;;  %v2097_v49 = vpop.permute.xlu0 %2096 }
0x12af   : > { %3720 = vrcp.f32 %v2013_v54  ;;  %v2108_v5 = vsel %vm569_vm2, %v2097_v49, 0 }
0x12b0   : > { %3722 = vrcp.f32 %v2016_v35 }
0x12b2   : > { %v1851_v56 = vpop.xlane.xlu1 %1850  ;;  %v2091_v51 = vpop.permute.xlu0 %2090 }
0x12b3   : > { %3724 = vrcp.f32 %v1851_v56 }
0x12b4   : > { %3726 = vrcp.f32 %v2019_v26 }
0x12b6   : > { %v2029_v48 = vpop.permute.xlu1 %2028 }
0x12ba   : > { %v2095_v52 = vpop.permute.xlu1 %2094 }
0x12bb   : > { %v2105_v7 = vsel %vm569_vm2, %v2095_v52, 0 }
0x12bc   : > { %v3721_v39 = vpop.eup %3720 }
0x12bd   : > { %v3723_v58 = vpop.eup %3722  ;;  %v2023_v42 = vmul.f32 %v3721_v39, %v3713_v19 }
0x12be   : > { %v2024_v44 = vmul.f32 %v3723_v58, %v3711_v18  ;;  %v2093_v53 = vpop.permute.xlu1 %2092 }
0x12c0   : > { %v3725_v60 = vpop.eup %3724  ;;  %v2026_v47 = vpack.c.bf16 %v2024_v44, %v2023_v42 }
0x12c1   : > { %v1859_v41 = vmul.f32 %v3725_v60, %v3715_v23  ;;  %v3727_v46 = vpop.eup %3726 }
0x12c2   : > { %v2025_v50 = vmul.f32 %v3727_v46, %v4279_v10 }
0x12c3   : > { %v1861_v43 = vpack.c.bf16 %v1859_v41, %v1858_v40 }
0x12c4   : > { %v2027_v13 = vpack.c.bf16 %v2025_v50, %v2025_v50 }
0x12c5   : > { %3387 = vmatprep.mubr.msk.bf16.mxu0 %vm630_vm3, %v1861_v43 }
0x12c6   : > { %3388 = vmatmul.mubr.msk.bf16.vlgmr.msra.gmra.mxu0 %vm630_vm3, %v1862_v45 }
0x12c7   : > { %3400 = vmatpush3.bf16.msra.mxu0 %v2040_v4  ;;  %3403 = vmatprep.mubr.msk.bf16.mxu0 %vm630_vm3, %v2026_v47 }
0x12c8   : > { %3401 = vmatprep.subr.bf16.mxu0 %v2029_v48 }
0x12cb   : > { %3402 = vmatpush3.bf16.msra.mxu0 %v2029_v48 }
0x12cc   : > { %3509 = vmatprep.subr.msk.bf16.mxu0 %vm569_vm2, %v2097_v49 }
0x12ce   : > { %3404 = vmatmul.mubr.msk.bf16.vlgmr.msra.gmra.mxu0 %vm630_vm3, %v2027_v13 }
0x12cf   : > { %3408 = vmatpush3.bf16.xpose.msra.mxu0 %v2108_v5  ;;  %3411 = vmatprep.mubr.msk.bf16.mxu0 %vm569_vm2, %v2091_v51 }
0x12d0   : > { %3510 = vmatprep.subr.msk.bf16.mxu0 %vm569_vm2, %v2095_v52 }
0x12d7   : > { %3410 = vmatpush3.bf16.xpose.msra.mxu0 %v2105_v7 }
0x12de   : > { %3412 = vmatmul.mubr.msk.bf16.vlgmr.msra.gmra.mxu0 %vm569_vm2, %v2093_v53 }
0x1386   : > { %v4319_v55 = vpop.f32.mrf.mxu0 }
0x1388   : > { %v4321_v57 = vpop.f32.mrf.mxu0 }
0x138a   : > { %v3390_v59 = vpop.f32.mrf.mxu0 }
0x138c   : > { %v4323_v61 = vpop.f32.mrf.mxu0 }
0x138e   : > { %v4325_v62 = vpop.f32.mrf.mxu0 }
0x1390   : > { %v4327_v1 = vpop.f32.mrf.mxu0 }
0x1392   : > { %v3406_v0 = vpop.f32.mrf.mxu0 }
0x1394   : > { %v4329_v10 = vpop.f32.mrf.mxu0 }
0x1395   : > { %v3556_v2 = vpack.i.bf16 %v4329_v10, %v4327_v1 }
0x139e   : > { %v3413_v3 = vpop.f32.mrf.mxu0 }
0x139f   : > { %v2153_v6 = vadd.f32 %v4261_v36, %v3413_v3 }
0x13a0   : > { %v2144_v8 = vpop.f32.mrf.mxu0 }
0x13a1   : > { %v2145_v9 = vadd.f32 %v4261_v36, %v2144_v8  ;;  %v2164_v18 = vsel %vm630_vm3, %v2153_v6, -inf }
0x13a2   : > { %v3414_v11 = vpop.f32.mrf.mxu0 }
0x13a3   : > { %v2158_v12 = vsel %vm630_vm3, %v2145_v9, -inf }
0x13a4   : > { %v2147_v14 = vpop.f32.mrf.mxu0  ;;  %2159 = vmax.xlane.f32.xlu0 %v2158_v12 }
0x13a5   : > { %v2148_v15 = vadd.f32 %v4261_v36, %v2147_v14 }
0x13a7   : > { %v2161_v16 = vsel %vm630_vm3, %v2148_v15, -inf }
0x13a8   : > { %2162 = vmax.xlane.f32.xlu1 %v2161_v16  ;;  %2165 = vmax.xlane.f32.xlu0 %v2164_v18 }
0x142d   : > { %v2160_v19 = vpop.xlane.xlu0 %2159 }
0x142e   : > { %v2167_v20 = vsub.f32 %v2145_v9, %v2160_v19 }
0x1430   : > { %v2170_v21 = vmul.f32 1.442695, %v2167_v20 }
0x1431   : > { %v2163_v23 = vpop.xlane.xlu1 %2162  ;;  %v2166_v24 = vpop.xlane.xlu0 %2165 }
0x1432   : > { %3728 = vpow2.f32 %v2170_v21  ;;  %v2168_v25 = vsub.f32 %v2148_v15, %v2163_v23  ;;  %v2169_v26 = vsub.f32 %v2153_v6, %v2166_v24 }
0x1434   : > { %v2172_v28 = vmul.f32 1.442695, %v2168_v25  ;;  %v2174_v30 = vmul.f32 1.442695, %v2169_v26 }
0x1436   : > { %3730 = vpow2.f32 %v2172_v28 }
0x1437   : > { %3732 = vpow2.f32 %v2174_v30 }
0x143f   : > { %v3729_v31 = vpop.eup %3728 }
0x1440   : > { %v2176_v33 = vsel %vm630_vm3, %v3729_v31, 0.0 }
0x1441   : > { %2177 = vadd.xlane.f32.xlu0 %v2176_v33 }
0x1443   : > { %v3731_v34 = vpop.eup %3730 }
0x1444   : > { %v3733_v54 = vpop.eup %3732  ;;  %v2179_v35 = vsel %vm630_vm3, %v3731_v34, 0.0 }
0x1445   : > { %2180 = vadd.xlane.f32.xlu0 %v2179_v35  ;;  %v2182_v56 = vsel %vm630_vm3, %v3733_v54, 0.0 }
0x1446   : > { %2183 = vadd.xlane.f32.xlu1 %v2182_v56 }
0x1457   : > { %2193 = vrot.lane.b32.xlu1 %v4232_v22, %s3792_s29 }
0x145b   : > { %2261 = vrot.lane.b32.xlu1 %v4228_v17, %s3789_s26  ;;  %2195 = vrot.lane.b32.xlu0 %v4228_v17, %s3792_s29 }
0x145f   : > { %2259 = vrot.lane.b32.xlu1 %v4232_v22, %s3789_s26  ;;  %2255 = vrot.lane.b32.xlu0 %v4232_v22, %s3788_s25 }
0x1463   : > { %2257 = vrot.lane.b32.xlu1 %v4228_v17, %s3788_s25 }
0x14ca   : > { %v2178_v37 = vpop.xlane.xlu0 %2177 }
0x14cb   : > { %3734 = vrcp.f32 %v2178_v37 }
0x14ce   : > { %v2181_v38 = vpop.xlane.xlu0 %2180 }
0x14cf   : > { %v2184_v39 = vpop.xlane.xlu1 %2183  ;;  %3736 = vrcp.f32 %v2181_v38 }
0x14d0   : > { %3738 = vrcp.f32 %v2184_v39 }
0x14d2   : > { %v2196_v58 = vpop.permute.xlu0 %2195 }
0x14d3   : > { %v2194_v60 = vpop.permute.xlu1 %2193  ;;  %v2205_v63 = vsel %vm677_vm4, %v2196_v58, 0  ;;  %3511 = vmatprep.subr.msk.bf16.mxu1 %vm677_vm4, %v2196_v58 }
0x14d4   : > { %3416 = vmatpush3.bf16.msra.mxu1 %v2205_v63 }
0x14d5   : > { %3417 = vmatprep.subr.bf16.mxu1 %v2194_v60 }
0x14d6   : > { %v2256_v49 = vpop.permute.xlu0 %2255 }
0x14d7   : > { %v2262_v40 = vpop.permute.xlu1 %2261 }
0x14d8   : > { %3418 = vmatpush3.bf16.msra.mxu1 %v2194_v60  ;;  %v3735_v41 = vpop.eup %3734  ;;  %v2273_v48 = vsel %vm569_vm2, %v2262_v40, 0 }
0x14d9   : > { %3512 = vmatprep.subr.msk.bf16.mxu1 %vm569_vm2, %v2262_v40  ;;  %v2188_v44 = vmul.f32 %v3735_v41, %v3729_v31  ;;  %v3604_v40 = vld [vmem:[%s4512_s2 + $0xe8] sm:$0xff]   ;;  %v3605_v41 = vld [vmem:[%s4512_s2 + $0xe0] sm:$0xff]  }
0x14db   : > { %v2260_v50 = vpop.permute.xlu1 %2259 }
0x14dc   : > { %v3737_v42 = vpop.eup %3736  ;;  %v2270_v13 = vsel %vm569_vm2, %v2260_v50, 0 }
0x14dd   : > { %v3739_v43 = vpop.eup %3738  ;;  %v2189_v45 = vmul.f32 %v3737_v42, %v3731_v34 }
0x14de   : > { %v2190_v46 = vmul.f32 %v3739_v43, %v3733_v54 }
0x14df   : > { %v2191_v47 = vpack.c.bf16 %v2189_v45, %v2188_v44  ;;  %v2258_v5 = vpop.permute.xlu1 %2257 }
0x14e0   : > { %v2192_v4 = vpack.c.bf16 %v2190_v46, %v2190_v46 }
0x14e1   : > { %3419 = vmatprep.mubr.msk.bf16.mxu1 %vm630_vm3, %v2191_v47 }
0x14e2   : > { %3420 = vmatmul.mubr.msk.bf16.vlgmr.msra.gmra.mxu1 %vm630_vm3, %v2192_v4 }
0x14e3   : > { %3424 = vmatpush3.bf16.xpose.msra.mxu1 %v2273_v48  ;;  %3427 = vmatprep.mubr.msk.bf16.mxu1 %vm569_vm2, %v2256_v49 }
0x14e4   : > { %3513 = vmatprep.subr.msk.bf16.mxu1 %vm569_vm2, %v2260_v50 }
0x14eb   : > { %3426 = vmatpush3.bf16.xpose.msra.mxu1 %v2270_v13 }
0x14f2   : > { %3428 = vmatmul.mubr.msk.bf16.vlgmr.msra.gmra.mxu1 %vm569_vm2, %v2258_v5 }
0x15a2   : > { %v3421_v51 = vpop.f32.mrf.mxu1 }
0x15a4   : > { %v2241_v52 = vpop.f32.mrf.mxu1 }
0x15a6   : > { %v3422_v7 = vpop.f32.mrf.mxu1 }
0x15a8   : > { %v2244_v53 = vpop.f32.mrf.mxu1 }
0x15a9   : > { %v3561_v59 = vpack.i.bf16 %v2244_v53, %v2241_v52 }
0x15b2   : > { %v3429_v0 = vpop.f32.mrf.mxu1 }
0x15b3   : > { %v2318_v11 = vadd.f32 %v4261_v36, %v3429_v0 }
0x15b4   : > { %v2309_v3 = vpop.f32.mrf.mxu1 }
0x15b5   : > { %v2310_v8 = vadd.f32 %v4261_v36, %v2309_v3  ;;  %v2329_v16 = vsel %vm630_vm3, %v2318_v11, -inf }
0x15b6   : > { %v3430_v9 = vpop.f32.mrf.mxu1 }
0x15b7   : > { %v2323_v6 = vsel %vm630_vm3, %v2310_v8, -inf }
0x15b8   : > { %v2312_v12 = vpop.f32.mrf.mxu1  ;;  %2324 = vmax.xlane.f32.xlu0 %v2323_v6 }
0x15b9   : > { %v2313_v14 = vadd.f32 %v4261_v36, %v2312_v12 }
0x15bb   : > { %v2326_v15 = vsel %vm630_vm3, %v2313_v14, -inf }
0x15bc   : > { %2327 = vmax.xlane.f32.xlu1 %v2326_v15  ;;  %2330 = vmax.xlane.f32.xlu0 %v2329_v16  ;;  %v3113_v16 = vld [vmem:[%s4513_s3 + $0xd] ss:$0 sm:$0xff] }
0x1641   : > { %v2325_v18 = vpop.xlane.xlu0 %2324 }
0x1642   : > { %v2332_v19 = vsub.f32 %v2310_v8, %v2325_v18 }
0x1644   : > { %v2335_v20 = vmul.f32 1.442695, %v2332_v19 }
0x1645   : > { %v2328_v21 = vpop.xlane.xlu1 %2327  ;;  %v2331_v23 = vpop.xlane.xlu0 %2330 }
0x1646   : > { %3740 = vpow2.f32 %v2335_v20  ;;  %v2333_v24 = vsub.f32 %v2313_v14, %v2328_v21  ;;  %v2334_v25 = vsub.f32 %v2318_v11, %v2331_v23 }
0x1648   : > { %v2337_v26 = vmul.f32 1.442695, %v2333_v24  ;;  %v2339_v28 = vmul.f32 1.442695, %v2334_v25 }
0x164a   : > { %3742 = vpow2.f32 %v2337_v26 }
0x164b   : > { %3744 = vpow2.f32 %v2339_v28 }
0x1653   : > { %v3741_v30 = vpop.eup %3740 }
0x1654   : > { %v2341_v36 = vsel %vm630_vm3, %v3741_v30, 0.0 }
0x1655   : > { %2342 = vadd.xlane.f32.xlu0 %v2341_v36 }
0x1657   : > { %v3743_v31 = vpop.eup %3742 }
0x1658   : > { %v3745_v33 = vpop.eup %3744  ;;  %v2344_v34 = vsel %vm630_vm3, %v3743_v31, 0.0 }
0x1659   : > { %2345 = vadd.xlane.f32.xlu0 %v2344_v34  ;;  %v2347_v54 = vsel %vm630_vm3, %v3745_v33, 0.0 }
0x165a   : > { %2348 = vadd.xlane.f32.xlu1 %v2347_v54 }
0x166b   : > { %2358 = vrot.lane.b32.xlu1 %v4232_v22, %s3791_s28 }
0x166f   : > { %3557 = vrot.lane.b32.xlu1 %v3556_v2, %s3793_s30  ;;  %2360 = vrot.lane.b32.xlu0 %v4228_v17, %s3791_s28 }
0x1673   : > { %2427 = vrot.lane.b32.xlu1 %v4325_v62, %s3793_s30  ;;  %3562 = vrot.lane.b32.xlu0 %v3561_v59, %s3794_s7 }
0x1677   : > { %2439 = vrot.lane.b32.xlu1 %v3421_v51, %s3794_s7 }
0x16de   : > { %v2343_v35 = vpop.xlane.xlu0 %2342 }
0x16df   : > { %3746 = vrcp.f32 %v2343_v35 }
0x16e2   : > { %v2346_v56 = vpop.xlane.xlu0 %2345 }
0x16e3   : > { %v2349_v37 = vpop.xlane.xlu1 %2348  ;;  %3748 = vrcp.f32 %v2346_v56 }
0x16e4   : > { %3750 = vrcp.f32 %v2349_v37 }
0x16e6   : > { %v2361_v22 = vpop.permute.xlu0 %2360 }
0x16e7   : > { %v2370_v1 = vsel %vm677_vm4, %v2361_v22, 0  ;;  %3514 = vmatprep.subr.msk.bf16.mxu0 %vm677_vm4, %v2361_v22  ;;  %v2359_v10 = vpop.permute.xlu1 %2358 }
0x16e8   : > { %3432 = vmatpush3.bf16.msra.mxu0 %v2370_v1 }
0x16e9   : > { %3433 = vmatprep.subr.bf16.mxu0 %v2359_v10 }
0x16ea   : > { %v3563_v50 = vpop.permute.xlu0 %3562 }
0x16eb   : > { %v3558_v47 = vpop.permute.xlu1 %3557  ;;  %v3565_v5 = vunpack.i.h.bf16 %v3563_v50  ;;  %v3564_v51 = vunpack.i.l.bf16 %v3563_v50 }
0x16ec   : > { %3434 = vmatpush3.bf16.msra.mxu0 %v2359_v10  ;;  %v3747_v17 = vpop.eup %3746  ;;  %v3560_v48 = vunpack.i.h.bf16 %v3558_v47  ;;  %v3559_v49 = vunpack.i.l.bf16 %v3558_v47 }
0x16ed   : > { %v2353_v38 = vmul.f32 %v3747_v17, %v3741_v30  ;;  %3439 = vmatprep.subr.bf16.mxu0 %v3604_v40 }
0x16ee   : > { %v2457_v52 = vsel %vm569_vm2, %v4323_v61, %v3560_v48  ;;  %v2456_v7 = vsel %vm569_vm2, %v4321_v57, %v3559_v49 }
0x16ef   : > { %v2428_v4 = vpop.permute.xlu1 %2427  ;;  %v2460_v11 = vsel %vm1263_vm5, %v2457_v52, %v3565_v5  ;;  %v2459_v6 = vsel %vm1263_vm5, %v2456_v7, %v3564_v51  ;;  %v3119_v51 = vld [vmem:[%s4513_s3 + $0xf] ss:$0 sm:$0xff] }
0x16f0   : > { %v3749_v62 = vpop.eup %3748  ;;  %v2458_v59 = vsel %vm569_vm2, %v4319_v55, %v2428_v4  ;;  %v3118_v4 = vld [vmem:[%s4513_s3 + $0xe] ss:$0 sm:$0xff] }
0x16f1   : > { %v3751_v2 = vpop.eup %3750  ;;  %v2354_v39 = vmul.f32 %v3749_v62, %v3743_v31 }
0x16f2   : > { %v2355_v58 = vmul.f32 %v3751_v2, %v3745_v33 }
0x16f3   : > { %v2356_v60 = vpack.c.bf16 %v2354_v39, %v2353_v38  ;;  %v2440_v13 = vpop.permute.xlu1 %2439  ;;  %v3606_v38 = vld [vmem:[%s4512_s2 + $0xf8] sm:$0xff]   ;;  %v3607_v39 = vld [vmem:[%s4512_s2 + $0xf0] sm:$0xff]  }
0x16f4   : > { %v2357_v63 = vpack.c.bf16 %v2355_v58, %v2355_v58  ;;  %v2461_v3 = vsel %vm1263_vm5, %v2458_v59, %v2440_v13  ;;  %3447 = vmatprep.subr.bf16.mxu1 %v3606_v38 }
0x16f5   : > { %3435 = vmatprep.mubr.msk.bf16.mxu0 %vm630_vm3, %v2356_v60  ;;  %3448 = vmatpush3.bf16.msra.mxu1 %v3606_v38 }
0x16f6   : > { %3436 = vmatmul.mubr.msk.bf16.vlgmr.msra.gmra.mxu0 %vm630_vm3, %v2357_v63  ;;  %3449 = vmatprep.subr.bf16.mxu1 %v3607_v39 }
0x16f7   : > { %3440 = vmatpush3.bf16.msra.mxu0 %v3604_v40 }
0x16f8   : > { %3441 = vmatprep.subr.bf16.mxu0 %v3605_v41 }
0x16f9   : > { %3450 = vmatpush3.bf16.msra.mxu1 %v3607_v39  ;;  %v3128_v39 = vld [vmem:[%s4513_s3 + $0x11] ss:$0 sm:$0xff] }
0x16fb   : > { %3442 = vmatpush3.bf16.msra.mxu0 %v3605_v41 }
0x17b6   : > { %v3437_v42 = vpop.f32.mrf.mxu0 }
0x17b7   : > { %2451 = vrot.lane.b32.xlu1 %v3437_v42, %s3795_s10 }
0x17b8   : > { %v2406_v43 = vpop.f32.mrf.mxu0 }
0x17ba   : > { %v3438_v44 = vpop.f32.mrf.mxu0 }
0x17bc   : > { %v2409_v45 = vpop.f32.mrf.mxu0 }
0x17bd   : > { %v3566_v46 = vpack.i.bf16 %v2409_v45, %v2406_v43 }
0x17bf   : > { %3567 = vrot.lane.b32.xlu0 %v3566_v46, %s3795_s10 }
0x1829   : > { %v2452_v53 = vpop.permute.xlu1 %2451 }
0x182a   : > { %v2464_v12 = vsel %vm630_vm3, %v2461_v3, %v2452_v53 }
0x182b   : > { %v2466_v15 = vpack.c.bf16 %v2464_v12, %v2464_v12  ;;  %v3611_v12 = vld [vmem:[%s4512_s2 + $0x120] sm:$0xff]  }
0x1831   : > { %v3568_v0 = vpop.permute.xlu0 %3567 }
0x1832   : > { %v3570_v8 = vunpack.i.h.bf16 %v3568_v0  ;;  %v3569_v9 = vunpack.i.l.bf16 %v3568_v0 }
0x1834   : > { %v2462_v61 = vsel %vm630_vm3, %v2459_v6, %v3569_v9  ;;  %v2463_v14 = vsel %vm630_vm3, %v2460_v11, %v3570_v8  ;;  %v3608_v9 = vld [vmem:[%s4512_s2 + $0x138] sm:$0xff]   ;;  %v3609_v11 = vld [vmem:[%s4512_s2 + $0x130] sm:$0xff]   ;;  %v3610_v6 = vld [vmem:[%s4512_s2 + $0x128] sm:$0xff]  }
0x1835   : > { %v2465_v57 = vpack.c.bf16 %v2463_v14, %v2462_v61  ;;  %3455 = vmatprep.subr.bf16.mxu0 %v3608_v9  ;;  %v3612_v61 = vld [vmem:[%s4512_s2 + $0x118] sm:$0xff]   ;;  %v3613_v14 = vld [vmem:[%s4512_s2 + $0x110] sm:$0xff]  }
0x1837   : > { %3443 = vmatprep.mubr.msk.bf16.mxu0 %vm369_vm1, %v2465_v57  ;;  %v3614_v57 = vld [vmem:[%s4512_s2 + $0x108] sm:$0xff]  }
0x1838   : > { %3444 = vmatmul.mubr.msk.bf16.vlgmr.msra.gmra.mxu0 %vm369_vm1, %v2466_v15  ;;  %v3615_v15 = vld [vmem:[%s4512_s2 + $0x100] sm:$0xff]  }
0x1839   : > { %3456 = vmatpush3.bf16.msra.mxu0 %v3608_v9 }
0x183a   : > { %3457 = vmatprep.subr.bf16.mxu0 %v3609_v11 }
0x183d   : > { %3458 = vmatpush3.bf16.msra.mxu0 %v3609_v11 }
0x183e   : > { %3459 = vmatprep.subr.bf16.mxu0 %v3610_v6 }
0x1841   : > { %3460 = vmatpush3.bf16.msra.mxu0 %v3610_v6 }
0x1842   : > { %3461 = vmatprep.subr.bf16.mxu0 %v3611_v12 }
0x1845   : > { %3462 = vmatpush3.bf16.msra.mxu0 %v3611_v12 }
0x1846   : > { %3463 = vmatprep.subr.bf16.mxu0 %v3612_v61 }
0x1849   : > { %3464 = vmatpush3.bf16.msra.mxu0 %v3612_v61 }
0x184a   : > { %3465 = vmatprep.subr.bf16.mxu0 %v3613_v14 }
0x184d   : > { %3466 = vmatpush3.bf16.msra.mxu0 %v3613_v14  ;;  %v2902_v14 = vld [vmem:[%s4513_s3 + $0x14] sm:$0x1] }
0x184e   : > { %3467 = vmatprep.subr.bf16.mxu0 %v3614_v57 }
0x1851   : > { %3468 = vmatpush3.bf16.msra.mxu0 %v3614_v57 }
0x1852   : > { %3469 = vmatprep.subr.bf16.mxu0 %v3615_v15 }
0x1855   : > { %3470 = vmatpush3.bf16.msra.mxu0 %v3615_v15 }
0x18f8   : > { %v3445_v55 = vpop.f32.mrf.mxu0 }
0x18f9   : > { %v2537_v19 = vadd.f32 %v3445_v55, %v3113_v16  ;;  %v3120_v55 = vld [vmem:[%s4513_s3 + $0x10] ss:$0 sm:$0xff] }
0x18fa   : > { %v2528_v18 = vpop.f32.mrf.mxu0 }
0x18fb   : > { %v2529_v20 = vadd.f32 %v3113_v16, %v2528_v18  ;;  %v2544_v25 = vadd.f32 %v2537_v19, %v4194_v29 }
0x18fc   : > { %v3446_v21 = vpop.f32.mrf.mxu0 }
0x18fd   : > { %v4415_v23 = vadd.f32 %v2529_v20, %v4191_v27  ;;  %v2553_v31 = vsel %vm369_vm1, %v2544_v25, 0.0 }
0x18fe   : > { %v2531_v24 = vpop.f32.mrf.mxu0 }
0x18ff   : > { %v2532_v26 = vadd.f32 %v3113_v16, %v2531_v24  ;;  %v2547_v28 = vsel %vm369_vm1, %v4415_v23, 0.0 }
0x1900   : > { %2548 = vadd.xlane.f32.xlu0 %v2547_v28 }
0x1901   : > { %v2543_v30 = vadd.f32 %v2532_v26, %v4199_v32 }
0x1903   : > { %v2550_v36 = vsel %vm369_vm1, %v2543_v30, 0.0 }
0x1904   : > { %2551 = vadd.xlane.f32.xlu1 %v2550_v36  ;;  %2554 = vadd.xlane.f32.xlu0 %v2553_v31 }
0x1989   : > { %v2549_v33 = vpop.xlane.xlu0 %2548 }
0x198a   : > { %v2556_v34 = vmul.f32 0.03125, %v2549_v33 }
0x198c   : > { %v2559_v27 = vsub.f32 %v4415_v23, %v2556_v34 }
0x198d   : > { %v2552_v54 = vpop.xlane.xlu1 %2551  ;;  %v2555_v35 = vpop.xlane.xlu0 %2554 }
0x198e   : > { %v2557_v29 = vmul.f32 0.03125, %v2552_v54  ;;  %v2558_v56 = vmul.f32 0.03125, %v2555_v35  ;;  %v2562_v37 = vmul.f32 %v2559_v27, %v2559_v27 }
0x1990   : > { %v2560_v22 = vsub.f32 %v2543_v30, %v2557_v29  ;;  %v2561_v1 = vsub.f32 %v2544_v25, %v2558_v56  ;;  %v2565_v10 = vsel %vm369_vm1, %v2562_v37, 0.0 }
0x1991   : > { %2566 = vadd.xlane.f32.xlu0 %v2565_v10 }
0x1992   : > { %v2563_v32 = vmul.f32 %v2560_v22, %v2560_v22  ;;  %v2564_v17 = vmul.f32 %v2561_v1, %v2561_v1 }
0x1994   : > { %v2568_v62 = vsel %vm369_vm1, %v2563_v32, 0.0  ;;  %v2571_v2 = vsel %vm369_vm1, %v2564_v17, 0.0 }
0x1995   : > { %2569 = vadd.xlane.f32.xlu0 %v2568_v62  ;;  %2572 = vadd.xlane.f32.xlu1 %v2571_v2 }
0x1a1a   : > { %v2567_v58 = vpop.xlane.xlu0 %2566 }
0x1a1b   : > { %v2574_v60 = vmul.f32 0.03125, %v2567_v58 }
0x1a1d   : > { %v2577_v63 = vadd.f32 1e-05, %v2574_v60 }
0x1a1e   : > { %v2573_v40 = vpop.xlane.xlu1 %2572  ;;  %v2570_v41 = vpop.xlane.xlu0 %2569 }
0x1a1f   : > { %3752 = vrsqrt.f32 %v2577_v63  ;;  %v2576_v42 = vmul.f32 0.03125, %v2573_v40  ;;  %v2575_v43 = vmul.f32 0.03125, %v2570_v41 }
0x1a21   : > { %v2579_v44 = vadd.f32 1e-05, %v2576_v42  ;;  %v2578_v45 = vadd.f32 1e-05, %v2575_v43 }
0x1a23   : > { %3754 = vrsqrt.f32 %v2579_v44 }
0x1a24   : > { %3756 = vrsqrt.f32 %v2578_v45 }
0x1a2c   : > { %v3753_v46 = vpop.eup %3752 }
0x1a2d   : > { %v2583_v47 = vmul.f32 %v3753_v46, %v2559_v27 }
0x1a2f   : > { %v2590_v5 = vmul.f32 %v3118_v4, %v2583_v47 }
0x1a30   : > { %v3755_v48 = vpop.eup %3754 }
0x1a31   : > { %v3757_v49 = vpop.eup %3756  ;;  %v2585_v50 = vmul.f32 %v3755_v48, %v2561_v1  ;;  %v2597_v59 = vadd.f32 %v3119_v51, %v2590_v5  ;;  %v3796_v48 = vmov 0.0  }
0x1a32   : > { %v2584_v13 = vmul.f32 %v3757_v49, %v2560_v22  ;;  %3475 = vmatprep.subr.bf16.mxu1 %v3796_v48 }
0x1a33   : > { %v2592_v52 = vmul.f32 %v3118_v4, %v2585_v50 }
0x1a34   : > { %v2591_v7 = vmul.f32 %v3118_v4, %v2584_v13  ;;  %v3616_v4 = vld [vmem:[%s4512_s2 + $0x148] sm:$0xff]  }
0x1a35   : > { %v2599_v53 = vadd.f32 %v3119_v51, %v2592_v52 }
0x1a36   : > { %v2598_v0 = vadd.f32 %v3119_v51, %v2591_v7  ;;  %v2819_v51 = vld [vmem:[%s4513_s3 + $0x12] sm:$0x1]  ;;  %v2820_v7 = vld [vmem:[%s4513_s3 + $0x13] sm:$0x1] }
0x1a37   : > { %v2601_v3 = vpack.c.bf16 %v2599_v53, %v2599_v53 }
0x1a38   : > { %v2600_v8 = vpack.c.bf16 %v2598_v0, %v2597_v59  ;;  %v3618_v0 = vld [vmem:[%s4512_s2 + $0x158] sm:$0xff]  }
0x1a3a   : > { %3451 = vmatprep.mubr.msk.bf16.mxu1 %vm369_vm1, %v2600_v8  ;;  %v3619_v8 = vld [vmem:[%s4512_s2 + $0x150] sm:$0xff]  }
0x1a3b   : > { %3452 = vmatmul.mubr.msk.bf16.vlgmr.msra.gmra.mxu1 %vm369_vm1, %v2601_v3 }
0x1a3c   : > { %3476 = vmatpush3.bf16.msra.mxu1 %v3616_v4  ;;  %3479 = vmatprep.mubr.msk.bf16.mxu1 %vm3797_vm7, %v3796_v48 }
0x1a3d   : > { %3477 = vmatprep.subr.bf16.mxu1 %v3796_v48 }
0x1afb   : > { %v3453_v16 = vpop.f32.mrf.mxu1 }
0x1afc   : > { %v2672_v18 = vadd.f32 %v3453_v16, %v3120_v55 }
0x1afd   : > { %v2663_v19 = vpop.f32.mrf.mxu1 }
0x1afe   : > { %v3127_v20 = vmul.f32 -1.702, %v2672_v18  ;;  %v2664_v21 = vadd.f32 %v3120_v55, %v2663_v19 }
0x1aff   : > { %v3454_v24 = vpop.f32.mrf.mxu1 }
0x1b00   : > { %v2687_v25 = vmul.f32 1.442695, %v3127_v20  ;;  %v3125_v26 = vmul.f32 -1.702, %v2664_v21 }
0x1b01   : > { %v2666_v28 = vpop.f32.mrf.mxu1 }
0x1b02   : > { %3758 = vpow2.f32 %v2687_v25  ;;  %v2683_v30 = vmul.f32 1.442695, %v3125_v26  ;;  %v2667_v36 = vadd.f32 %v3120_v55, %v2666_v28  ;;  %v2959_v55 = vld [vmem:[%s4513_s3 + $0x15] sm:$0x1]  ;;  %v2965_v25 = vld [vmem:[%s4513_s3 + $0x16] sm:$0x1] }
0x1b04   : > { %3760 = vpow2.f32 %v2683_v30  ;;  %v3126_v31 = vmul.f32 -1.702, %v2667_v36 }
0x1b06   : > { %v2685_v33 = vmul.f32 1.442695, %v3126_v31 }
0x1b08   : > { %3762 = vpow2.f32 %v2685_v33 }
0x1b0f   : > { %v3759_v34 = vpop.eup %3758 }
0x1b10   : > { %v2691_v54 = vadd.f32 1.0, %v3759_v34 }
0x1b11   : > { %v3761_v27 = vpop.eup %3760 }
0x1b12   : > { %v2689_v35 = vadd.f32 1.0, %v3761_v27  ;;  %3764 = vrcp.f32 %v2691_v54 }
0x1b14   : > { %3766 = vrcp.f32 %v2689_v35 }
0x1b15   : > { %v3763_v29 = vpop.eup %3762 }
0x1b16   : > { %v2690_v56 = vadd.f32 1.0, %v3763_v29 }
0x1b18   : > { %3768 = vrcp.f32 %v2690_v56 }
0x1b1f   : > { %v3765_v37 = vpop.eup %3764 }
0x1b20   : > { %v2700_v10 = vmul.f32 %v3765_v37, %v2672_v18 }
0x1b21   : > { %v3767_v22 = vpop.eup %3766 }
0x1b22   : > { %v2698_v32 = vmul.f32 %v3767_v22, %v2664_v21  ;;  %v2702_v2 = vpack.c.bf16 %v2700_v10, %v2700_v10 }
0x1b25   : > { %v3769_v1 = vpop.eup %3768 }
0x1b26   : > { %v2699_v17 = vmul.f32 %v3769_v1, %v2667_v36 }
0x1b28   : > { %v2701_v62 = vpack.c.bf16 %v2699_v17, %v2698_v32 }
0x1b2a   : > { %3471 = vmatprep.mubr.bf16.mxu0 %v2701_v62 }
0x1b2b   : > { %3472 = vmatmul.mubr.bf16.vlgmr.msra.gmra.mxu0 %v2702_v2 }
0x1beb   : > { %v3473_v38 = vpop.f32.mrf.mxu0 }
0x1bed   : > { %v2806_v58 = vpop.f32.mrf.mxu0 }
0x1bee   : > { %v2807_v60 = vadd.f32 %v3128_v39, %v2806_v58 }
0x1bef   : > { %v3474_v63 = vpop.f32.mrf.mxu0 }
0x1bf0   : > { %v2818_v40 = vadd.f32 %v2807_v60, %v4415_v23  ;;  %v3617_v23 = vld [vmem:[%s4512_s2 + $0x140] sm:$0xff]  }
0x1bf1   : > { %v2809_v41 = vpop.f32.mrf.mxu0  ;;  %3478 = vmatpush3.bf16.msra.mxu1 %v3617_v23 }
0x1bf2   : > { %v2822_v42 = vsel %vm2821_vm6, %v2818_v40, 0.0  ;;  %3483 = vmatprep.subr.bf16.mxu1 %v3796_v48 }
0x1bf3   : > { %2823 = vadd.xlane.f32.xlu0 %v2822_v42 }
0x1c7c   : > { %v2824_v43 = vpop.xlane.xlu0 %2823 }
0x1c7d   : > { %v2825_v44 = vmul.f32 0.03125, %v2824_v43 }
0x1c7f   : > { %v2826_v45 = vsub.f32 %v2818_v40, %v2825_v44 }
0x1c81   : > { %v2827_v46 = vmul.f32 %v2826_v45, %v2826_v45 }
0x1c83   : > { %v2828_v47 = vsel %vm2821_vm6, %v2827_v46, 0.0 }
0x1c84   : > { %2829 = vadd.xlane.f32.xlu1 %v2828_v47 }
0x1d0d   : > { %v2830_v49 = vpop.xlane.xlu1 %2829 }
0x1d0e   : > { %v2831_v50 = vmul.f32 0.03125, %v2830_v49 }
0x1d10   : > { %v2832_v13 = vadd.f32 1e-05, %v2831_v50 }
0x1d12   : > { %3770 = vrsqrt.f32 %v2832_v13 }
0x1d1f   : > { %v3771_v5 = vpop.eup %3770 }
0x1d20   : > { %v2834_v52 = vmul.f32 %v3771_v5, %v2826_v45 }
0x1d22   : > { %v2835_v53 = vmul.f32 %v2834_v52, %v2819_v51 }
0x1d24   : > { %v2836_v59 = vadd.f32 %v2835_v53, %v2820_v7 }
0x1d26   : > { %v2837_v3 = vpack.c.bf16 %v2836_v59, %v2836_v59 }
0x1d28   : > { %3480 = vmatmul.mubr.msk.bf16.vlgmr.msra.gmra.mxu1 %vm369_vm1, %v2837_v3 }
0x1d29   : > { %3484 = vmatpush3.bf16.msra.mxu1 %v3618_v0  ;;  %3487 = vmatprep.mubr.msk.bf16.mxu1 %vm3797_vm7, %v3796_v48 }
0x1d2a   : > { %3485 = vmatprep.subr.bf16.mxu1 %v3796_v48 }
0x1d2d   : > { %3486 = vmatpush3.bf16.msra.mxu1 %v3619_v8 }
0x1de8   : > { %v2891_v9 = vpop.f32.mrf.mxu1 }
0x1de9   : > { %v2897_v11 = vpack.c.bf16 %v2891_v9, %v2891_v9 }
0x1dea   : > { %v3481_v6 = vpop.f32.mrf.mxu1 }
0x1deb   : > { %3488 = vmatmul.mubr.msk.bf16.vlgmr.msra.gmra.mxu1 %vm369_vm1, %v2897_v11 }
0x1dec   : > { %v2894_v12 = vpop.f32.mrf.mxu1 }
0x1dee   : > { %v3482_v61 = vpop.f32.mrf.mxu1 }
0x1eab   : > { %v2952_v57 = vpop.f32.mrf.mxu1 }
0x1eac   : > { %v2953_v15 = vadd.f32 %v2952_v57, %v2902_v14 }
0x1ead   : > { %v3489_v16 = vpop.f32.mrf.mxu1 }
0x1eae   : > { %v2958_v18 = vmax.f32 %v2953_v15, 0.0 }
0x1eaf   : > { %v2955_v19 = vpop.f32.mrf.mxu1 }
0x1eb0   : > { %v2960_v20 = vmul.f32 %v2959_v55, %v2958_v18 }
0x1eb1   : > { %v3490_v21 = vpop.f32.mrf.mxu1 }
0x1eb2   : > { %v2962_v24 = vsel %vm2961_vm8, %v2960_v20, 0.0 }
0x1eb3   : > { %2963 = vadd.xlane.f32.xlu0 %v2962_v24 }
0x1f3c   : > { %v2964_v26 = vpop.xlane.xlu0 %2963 }
0x1f3d   : > { %v2966_v28 = vadd.f32 %v2965_v25, %v2964_v26 }
0x1f3f   : > { %2968 = vst.msk [vmem:[%s193_s27] sm:$0x1] %vm2967_vm9, %v2966_v28 }
0x1f40 PF: > { %s14_s15 = sadd.s32 1, %s3779_s15  }
0x1f41   : > { %p11_p4 = scmp.ge.s32.totalorder %s14_s15, 4  }
0x1f43   :  { %13 = sbr.rel (!%p11_p4) target bundleno = 1 (0x1), region = 66 }

</bundles_post_ra>
